<compile_context>
chip_gen: v7x
topology: tpu7x:2x2x1
jax: 0.10.0
libtpu: 0.0.40
codegen_flags: <defaults>
</compile_context>

<pallas_src>
import jax
import jax.numpy as jnp
from jax.experimental import pallas as pl
from jax.experimental.pallas import tpu as pltpu

EPS = 1e-5


def _mlp_kernel(x_ref, w1_ref, b1_ref, w2_ref, b2_ref, wd_ref, bd_ref, o_ref):
    # Block 1: Linear (eval-mode BN folded in) -> ReLU  [Dropout = identity in eval].
    # x is cast to the weight dtype in-kernel (VPU, hidden under MXU work) so the
    # wrapper never re-materializes x in HBM just to change dtype.
    h = jnp.dot(x_ref[...].astype(w1_ref.dtype), w1_ref[...],
                preferred_element_type=jnp.float32)
    h = jnp.maximum(h + b1_ref[...], 0.0)

    # Block 2: Linear (BN folded) -> ReLU.
    h = jnp.dot(h.astype(w2_ref.dtype), w2_ref[...],
                preferred_element_type=jnp.float32)
    h = jnp.maximum(h + b2_ref[...], 0.0)

    # Head: softmax over 2 logits, take class 1  ==  sigmoid(logit1 - logit0).
    # (Bt, H) @ (H, 1) keeps the activation tile un-transposed (no per-step XLU
    # vxpose of a full (Bt, 512) tile); masked 1-lane store is negligible.
    z = jnp.dot(h.astype(wd_ref.dtype), wd_ref[...],
                preferred_element_type=jnp.float32)
    o_ref[...] = jax.nn.sigmoid(z + bd_ref[...]).astype(o_ref.dtype)


def fold_params(params, *, matmul_dtype=jnp.bfloat16, eps=EPS):
    """Fold eval-mode BatchNorm into the Linear weights/bias and collapse the
    2-class head into a single (hidden, 1) difference column. Done once host-side.
    Matmul operands are cast to `matmul_dtype`; biases stay f32."""
    s1 = params["g1"] * jax.lax.rsqrt(params["v1"] + eps)               # (1, H)
    s2 = params["g2"] * jax.lax.rsqrt(params["v2"] + eps)               # (1, H)
    w1f = (params["w1"] * s1).astype(matmul_dtype)                      # (in, H)
    b1f = (params["b1"] - params["m1"]) * s1 + params["be1"]            # (1, H) f32
    w2f = (params["w2"] * s2).astype(matmul_dtype)                      # (H, H)
    b2f = (params["b2"] - params["m2"]) * s2 + params["be2"]            # (1, H) f32
    wd = (params["w3"][:, 1:2] - params["w3"][:, 0:1]).astype(matmul_dtype)  # (H, 1)
    bd = (params["b3"][:, 1:2] - params["b3"][:, 0:1])                  # (1, 1) f32
    return w1f, b1f, w2f, b2f, wd, bd


def _choose_batch_tile(B):
    """512-1024-row tiles when B is large (~85% of the tiling roofline vs ~63% at
    256), 256-row floor, and always >= 2 grid steps when B allows it so both v7x
    TensorCores get a share of the ("parallel",) grid."""
    if B <= 256:
        return max(8, ((B + 7) // 8) * 8)   # single (possibly ragged) tile
    for tile in (1024, 512, 256):
        if B >= 2 * tile:
            return tile
    return 256


def mlp_forward(x, params, *, matmul_dtype=jnp.bfloat16, batch_tile=None):
    """x: (B, in_dim) float32. Returns (B, 1) float32 = softmax(logits)[:, 1:2]."""
    B, in_dim = x.shape
    w1f, b1f, w2f, b2f, wd, bd = fold_params(params, matmul_dtype=matmul_dtype)
    hidden = w1f.shape[1]

    if batch_tile is None:
        batch_tile = _choose_batch_tile(B)
    n_tiles = pl.cdiv(B, batch_tile)
    # No host-side jnp.pad: Pallas handles the ragged last block (padded reads,
    # masked tail writes), so x makes exactly one trip through HBM.

    def resident(shape):
        # Constant index_map -> fetched once and VMEM-resident across the grid.
        # TODO(synk): pipeline_mode=pl.Buffered(1) would also drop their double
        # buffers (~3 MiB); skipped — irrelevant at these sizes on all generations.
        return pl.BlockSpec(shape, lambda i: (0,) * len(shape))

    compiler_params = pltpu.CompilerParams(
        dimension_semantics=("parallel",),
        # v5e's default scoped VMEM is 16 MiB; only very tall tiles get close.
        vmem_limit_bytes=(48 * 1024 * 1024 if batch_tile >= 1024 else None),
    )

    out = pl.pallas_call(
        _mlp_kernel,
        out_shape=jax.ShapeDtypeStruct((B, 1), jnp.float32),
        grid=(n_tiles,),
        in_specs=[
            pl.BlockSpec((batch_tile, in_dim), lambda i: (i, 0)),      # x tile
            resident((in_dim, hidden)), resident((1, hidden)),         # w1f, b1f
            resident((hidden, hidden)), resident((1, hidden)),         # w2f, b2f
            resident((hidden, 1)), resident((1, 1)),                   # wd, bd
        ],
        out_specs=pl.BlockSpec((batch_tile, 1), lambda i: (i, 0)),
        compiler_params=compiler_params,
    )(x, w1f, b1f, w2f, b2f, wd, bd)

    return out


def mlp_reference(x, params):
    """Pure-JAX reference with the original (unfolded) eval-mode math, all f32."""
    h = x @ params["w1"] + params["b1"]
    h = (h - params["m1"]) / jnp.sqrt(params["v1"] + EPS) * params["g1"] + params["be1"]
    h = jnp.maximum(h, 0.0)
    h = h @ params["w2"] + params["b2"]
    h = (h - params["m2"]) / jnp.sqrt(params["v2"] + EPS) * params["g2"] + params["be2"]
    h = jnp.maximum(h, 0.0)
    logits = h @ params["w3"] + params["b3"]
    p = jax.nn.softmax(logits, axis=1)
    return p[:, 1:2]


def init_params(key, in_dim=300, hidden_dim=512):
    ks = jax.random.split(key, 16)
    u = lambda k, shape, s: (jax.random.uniform(k, shape, jnp.float32) - 0.5) * 2.0 * s

    def xavier(k, fan_in, fan_out):
        limit = jnp.sqrt(6.0 / (fan_in + fan_out))
        return u(k, (fan_in, fan_out), limit)

    return {
        # layer 1
        "w1": xavier(ks[0], in_dim, hidden_dim),
        "b1": u(ks[1], (1, hidden_dim), 0.1),
        "g1": 1.0 + u(ks[2], (1, hidden_dim), 0.1),
        "be1": u(ks[3], (1, hidden_dim), 0.1),
        "m1": u(ks[4], (1, hidden_dim), 0.1),
        "v1": 1.0 + 0.5 * jax.random.uniform(ks[5], (1, hidden_dim), jnp.float32),
        # layer 2
        "w2": xavier(ks[6], hidden_dim, hidden_dim),
        "b2": u(ks[7], (1, hidden_dim), 0.1),
        "g2": 1.0 + u(ks[8], (1, hidden_dim), 0.1),
        "be2": u(ks[9], (1, hidden_dim), 0.1),
        "m2": u(ks[10], (1, hidden_dim), 0.1),
        "v2": 1.0 + 0.5 * jax.random.uniform(ks[11], (1, hidden_dim), jnp.float32),
        # head
        "w3": xavier(ks[12], hidden_dim, 2),
        "b3": u(ks[13], (1, 2), 0.1),
    }


if __name__ == "__main__":
    key = jax.random.PRNGKey(0)
    k_param, k_x = jax.random.split(key)

    # B not divisible by the tile: exercises the 2-step parallel grid AND the
    # ragged (masked) last block. in/hidden dims follow the module defaults.
    B, IN_DIM, HIDDEN = 333, 300, 512
    params = init_params(k_param, in_dim=IN_DIM, hidden_dim=HIDDEN)
    x = jax.random.normal(k_x, (B, IN_DIM), dtype=jnp.float32)

    out = mlp_forward(x, params)              # default bf16-matmul path
    out = jax.block_until_ready(out)

    ref = mlp_reference(x, params)
    assert out.shape == (B, 1), out.shape
    max_err = float(jnp.max(jnp.abs(out - ref)))
    # bf16 matmul inputs with f32 accumulation: tolerance relaxed vs the f32 path
    # (use mlp_forward(..., matmul_dtype=jnp.float32) for ~2e-5 agreement).
    assert max_err < 2e-2, max_err

    print("KERNEL_OK")
</pallas_src>

<mosaic_0001>
module attributes {stable_mosaic.version = 11 : i64} {
  func.func @_mlp_kernel(%arg0: i32, %arg1: memref<256x300xf32, #tpu.memory_space<vmem>>, %arg2: memref<300x512xbf16, #tpu.memory_space<vmem>>, %arg3: memref<1x512xf32, #tpu.memory_space<vmem>>, %arg4: memref<512x512xbf16, #tpu.memory_space<vmem>>, %arg5: memref<1x512xf32, #tpu.memory_space<vmem>>, %arg6: memref<512x1xbf16, #tpu.memory_space<vmem>>, %arg7: memref<1x1xf32, #tpu.memory_space<vmem>>, %arg8: memref<256x1xf32, #tpu.memory_space<vmem>>) attributes {dimension_semantics = [#tpu.dimension_semantics<parallel>], iteration_bounds = array<i64: 2>, scalar_prefetch = 0 : i64, scratch_operands = 0 : i64, tpu.core_type = #tpu.core_type<tc>, window_params = [{transform_indices = @transform_0, window_bounds = array<i64: 256, 300>}, {pipeline_mode = #tpu.pipeline_mode<synchronous>, transform_indices = @transform_1, window_bounds = array<i64: 300, 512>}, {pipeline_mode = #tpu.pipeline_mode<synchronous>, transform_indices = @transform_2, window_bounds = array<i64: 1, 512>}, {pipeline_mode = #tpu.pipeline_mode<synchronous>, transform_indices = @transform_3, window_bounds = array<i64: 512, 512>}, {pipeline_mode = #tpu.pipeline_mode<synchronous>, transform_indices = @transform_4, window_bounds = array<i64: 1, 512>}, {pipeline_mode = #tpu.pipeline_mode<synchronous>, transform_indices = @transform_5, window_bounds = array<i64: 512, 1>}, {pipeline_mode = #tpu.pipeline_mode<synchronous>, transform_indices = @transform_6, window_bounds = array<i64: 1, 1>}, {transform_indices = @transform_7, window_bounds = array<i64: 256, 1>}]} {
    %c0 = arith.constant 0 : index
    %c0_0 = arith.constant 0 : index
    %0 = vector.load %arg1[%c0, %c0_0] : memref<256x300xf32, #tpu.memory_space<vmem>>, vector<256x300xf32>
    %1 = arith.truncf %0 : vector<256x300xf32> to vector<256x300xbf16>
    %c0_1 = arith.constant 0 : index
    %c0_2 = arith.constant 0 : index
    %2 = vector.load %arg2[%c0_1, %c0_2] : memref<300x512xbf16, #tpu.memory_space<vmem>>, vector<300x512xbf16>
    %cst = arith.constant dense<0.000000e+00> : vector<256x512xf32>
    %3 = tpu.matmul %1, %2, %cst {dimension_numbers = #tpu.dot_dimension_numbers<[1], [0], [0], [1], [0, 0, 1, 1], [], []>} : vector<256x300xbf16>, vector<300x512xbf16>, vector<256x512xf32> -> vector<256x512xf32>
    %c0_3 = arith.constant 0 : index
    %c0_4 = arith.constant 0 : index
    %4 = vector.load %arg3[%c0_3, %c0_4] : memref<1x512xf32, #tpu.memory_space<vmem>>, vector<1x512xf32>
    %5 = vector.broadcast %4 : vector<1x512xf32> to vector<256x512xf32>
    %6 = arith.addf %3, %5 : vector<256x512xf32>
    %cst_5 = arith.constant 0.000000e+00 : f32
    %7 = vector.broadcast %cst_5 : f32 to vector<256x512xf32>
    %8 = arith.maximumf %6, %7 : vector<256x512xf32>
    %9 = arith.truncf %8 : vector<256x512xf32> to vector<256x512xbf16>
    %c0_6 = arith.constant 0 : index
    %c0_7 = arith.constant 0 : index
    %10 = vector.load %arg4[%c0_6, %c0_7] : memref<512x512xbf16, #tpu.memory_space<vmem>>, vector<512x512xbf16>
    %cst_8 = arith.constant dense<0.000000e+00> : vector<256x512xf32>
    %11 = tpu.matmul %9, %10, %cst_8 {dimension_numbers = #tpu.dot_dimension_numbers<[1], [0], [0], [1], [0, 0, 1, 1], [], []>} : vector<256x512xbf16>, vector<512x512xbf16>, vector<256x512xf32> -> vector<256x512xf32>
    %c0_9 = arith.constant 0 : index
    %c0_10 = arith.constant 0 : index
    %12 = vector.load %arg5[%c0_9, %c0_10] : memref<1x512xf32, #tpu.memory_space<vmem>>, vector<1x512xf32>
    %13 = vector.broadcast %12 : vector<1x512xf32> to vector<256x512xf32>
    %14 = arith.addf %11, %13 : vector<256x512xf32>
    %cst_11 = arith.constant 0.000000e+00 : f32
    %15 = vector.broadcast %cst_11 : f32 to vector<256x512xf32>
    %16 = arith.maximumf %14, %15 : vector<256x512xf32>
    %17 = arith.truncf %16 : vector<256x512xf32> to vector<256x512xbf16>
    %c0_12 = arith.constant 0 : index
    %c0_13 = arith.constant 0 : index
    %18 = vector.load %arg6[%c0_12, %c0_13] : memref<512x1xbf16, #tpu.memory_space<vmem>>, vector<512x1xbf16>
    %cst_14 = arith.constant dense<0.000000e+00> : vector<256x1xf32>
    %19 = tpu.matmul %17, %18, %cst_14 {dimension_numbers = #tpu.dot_dimension_numbers<[1], [0], [0], [1], [0, 0, 1, 1], [], []>} : vector<256x512xbf16>, vector<512x1xbf16>, vector<256x1xf32> -> vector<256x1xf32>
    %c0_15 = arith.constant 0 : index
    %c0_16 = arith.constant 0 : index
    %20 = vector.load %arg7[%c0_15, %c0_16] : memref<1x1xf32, #tpu.memory_space<vmem>>, vector<1x1xf32>
    %21 = vector.broadcast %20 : vector<1x1xf32> to vector<256x1xf32>
    %22 = arith.addf %19, %21 : vector<256x1xf32>
    %23 = arith.negf %22 : vector<256x1xf32>
    %24 = math.exp %23 : vector<256x1xf32>
    %cst_17 = arith.constant 1.000000e+00 : f32
    %25 = vector.broadcast %cst_17 : f32 to vector<256x1xf32>
    %26 = arith.addf %25, %24 : vector<256x1xf32>
    %27 = arith.divf %25, %26 : vector<256x1xf32>
    %c0_18 = arith.constant 0 : index
    %c0_19 = arith.constant 0 : index
    %28 = vector.load %arg8[%c0_18, %c0_19] : memref<256x1xf32, #tpu.memory_space<vmem>>, vector<256x1xf32>
    tpu.vector_store %arg8[%c0_18, %c0_19], %27 {strides = array<i32>} : memref<256x1xf32, #tpu.memory_space<vmem>>, vector<256x1xf32>,
    return
  }
  func.func @transform_0(%arg0: i32) -> (i32, i32) {
    %c0_i32 = arith.constant 0 : i32
    %c0_i32_0 = arith.constant 0 : i32
    return %arg0, %c0_i32 : i32, i32
  }
  func.func @transform_1(%arg0: i32) -> (i32, i32) {
    %c0_i32 = arith.constant 0 : i32
    %c0_i32_0 = arith.constant 0 : i32
    %c0_i32_1 = arith.constant 0 : i32
    return %c0_i32, %c0_i32_0 : i32, i32
  }
  func.func @transform_2(%arg0: i32) -> (i32, i32) {
    %c0_i32 = arith.constant 0 : i32
    %c0_i32_0 = arith.constant 0 : i32
    %c0_i32_1 = arith.constant 0 : i32
    return %c0_i32, %c0_i32_0 : i32, i32
  }
  func.func @transform_3(%arg0: i32) -> (i32, i32) {
    %c0_i32 = arith.constant 0 : i32
    %c0_i32_0 = arith.constant 0 : i32
    %c0_i32_1 = arith.constant 0 : i32
    return %c0_i32, %c0_i32_0 : i32, i32
  }
  func.func @transform_4(%arg0: i32) -> (i32, i32) {
    %c0_i32 = arith.constant 0 : i32
    %c0_i32_0 = arith.constant 0 : i32
    %c0_i32_1 = arith.constant 0 : i32
    return %c0_i32, %c0_i32_0 : i32, i32
  }
  func.func @transform_5(%arg0: i32) -> (i32, i32) {
    %c0_i32 = arith.constant 0 : i32
    %c0_i32_0 = arith.constant 0 : i32
    %c0_i32_1 = arith.constant 0 : i32
    return %c0_i32, %c0_i32_0 : i32, i32
  }
  func.func @transform_6(%arg0: i32) -> (i32, i32) {
    %c0_i32 = arith.constant 0 : i32
    %c0_i32_0 = arith.constant 0 : i32
    %c0_i32_1 = arith.constant 0 : i32
    return %c0_i32, %c0_i32_0 : i32, i32
  }
  func.func @transform_7(%arg0: i32) -> (i32, i32) {
    %c0_i32 = arith.constant 0 : i32
    %c0_i32_0 = arith.constant 0 : i32
    return %arg0, %c0_i32 : i32, i32
  }
}

</mosaic_0001>

<bundles_post_ra>
// kernel: tpu_custom_call.1
= control target key start
LH: loop header
LB: loop body
LE: loop exit
PB: predicated region body
PF: predicated region fallthrough
CT: control target
= control target key end

     0   :  { %s8191_s0 = inlined_call_operand.vmem [shape: f32[333,300], index: 0, kind: input, shape index: {}]   ;;  %s8192_s1 = inlined_call_operand.vmem [shape: bf16[300,512], index: 1, kind: input, shape index: {}]   ;;  %s8193_s2 = inlined_call_operand.vmem [shape: f32[1,512], index: 2, kind: input, shape index: {}]   ;;  %s8194_s3 = inlined_call_operand.vmem [shape: bf16[512,512], index: 3, kind: input, shape index: {}]   ;;  %s8195_s4 = inlined_call_operand.vmem [shape: f32[1,512], index: 4, kind: input, shape index: {}]   ;;  %s8196_s5 = inlined_call_operand.vmem [shape: bf16[512,1], index: 5, kind: input, shape index: {}]   ;;  %s8197_s6 = inlined_call_operand.<no memory space> [shape: f32[1,1], index: 6, kind: input, shape index: {}]   ;;  %s8198_s7 = inlined_call_operand.vmem [shape: f32[333,1], index: 7, kind: output, shape index: {}]  }
   0x1   :  { %v12_v0 = vstv %s8197_s6 }
   0x2   :  { %13 = vst [vmem:[#allocation2] sm:$0x1] %v12_v0 }
   0x3   :  { %s6612_s26 = smov 0   ;;  %s6614_s27 = smov 0  }
   0x4   :  { %s6616_s28 = smov 0  }
   0x5 LB: > { %s6625_s6 = sadd.s32 4294967295, %s6534_s28   ;;  %s6627_s29 = sadd.s32 1, %s6534_s28   ;;  %s6534_s28 = sphi %s6616_s28, %s8207_s28   ;;  %s6530_s27 = sphi %s6614_s27, %s8206_s27   ;;  %s6526_s26 = sphi %s6612_s26, %s8205_s26  }
   0x6   : > { %s175_s30 = ssub.s32 %s6534_s28, %s6627_s29  ;;  %s178_s8 = sadd.s32 1, %s6530_s27 }
   0x7   : > { %p176_p0 = scmp.eq.s32.totalorder %s175_s30, 0  ;;  %p188_p1 = scmp.ne.s32.totalorder %s6530_s27, %s6526_s26 }
   0x8   : > { %p189_p2 = scmp.eq.s32.totalorder %s6625_s6, 1  ;;  %p4861_p3 = scmp.ge.s32.totalorder %s6534_s28, 1 }
   0x9   : > { %s6635_s9 = scalar_select %p176_p0, %s6530_s27, %s178_s8  }
   0xa   : > { %p6637_p4 = por %p189_p2, %p188_p1  ;;  %p251_p5 = scmp.lt.s32.totalorder %s6534_s28, 3 }
   0xc   : > { %p252_p6 = pnand %p4861_p3, %p251_p5 }
   0xd   : > { %v6014_v1 = vld [vmem:[%s8192_s1 + $0x4] ss:$16 sps:$4 sm:$0xff] (!%p252_p6)   ;;  %v6016_v2 = vld [vmem:[%s8192_s1 + $0xc] ss:$16 sps:$4 sm:$0xff] (!%p252_p6)   ;;  %v6018_v3 = vld [vmem:[%s8192_s1] ss:$16 sps:$4 sm:$0xff] (!%p252_p6)  }
   0xe   : > { %255 = sbr.rel (%p252_p6) target bundleno = 1203 (0x4b3), region = 48  ;;  %991 = vmatprep.subr.bf16.mxu0 (!%p252_p6), %v6014_v1  ;;  %v6019_v4 = vld [vmem:[%s8192_s1 + $0x8] ss:$16 sps:$4 sm:$0xff] (!%p252_p6)   ;;  %1377 = vmatprep.subr.bf16.mxu1 (!%p252_p6), %v6016_v2  ;;  %v6020_v5 = vld [vmem:[%s8192_s1 + $0x24] ss:$16 sps:$4 sm:$0xff] (!%p252_p6)   ;;  %s6729_s15 = sshll.u32 (!%p252_p6), %s6625_s6, 5 }
   0xf   : > { %992 = vmatpush1.bf16.msra.mxu0 (!%p252_p6), %v6018_v3  ;;  %1378 = vmatpush1.bf16.msra.mxu1 (!%p252_p6), %v6019_v4  ;;  %v6022_v6 = vld [vmem:[%s8192_s1 + $0x2c] ss:$16 sps:$4 sm:$0xff] (!%p252_p6)   ;;  %v6024_v7 = vld [vmem:[%s8192_s1 + $0x20] ss:$16 sps:$4 sm:$0xff] (!%p252_p6)   ;;  %v6025_v8 = vld [vmem:[%s8192_s1 + $0x28] ss:$16 sps:$4 sm:$0xff] (!%p252_p6)  }
  0x10   : > { %993 = vmatprep.subr.bf16.mxu0 (!%p252_p6), %v6020_v5  ;;  %1379 = vmatprep.subr.bf16.mxu1 (!%p252_p6), %v6022_v6  ;;  %v6026_v9 = vld [vmem:[%s8192_s1 + $0x44] ss:$16 sps:$4 sm:$0xff] (!%p252_p6)   ;;  %v6028_v10 = vld [vmem:[%s8192_s1 + $0x4c] ss:$16 sps:$4 sm:$0xff] (!%p252_p6)   ;;  %v6030_v11 = vld [vmem:[%s8192_s1 + $0x40] ss:$16 sps:$4 sm:$0xff] (!%p252_p6)  }
  0x11   : > { %v6031_v12 = vld [vmem:[%s8192_s1 + $0x48] ss:$16 sps:$4 sm:$0xff] (!%p252_p6)   ;;  %v6032_v13 = vld [vmem:[%s8192_s1 + $0x64] ss:$16 sps:$4 sm:$0xff] (!%p252_p6)   ;;  %v6034_v14 = vld [vmem:[%s8192_s1 + $0x6c] ss:$16 sps:$4 sm:$0xff] (!%p252_p6)  }
  0x12   : > { %v6036_v15 = vld [vmem:[%s8192_s1 + $0x60] ss:$16 sps:$4 sm:$0xff] (!%p252_p6)   ;;  %v6037_v16 = vld [vmem:[%s8192_s1 + $0x68] ss:$16 sps:$4 sm:$0xff] (!%p252_p6)   ;;  %v6038_v17 = vld [vmem:[%s8192_s1 + $0x84] ss:$16 sps:$4 sm:$0xff] (!%p252_p6)  }
  0x13   : > { %994 = vmatpush1.bf16.msra.mxu0 (!%p252_p6), %v6024_v7  ;;  %1380 = vmatpush1.bf16.msra.mxu1 (!%p252_p6), %v6025_v8  ;;  %v6040_v18 = vld [vmem:[%s8192_s1 + $0x8c] ss:$16 sps:$4 sm:$0xff] (!%p252_p6)   ;;  %v6042_v19 = vld [vmem:[%s8192_s1 + $0x80] ss:$16 sps:$4 sm:$0xff] (!%p252_p6)   ;;  %v6043_v20 = vld [vmem:[%s8192_s1 + $0x88] ss:$16 sps:$4 sm:$0xff] (!%p252_p6)  }
  0x14   : > { %995 = vmatprep.subr.bf16.mxu0 (!%p252_p6), %v6026_v9  ;;  %1381 = vmatprep.subr.bf16.mxu1 (!%p252_p6), %v6028_v10  ;;  %v6044_v21 = vld [vmem:[%s8192_s1 + $0xa4] ss:$16 sps:$4 sm:$0xff] (!%p252_p6)   ;;  %v6046_v22 = vld [vmem:[%s8192_s1 + $0xac] ss:$16 sps:$4 sm:$0xff] (!%p252_p6)   ;;  %v6048_v23 = vld [vmem:[%s8192_s1 + $0xa0] ss:$16 sps:$4 sm:$0xff] (!%p252_p6)  }
  0x15   : > { %v6049_v24 = vld [vmem:[%s8192_s1 + $0xa8] ss:$16 sps:$4 sm:$0xff]   ;;  %v6050_v25 = vld [vmem:[%s8192_s1 + $0xc4] ss:$16 sps:$4 sm:$0xff]   ;;  %v6052_v26 = vld [vmem:[%s8192_s1 + $0xcc] ss:$16 sps:$4 sm:$0xff]  }
  0x16   : > { %v6054_v27 = vld [vmem:[%s8192_s1 + $0xc0] ss:$16 sps:$4 sm:$0xff]   ;;  %v6055_v28 = vld [vmem:[%s8192_s1 + $0xc8] ss:$16 sps:$4 sm:$0xff]   ;;  %v6056_v29 = vld [vmem:[%s8192_s1 + $0xe4] ss:$16 sps:$4 sm:$0xff]  }
  0x17   : > { %996 = vmatpush1.bf16.msra.mxu0 %v6030_v11  ;;  %1382 = vmatpush1.bf16.msra.mxu1 %v6031_v12  ;;  %v6058_v30 = vld [vmem:[%s8192_s1 + $0xec] ss:$16 sps:$4 sm:$0xff]   ;;  %v6060_v31 = vld [vmem:[%s8192_s1 + $0xe0] ss:$16 sps:$4 sm:$0xff]   ;;  %p294_p7 = scmp.lt.s32.totalorder %s6729_s15, 41  ;;  %vm978_vm0 = vcmask 1045504  }
  0x18   : > { %997 = vmatprep.subr.bf16.mxu0 %v6032_v13  ;;  %1383 = vmatprep.subr.bf16.mxu1 %v6034_v14  ;;  %v6061_v32 = vld [vmem:[%s8192_s1 + $0xe8] ss:$16 sps:$4 sm:$0xff]   ;;  %v6062_v33 = vld [vmem:[%s8192_s1 + $0x104] ss:$16 sps:$4 sm:$0xff]   ;;  %v6064_v34 = vld [vmem:[%s8192_s1 + $0x10c] ss:$16 sps:$4 sm:$0xff]  }
  0x19   : > { %v6066_v35 = vld [vmem:[%s8192_s1 + $0x100] ss:$16 sps:$4 sm:$0xff]   ;;  %v6067_v36 = vld [vmem:[%s8192_s1 + $0x108] ss:$16 sps:$4 sm:$0xff]   ;;  %s295_s12 = scalar_select %p294_p7, %s6729_s15, 41  ;;  %vm929_vm1 = vcmask 359424  }
  0x1a   : > { %v6068_v37 = vld [vmem:[%s8192_s1 + $0x124] ss:$16 sps:$4 sm:$0xff]   ;;  %v6070_v38 = vld [vmem:[%s8192_s1 + $0x12c] ss:$16 sps:$4 sm:$0xff]   ;;  %v6072_v39 = vld [vmem:[%s8192_s1 + $0x120] ss:$16 sps:$4 sm:$0xff]  }
  0x1b   : > { %998 = vmatpush1.bf16.msra.mxu0 %v6036_v15  ;;  %1384 = vmatpush1.bf16.msra.mxu1 %v6037_v16  ;;  %s5924_s20 = smul.u32 24, %s295_s12  ;;  %v6073_v40 = vld [vmem:[%s8192_s1 + $0x128] ss:$16 sps:$4 sm:$0xff]   ;;  %v6074_v41 = vld [vmem:[%s8192_s1 + $0x144] ss:$16 sps:$4 sm:$0xff]   ;;  %s285_s25 = sand.u32 1, %s6526_s26  }
  0x1c   : > { %999 = vmatprep.subr.bf16.mxu0 %v6038_v17  ;;  %1385 = vmatprep.subr.bf16.mxu1 %v6040_v18  ;;  %v6076_v42 = vld [vmem:[%s8192_s1 + $0x14c] ss:$16 sps:$4 sm:$0xff]   ;;  %v6078_v43 = vld [vmem:[%s8192_s1 + $0x140] ss:$16 sps:$4 sm:$0xff]   ;;  %v6079_v44 = vld [vmem:[%s8192_s1 + $0x148] ss:$16 sps:$4 sm:$0xff]  }
  0x1d   : > { %s6781_s16 = scalar_lea.vmem %s8191_s0, %s5924_s20  ;;  %v6080_v45 = vld [vmem:[%s8192_s1 + $0x164] ss:$16 sps:$4 sm:$0xff]   ;;  %v6082_v46 = vld [vmem:[%s8192_s1 + $0x16c] ss:$16 sps:$4 sm:$0xff]   ;;  %v6084_v48 = vld [vmem:[%s8192_s1 + $0x160] ss:$16 sps:$4 sm:$0xff]  }
  0x1e   : > { %v312_v47 = vld [vmem:[%s6781_s16 + $0x8] sm:$0xff]  ;;  %v315_v49 = vld [vmem:[%s6781_s16 + $0x20] sm:$0xff]  ;;  %v314_v5 = vld [vmem:[%s6781_s16 + $0x18] sm:$0xff]  ;;  %s4862_s28 = sshll.u32 %s285_s25, 8  ;;  %vm4486_vm2 = vcmask 7168   ;;  %s4527_s30 = ssub.s32 (%p6637_p4), 42, %s6729_s15 }
  0x1f   : > { %1000 = vmatpush1.bf16.msra.mxu0 %v6042_v19  ;;  %1386 = vmatpush1.bf16.msra.mxu1 %v6043_v20  ;;  %v6085_v50 = vld [vmem:[%s8192_s1 + $0x168] ss:$16 sps:$4 sm:$0xff]   ;;  %v408_v51 = vpack.c.bf16 %v315_v49, %v312_v47  ;;  %v6086_v52 = vld [vmem:[%s8192_s1 + $0x184] ss:$16 sps:$4 sm:$0xff]   ;;  %v6088_v53 = vld [vmem:[%s8192_s1 + $0x18c] ss:$16 sps:$4 sm:$0xff]  }
  0x20   : > { %1001 = vmatprep.subr.bf16.mxu0 %v6044_v21  ;;  %1387 = vmatprep.subr.bf16.mxu1 %v6046_v22  ;;  %v6090_v54 = vld [vmem:[%s8192_s1 + $0x180] ss:$16 sps:$4 sm:$0xff]   ;;  %v6091_v55 = vld [vmem:[%s8192_s1 + $0x188] ss:$16 sps:$4 sm:$0xff]   ;;  %v6092_v56 = vld [vmem:[%s8192_s1 + $0x1a4] ss:$16 sps:$4 sm:$0xff]  }
  0x21   : > { %1023 = vmatprep.mubr.bf16.mxu0 %v408_v51  ;;  %1409 = vmatprep.mubr.bf16.mxu1 %v408_v51  ;;  %v6094_v57 = vld [vmem:[%s8192_s1 + $0x1ac] ss:$16 sps:$4 sm:$0xff]   ;;  %v6096_v58 = vld [vmem:[%s8192_s1 + $0x1a0] ss:$16 sps:$4 sm:$0xff]   ;;  %v6097_v59 = vld [vmem:[%s8192_s1 + $0x1a8] ss:$16 sps:$4 sm:$0xff]  }
  0x22   : > { %v6098_v60 = vld [vmem:[%s8192_s1 + $0x1c4] ss:$16 sps:$4 sm:$0xff]   ;;  %v6100_v61 = vld [vmem:[%s8192_s1 + $0x1cc] ss:$16 sps:$4 sm:$0xff]   ;;  %v6102_v62 = vld [vmem:[%s8192_s1 + $0x1c0] ss:$16 sps:$4 sm:$0xff]  }
  0x23   : > { %1002 = vmatpush1.bf16.msra.mxu0 %v6048_v23  ;;  %1388 = vmatpush1.bf16.msra.mxu1 %v6049_v24  ;;  %v6103_v63 = vld [vmem:[%s8192_s1 + $0x1c8] ss:$16 sps:$4 sm:$0xff]   ;;  %v6104_v0 = vld [vmem:[%s8192_s1 + $0x1e4] ss:$16 sps:$4 sm:$0xff]   ;;  %v6106_v1 = vld [vmem:[%s8192_s1 + $0x1ec] ss:$16 sps:$4 sm:$0xff]  }
  0x24   : > { %1003 = vmatprep.subr.bf16.mxu0 %v6050_v25  ;;  %1389 = vmatprep.subr.bf16.mxu1 %v6052_v26  ;;  %v6108_v2 = vld [vmem:[%s8192_s1 + $0x1e0] ss:$16 sps:$4 sm:$0xff]   ;;  %v6109_v3 = vld [vmem:[%s8192_s1 + $0x1e8] ss:$16 sps:$4 sm:$0xff]   ;;  %v6112_v6 = vld [vmem:[%s8192_s1 + $0x204] ss:$16 sps:$4 sm:$0xff]  }
  0x25   : > { %v311_v4 = vld [vmem:[%s6781_s16] sm:$0xff]  ;;  %v318_v7 = vld [vmem:[%s6781_s16 + $0x38] sm:$0xff]  ;;  %v321_v8 = vld [vmem:[%s6781_s16 + $0x50] sm:$0xff]  ;;  %s7962_s26 = scalar_lea.vmem [#allocation3], %s4862_s28   ;;  %s5185_s8 = sshll.u32 (%p6637_p4), %s6625_s6, 8 }
  0x26   : > { %v407_v9 = vpack.c.bf16 %v314_v5, %v311_v4  ;;  %v6110_v10 = vld [vmem:[%s8192_s1 + $0x200] ss:$16 sps:$4 sm:$0xff]   ;;  %v411_v11 = vpack.c.bf16 %v321_v8, %v318_v7  ;;  %v6115_v12 = vld [vmem:[%s8192_s1 + $0x224] ss:$16 sps:$4 sm:$0xff]   ;;  %v6121_v13 = vld [vmem:[%s8192_s1 + $0x20c] ss:$16 sps:$4 sm:$0xff]   ;;  %s8059_s13 = scalar_lea.vmem (%p6637_p4), %s8198_s7, %s5185_s8  }
  0x27   : > { %1004 = vmatpush1.bf16.msra.mxu0 %v6054_v27  ;;  %1390 = vmatpush1.bf16.msra.mxu1 %v6055_v28  ;;  %v317_v14 = vld [vmem:[%s6781_s16 + $0x30] sm:$0xff]  ;;  %v320_v15 = vld [vmem:[%s6781_s16 + $0x48] sm:$0xff]  ;;  %v327_v18 = vld [vmem:[%s6781_s16 + $0x80] sm:$0xff]  ;;  %p4528_p8 = scmp.lt.s32.totalorder (%p6637_p4), %s4527_s30, 32 }
  0x28   : > { %1005 = vmatprep.subr.bf16.mxu0 %v6056_v29  ;;  %1391 = vmatprep.subr.bf16.mxu1 %v6058_v30  ;;  %v6119_v16 = vld [vmem:[%s8192_s1 + $0x208] ss:$16 sps:$4 sm:$0xff]   ;;  %v6113_v19 = vld [vmem:[%s8192_s1 + $0x220] ss:$16 sps:$4 sm:$0xff]   ;;  %v6124_v22 = vld [vmem:[%s8192_s1 + $0x22c] ss:$16 sps:$4 sm:$0xff]   ;;  %v410_v23 = vpack.c.bf16 %v320_v15, %v317_v14 }
  0x29   : > { %v324_v17 = vld [vmem:[%s6781_s16 + $0x68] sm:$0xff]  ;;  %v6116_v20 = vld [vmem:[%s8192_s1 + $0x244] ss:$16 sps:$4 sm:$0x3f]   ;;  %v326_v29 = vld [vmem:[%s6781_s16 + $0x78] sm:$0xff] }
  0x2a   : > { %v6118_v21 = vld [vmem:[%s8192_s1 + $0x240] ss:$16 sps:$4 sm:$0x3f]   ;;  %v414_v24 = vpack.c.bf16 %v327_v18, %v324_v17  ;;  %v6122_v25 = vld [vmem:[%s8192_s1 + $0x228] ss:$16 sps:$4 sm:$0xff]  }
  0x2b   : > { %1006 = vmatpush1.bf16.msra.mxu0 %v6060_v31  ;;  %1392 = vmatpush1.bf16.msra.mxu1 %v6061_v32  ;;  %v6125_v26 = vld [vmem:[%s8192_s1 + $0x24c] ss:$16 sps:$4 sm:$0x3f]   ;;  %v6127_v27 = vld [vmem:[%s8192_s1 + $0x248] ss:$16 sps:$4 sm:$0x3f]  }
  0x2c   : > { %1007 = vmatprep.subr.bf16.mxu0 %v6062_v33  ;;  %1393 = vmatprep.subr.bf16.mxu1 %v6064_v34  ;;  %v323_v28 = vld [vmem:[%s6781_s16 + $0x60] sm:$0xff]  ;;  %v980_v30 = vsel %vm978_vm0, %v6118_v21, 0  ;;  %v330_v31 = vld [vmem:[%s6781_s16 + $0x98] sm:$0xff]  ;;  %v333_v32 = vld [vmem:[%s6781_s16 + $0xb0] sm:$0xff]  ;;  %v986_v33 = vsel %vm978_vm0, %v6127_v27, 0 }
  0x2d   : > { %v413_v34 = vpack.c.bf16 %v326_v29, %v323_v28  ;;  %v344_v49 = vld [vmem:[%s6781_s16 + $0x108] sm:$0xff]  ;;  %v351_v51 = vld [vmem:[%s6781_s16 + $0x140] sm:$0xff]  ;;  %v366_v4 = vld [vmem:[%s6781_s16 + $0x1b8] sm:$0xff] }
  0x2e   : > { %v369_v5 = vld [vmem:[%s6781_s16 + $0x1d0] sm:$0xff]  ;;  %v371_v14 = vld [vmem:[%s6781_s16 + $0x1e0] sm:$0xff]  ;;  %v374_v15 = vld [vmem:[%s6781_s16 + $0x1f8] sm:$0xff] }
  0x2f   : > { %1008 = vmatpush1.bf16.msra.mxu0 %v6066_v35  ;;  %1394 = vmatpush1.bf16.msra.mxu1 %v6067_v36  ;;  %v417_v35 = vpack.c.bf16 %v333_v32, %v330_v31  ;;  %v329_v36 = vld [vmem:[%s6781_s16 + $0x90] sm:$0xff]  ;;  %v435_v7 = vpack.c.bf16 %v369_v5, %v366_v4  ;;  %v437_v18 = vpack.c.bf16 %v374_v15, %v371_v14  ;;  %v380_v21 = vld [vmem:[%s6781_s16 + $0x228] sm:$0xff]  ;;  %v383_v27 = vld [vmem:[%s6781_s16 + $0x240] sm:$0xff] }
  0x30   : > { %1009 = vmatprep.subr.bf16.mxu0 %v6068_v37  ;;  %1395 = vmatprep.subr.bf16.mxu1 %v6070_v38  ;;  %v332_v37 = vld [vmem:[%s6781_s16 + $0xa8] sm:$0xff]  ;;  %v365_v8 = vld [vmem:[%s6781_s16 + $0x1b0] sm:$0xff]  ;;  %v386_v28 = vld [vmem:[%s6781_s16 + $0x258] sm:$0xff] }
  0x31   : > { %v336_v38 = vld [vmem:[%s6781_s16 + $0xc8] sm:$0xff]  ;;  %v381_v17 = vld [vmem:[%s6781_s16 + $0x230] sm:$0xff]  ;;  %v390_v29 = vld [vmem:[%s6781_s16 + $0x278] sm:$0xff]  ;;  %v443_v31 = vpack.c.bf16 %v386_v28, %v383_v27 }
  0x32   : > { %v325_v4 = vld [vmem:[%s6781_s16 + $0x70] sm:$0xff]  ;;  %v328_v5 = vld [vmem:[%s6781_s16 + $0x88] sm:$0xff]  ;;  %v331_v15 = vld [vmem:[%s6781_s16 + $0xa0] sm:$0xff] }
  0x33   : > { %1010 = vmatpush1.bf16.msra.mxu0 %v6072_v39  ;;  %1396 = vmatpush1.bf16.msra.mxu1 %v6073_v40  ;;  %v339_v39 = vld [vmem:[%s6781_s16 + $0xe0] sm:$0xff]  ;;  %v416_v40 = vpack.c.bf16 %v332_v37, %v329_v36  ;;  %v396_v36 = vld [vmem:[%s6781_s16 + $0x2a8] sm:$0xff] }
  0x34   : > { %1011 = vmatprep.subr.bf16.mxu0 %v6074_v41  ;;  %1397 = vmatprep.subr.bf16.mxu1 %v6076_v42  ;;  %v420_v41 = vpack.c.bf16 %v339_v39, %v336_v38  ;;  %v335_v42 = vld [vmem:[%s6781_s16 + $0xc0] sm:$0xff]  ;;  %v6163_v14 = vld [vmem:[%s8194_s3 + $0xac] ss:$16 sps:$4 sm:$0xff]  }
  0x35   : > { %v399_v37 = vld [vmem:[%s6781_s16 + $0x2c0] sm:$0xff]  ;;  %v340_v27 = vld [vmem:[%s6781_s16 + $0xe8] sm:$0xff] }
  0x36   : > { %v450_v39 = vpack.c.bf16 %v399_v37, %v396_v36  ;;  %v6170_v28 = vld [vmem:[%s8194_s3 + $0xe0] ss:$16 sps:$4 sm:$0xff]   ;;  %v6187_v36 = vld [vmem:[%s8194_s3 + $0x12c] ss:$16 sps:$4 sm:$0xff]  }
  0x37   : > { %1012 = vmatpush1.bf16.msra.mxu0 %v6078_v43  ;;  %1398 = vmatpush1.bf16.msra.mxu1 %v6079_v44  ;;  %v338_v43 = vld [vmem:[%s6781_s16 + $0xd8] sm:$0xff]  ;;  %v343_v37 = vld [vmem:[%s6781_s16 + $0x100] sm:$0xff] }
  0x38   : > { %1013 = vmatprep.subr.bf16.mxu0 %v6080_v45  ;;  %1399 = vmatprep.subr.bf16.mxu1 %v6082_v46  ;;  %v342_v44 = vld [vmem:[%s6781_s16 + $0xf8] sm:$0xff]  ;;  %v345_v45 = vld [vmem:[%s6781_s16 + $0x110] sm:$0xff]  ;;  %v419_v46 = vpack.c.bf16 %v338_v43, %v335_v42 }
  0x39   : > { %v423_v47 = vpack.c.bf16 %v345_v45, %v342_v44  ;;  %v402_v42 = vld [vmem:[%s6781_s16 + $0x2d8] sm:$0xff]  ;;  %v405_v43 = vld [vmem:[%s6781_s16 + $0x2f0] sm:$0xff] }
  0x3a   : > { %v453_v45 = vpack.c.bf16 %v405_v43, %v402_v42  ;;  %v6193_v42 = vld [vmem:[%s8194_s3 + $0x14c] ss:$16 sps:$4 sm:$0xff]  }
  0x3b   : > { %1014 = vmatpush1.bf16.msra.mxu0 %v6084_v48  ;;  %1400 = vmatpush1.bf16.msra.mxu1 %v6085_v50  ;;  %v341_v48 = vld [vmem:[%s6781_s16 + $0xf0] sm:$0xff]  ;;  %v348_v50 = vld [vmem:[%s6781_s16 + $0x128] sm:$0xff] }
  0x3c   : > { %1015 = vmatprep.subr.bf16.mxu0 %v6086_v52  ;;  %1401 = vmatprep.subr.bf16.mxu1 %v6088_v53  ;;  %v422_v52 = vpack.c.bf16 %v344_v49, %v341_v48  ;;  %v426_v53 = vpack.c.bf16 %v351_v51, %v348_v50  ;;  %v6568_v49 = vmov 0   ;;  %v313_v50 = vld [vmem:[%s6781_s16 + $0x10] sm:$0xff]  ;;  %v316_v51 = vld [vmem:[%s6781_s16 + $0x28] sm:$0xff] }
  0x3f   : > { %1016 = vmatpush1.bf16.msra.mxu0 %v6090_v54  ;;  %1402 = vmatpush1.bf16.msra.mxu1 %v6091_v55  ;;  %v347_v54 = vld [vmem:[%s6781_s16 + $0x120] sm:$0xff]  ;;  %v350_v55 = vld [vmem:[%s6781_s16 + $0x138] sm:$0xff] }
  0x40   : > { %1017 = vmatprep.subr.bf16.mxu0 %v6092_v56  ;;  %1403 = vmatprep.subr.bf16.mxu1 %v6094_v57  ;;  %v354_v56 = vld [vmem:[%s6781_s16 + $0x158] sm:$0xff]  ;;  %v357_v57 = vld [vmem:[%s6781_s16 + $0x170] sm:$0xff] }
  0x43   : > { %1018 = vmatpush1.bf16.msra.mxu0 %v6096_v58  ;;  %1404 = vmatpush1.bf16.msra.mxu1 %v6097_v59  ;;  %v425_v58 = vpack.c.bf16 %v350_v55, %v347_v54  ;;  %v429_v59 = vpack.c.bf16 %v357_v57, %v354_v56  ;;  %v6131_v54 = vld [vmem:[%s8194_s3 + $0x8] ss:$16 sps:$4 sm:$0xff]   ;;  %v6136_v55 = vld [vmem:[%s8194_s3 + $0x24] ss:$16 sps:$4 sm:$0xff]   ;;  %v6139_v56 = vld [vmem:[%s8194_s3 + $0x2c] ss:$16 sps:$4 sm:$0xff]  }
  0x44   : > { %1019 = vmatprep.subr.bf16.mxu0 %v6098_v60  ;;  %1405 = vmatprep.subr.bf16.mxu1 %v6100_v61  ;;  %v353_v60 = vld [vmem:[%s6781_s16 + $0x150] sm:$0xff]  ;;  %v356_v61 = vld [vmem:[%s6781_s16 + $0x168] sm:$0xff]  ;;  %v319_v57 = vld [vmem:[%s6781_s16 + $0x40] sm:$0xff] }
  0x47   : > { %1020 = vmatpush1.bf16.msra.mxu0 %v6102_v62  ;;  %1406 = vmatpush1.bf16.msra.mxu1 %v6103_v63  ;;  %v360_v62 = vld [vmem:[%s6781_s16 + $0x188] sm:$0xff]  ;;  %v363_v63 = vld [vmem:[%s6781_s16 + $0x1a0] sm:$0xff] }
  0x48   : > { %1021 = vmatprep.subr.bf16.mxu0 %v6104_v0  ;;  %1407 = vmatprep.subr.bf16.mxu1 %v6106_v1  ;;  %v428_v0 = vpack.c.bf16 %v356_v61, %v353_v60  ;;  %v432_v1 = vpack.c.bf16 %v363_v63, %v360_v62  ;;  %v6137_v60 = vld [vmem:[%s8194_s3 + $0x28] ss:$16 sps:$4 sm:$0xff]   ;;  %v6142_v61 = vld [vmem:[%s8194_s3 + $0x44] ss:$16 sps:$4 sm:$0xff]   ;;  %v6145_v62 = vld [vmem:[%s8194_s3 + $0x4c] ss:$16 sps:$4 sm:$0xff]  }
  0x4b   : > { %1022 = vmatpush1.bf16.msra.mxu0 %v6108_v2  ;;  %1408 = vmatpush1.bf16.msra.mxu1 %v6109_v3  ;;  %v359_v2 = vld [vmem:[%s6781_s16 + $0x180] sm:$0xff]  ;;  %v362_v3 = vld [vmem:[%s6781_s16 + $0x198] sm:$0xff] }
  0x4c   : > { %1184 = vmatprep.subr.bf16.mxu0 %v6112_v6  ;;  %1570 = vmatprep.subr.bf16.mxu1 %v6121_v13  ;;  %v431_v6 = vpack.c.bf16 %v362_v3, %v359_v2  ;;  %v6148_v2 = vld [vmem:[%s8194_s3 + $0x64] ss:$16 sps:$4 sm:$0xff]   ;;  %v6151_v3 = vld [vmem:[%s8194_s3 + $0x6c] ss:$16 sps:$4 sm:$0xff]  }
  0x4e   : > { %1024 = vmatmul.mubr.bf16.vlgmr.msra.gmra.mrb[0].mxu0 %v407_v9  ;;  %1410 = vmatmul.mubr.bf16.vlgmr.msra.gmra.mrb[0].mxu1 %v407_v9  ;;  %v368_v9 = vld [vmem:[%s6781_s16 + $0x1c8] sm:$0xff] }
  0x4f   : > { %1185 = vmatpush1.bf16.msra.mxu0 %v6110_v10  ;;  %1033 = vmatprep.mubr.bf16.mxu0 %v411_v11  ;;  %v372_v10 = vld [vmem:[%s6781_s16 + $0x1e8] sm:$0xff] }
  0x50   : > { %1419 = vmatprep.mubr.bf16.mxu1 %v411_v11  ;;  %1186 = vmatprep.subr.bf16.mxu0 %v6115_v12  ;;  %v375_v11 = vld [vmem:[%s6781_s16 + $0x200] sm:$0xff]  ;;  %v434_v12 = vpack.c.bf16 %v368_v9, %v365_v8  ;;  %v6157_v9 = vld [vmem:[%s8194_s3 + $0x8c] ss:$16 sps:$4 sm:$0xff]  }
  0x51   : > { %1571 = vmatpush1.bf16.msra.mxu1 %v6119_v16  ;;  %v438_v13 = vpack.c.bf16 %v375_v11, %v372_v10  ;;  %v378_v16 = vld [vmem:[%s6781_s16 + $0x218] sm:$0xff]  ;;  %v6154_v8 = vld [vmem:[%s8194_s3 + $0x84] ss:$16 sps:$4 sm:$0xff]   ;;  %v415_v10 = vpack.c.bf16 %v328_v5, %v325_v4  ;;  %v6152_v11 = vld [vmem:[%s8194_s3 + $0x80] ss:$16 sps:$4 sm:$0xff]  }
  0x52   : > { %1572 = vmatprep.subr.bf16.mxu1 %v6124_v22  ;;  %v384_v22 = vld [vmem:[%s6781_s16 + $0x248] sm:$0xff]  ;;  %v361_v5 = vld [vmem:[%s6781_s16 + $0x190] sm:$0xff] }
  0x53   : > { %1187 = vmatpush1.bf16.msra.mxu0 %v6113_v19  ;;  %v441_v19 = vpack.c.bf16 %v381_v17, %v378_v16  ;;  %v334_v16 = vld [vmem:[%s6781_s16 + $0xb8] sm:$0xff]  ;;  %v6158_v17 = vld [vmem:[%s8194_s3 + $0xa0] ss:$16 sps:$4 sm:$0xff]  }
  0x54   : > { %4941 = vmatprep.subr.msk.bf16.mxu0 %vm978_vm0, %v6116_v20  ;;  %v377_v20 = vld [vmem:[%s6781_s16 + $0x210] sm:$0xff]  ;;  %v6215_v4 = vld [vmem:[%s8194_s3 + $0x1c8] ss:$16 sps:$4 sm:$0xff]  }
  0x55   : > { %1573 = vmatpush1.bf16.msra.mxu1 %v6122_v25 }
  0x56   : > { %1034 = vmatmul.mubr.bf16.gmra.mrb[4].mxu0 %v410_v23  ;;  %1420 = vmatmul.mubr.bf16.gmra.mrb[4].mxu1 %v410_v23  ;;  %v387_v23 = vld [vmem:[%s6781_s16 + $0x260] sm:$0xff] }
  0x57   : > { %1043 = vmatprep.mubr.bf16.mxu0 %v414_v24  ;;  %1429 = vmatprep.mubr.bf16.mxu1 %v414_v24  ;;  %v440_v24 = vpack.c.bf16 %v380_v21, %v377_v20  ;;  %v444_v25 = vpack.c.bf16 %v387_v23, %v384_v22  ;;  %v6169_v20 = vld [vmem:[%s8194_s3 + $0xcc] ss:$16 sps:$4 sm:$0xff]   ;;  %v418_v21 = vpack.c.bf16 %v334_v16, %v331_v15  ;;  %v6164_v22 = vld [vmem:[%s8194_s3 + $0xc0] ss:$16 sps:$4 sm:$0xff]   ;;  %v6167_v23 = vld [vmem:[%s8194_s3 + $0xc8] ss:$16 sps:$4 sm:$0xff]  }
  0x58   : > { %1189 = vmatpush1.bf16.msra.mxu0 %v980_v30  ;;  %4958 = vmatprep.subr.msk.bf16.mxu1 %vm978_vm0, %v6125_v26  ;;  %v6130_v26 = vld [vmem:[%s8194_s3 + $0x4] ss:$16 sps:$4 sm:$0xff]   ;;  %v382_v15 = vld [vmem:[%s6781_s16 + $0x238] sm:$0xff] }
  0x59   : > { %1575 = vmatpush1.bf16.msra.mxu1 %v986_v33  ;;  %v393_v30 = vld [vmem:[%s6781_s16 + $0x290] sm:$0xff]  ;;  %2745 = vmatprep.subr.bf16.mxu0 %v6130_v26  ;;  %v6133_v33 = vld [vmem:[%s8194_s3 + $0xc] ss:$16 sps:$4 sm:$0xff]  }
  0x5a   : > { %v447_v32 = vpack.c.bf16 %v393_v30, %v390_v29  ;;  %3131 = vmatprep.subr.bf16.mxu1 %v6133_v33  ;;  %v337_v26 = vld [vmem:[%s6781_s16 + $0xd0] sm:$0xff]  ;;  %v6173_v29 = vld [vmem:[%s8194_s3 + $0xe8] ss:$16 sps:$4 sm:$0xff]  }
  0x5b   : > { %v6178_v30 = vld [vmem:[%s8194_s3 + $0x104] ss:$16 sps:$4 sm:$0xff]   ;;  %v6176_v33 = vld [vmem:[%s8194_s3 + $0x100] ss:$16 sps:$4 sm:$0xff]  }
  0x5e   : > { %1044 = vmatmul.mubr.bf16.gmra.mrb[8].mxu0 %v413_v34  ;;  %1430 = vmatmul.mubr.bf16.gmra.mrb[8].mxu1 %v413_v34  ;;  %v389_v34 = vld [vmem:[%s6781_s16 + $0x270] sm:$0xff] }
  0x5f   : > { %1053 = vmatprep.mubr.bf16.mxu0 %v417_v35  ;;  %1439 = vmatprep.mubr.bf16.mxu1 %v417_v35  ;;  %v392_v35 = vld [vmem:[%s6781_s16 + $0x288] sm:$0xff] }
  0x60   : > { %v446_v38 = vpack.c.bf16 %v392_v35, %v389_v34  ;;  %v6179_v34 = vld [vmem:[%s8194_s3 + $0x108] ss:$16 sps:$4 sm:$0xff]   ;;  %v6184_v35 = vld [vmem:[%s8194_s3 + $0x124] ss:$16 sps:$4 sm:$0xff]  }
  0x66   : > { %1054 = vmatmul.mubr.bf16.gmra.mrb[12].mxu0 %v416_v40  ;;  %1440 = vmatmul.mubr.bf16.gmra.mrb[12].mxu1 %v416_v40  ;;  %v395_v40 = vld [vmem:[%s6781_s16 + $0x2a0] sm:$0xff] }
  0x67   : > { %1063 = vmatprep.mubr.bf16.mxu0 %v420_v41  ;;  %1449 = vmatprep.mubr.bf16.mxu1 %v420_v41  ;;  %v398_v41 = vld [vmem:[%s6781_s16 + $0x2b8] sm:$0xff] }
  0x68   : > { %v449_v44 = vpack.c.bf16 %v398_v41, %v395_v40  ;;  %v6185_v40 = vld [vmem:[%s8194_s3 + $0x128] ss:$16 sps:$4 sm:$0xff]   ;;  %v6190_v41 = vld [vmem:[%s8194_s3 + $0x144] ss:$16 sps:$4 sm:$0xff]  }
  0x6e   : > { %1064 = vmatmul.mubr.bf16.gmra.mrb[16].mxu0 %v419_v46  ;;  %1450 = vmatmul.mubr.bf16.gmra.mrb[16].mxu1 %v419_v46  ;;  %v401_v46 = vld [vmem:[%s6781_s16 + $0x2d0] sm:$0xff] }
  0x6f   : > { %1073 = vmatprep.mubr.bf16.mxu0 %v423_v47  ;;  %1459 = vmatprep.mubr.bf16.mxu1 %v423_v47  ;;  %v404_v47 = vld [vmem:[%s6781_s16 + $0x2e8] sm:$0xff] }
  0x70   : > { %v452_v48 = vpack.c.bf16 %v404_v47, %v401_v46  ;;  %v6196_v46 = vld [vmem:[%s8194_s3 + $0x164] ss:$16 sps:$4 sm:$0xff]   ;;  %v6199_v47 = vld [vmem:[%s8194_s3 + $0x16c] ss:$16 sps:$4 sm:$0xff]  }
  0x76   : > { %1074 = vmatmul.mubr.bf16.gmra.mrb[20].mxu0 %v422_v52  ;;  %1460 = vmatmul.mubr.bf16.gmra.mrb[20].mxu1 %v422_v52  ;;  %v409_v52 = vpack.c.bf16 %v316_v51, %v313_v50  ;;  %v352_v50 = vld [vmem:[%s6781_s16 + $0x148] sm:$0xff]  ;;  %v6194_v51 = vld [vmem:[%s8194_s3 + $0x160] ss:$16 sps:$4 sm:$0xff]  }
  0x77   : > { %1083 = vmatprep.mubr.bf16.mxu0 %v426_v53  ;;  %1469 = vmatprep.mubr.bf16.mxu1 %v426_v53  ;;  %v6128_v53 = vld [vmem:[%s8194_s3] ss:$16 sps:$4 sm:$0xff]  }
  0x7e   : > { %1084 = vmatmul.mubr.bf16.gmra.mrb[24].mxu0 %v425_v58  ;;  %1470 = vmatmul.mubr.bf16.gmra.mrb[24].mxu1 %v425_v58  ;;  %v322_v58 = vld [vmem:[%s6781_s16 + $0x58] sm:$0xff] }
  0x7f   : > { %1093 = vmatprep.mubr.bf16.mxu0 %v429_v59  ;;  %1479 = vmatprep.mubr.bf16.mxu1 %v429_v59  ;;  %v6134_v59 = vld [vmem:[%s8194_s3 + $0x20] ss:$16 sps:$4 sm:$0xff]   ;;  %v412_v63 = vpack.c.bf16 %v322_v58, %v319_v57  ;;  %v6203_v57 = vld [vmem:[%s8194_s3 + $0x188] ss:$16 sps:$4 sm:$0xff]   ;;  %v6208_v58 = vld [vmem:[%s8194_s3 + $0x1a4] ss:$16 sps:$4 sm:$0xff]  }
  0x86   : > { %1094 = vmatmul.mubr.bf16.gmra.mrb[28].mxu0 %v428_v0  ;;  %1480 = vmatmul.mubr.bf16.gmra.mrb[28].mxu1 %v428_v0  ;;  %v6140_v0 = vld [vmem:[%s8194_s3 + $0x40] ss:$16 sps:$4 sm:$0xff]  }
  0x87   : > { %1103 = vmatprep.mubr.bf16.mxu0 %v432_v1  ;;  %1489 = vmatprep.mubr.bf16.mxu1 %v432_v1  ;;  %v6143_v1 = vld [vmem:[%s8194_s3 + $0x48] ss:$16 sps:$4 sm:$0xff]  }
  0x8e   : > { %1104 = vmatmul.mubr.bf16.gmra.mrb[32].mxu0 %v431_v6  ;;  %1490 = vmatmul.mubr.bf16.gmra.mrb[32].mxu1 %v431_v6  ;;  %v6146_v6 = vld [vmem:[%s8194_s3 + $0x60] ss:$16 sps:$4 sm:$0xff]  }
  0x8f   : > { %1113 = vmatprep.mubr.bf16.mxu0 %v435_v7  ;;  %1499 = vmatprep.mubr.bf16.mxu1 %v435_v7  ;;  %v6149_v7 = vld [vmem:[%s8194_s3 + $0x68] ss:$16 sps:$4 sm:$0xff]  }
  0x96   : > { %1114 = vmatmul.mubr.bf16.gmra.mrb[36].mxu0 %v434_v12  ;;  %1500 = vmatmul.mubr.bf16.gmra.mrb[36].mxu1 %v434_v12  ;;  %v6155_v12 = vld [vmem:[%s8194_s3 + $0x88] ss:$16 sps:$4 sm:$0xff]  }
  0x97   : > { %1123 = vmatprep.mubr.bf16.mxu0 %v438_v13  ;;  %1509 = vmatprep.mubr.bf16.mxu1 %v438_v13  ;;  %v6160_v13 = vld [vmem:[%s8194_s3 + $0xa4] ss:$16 sps:$4 sm:$0xff]  }
  0x9e   : > { %1124 = vmatmul.mubr.bf16.gmra.mrb[40].mxu0 %v437_v18  ;;  %1510 = vmatmul.mubr.bf16.gmra.mrb[40].mxu1 %v437_v18  ;;  %v6161_v18 = vld [vmem:[%s8194_s3 + $0xa8] ss:$16 sps:$4 sm:$0xff]  }
  0x9f   : > { %1133 = vmatprep.mubr.bf16.mxu0 %v441_v19  ;;  %1519 = vmatprep.mubr.bf16.mxu1 %v441_v19  ;;  %v6166_v19 = vld [vmem:[%s8194_s3 + $0xc4] ss:$16 sps:$4 sm:$0xff]  }
  0xa6   : > { %1134 = vmatmul.mubr.bf16.gmra.mrb[44].mxu0 %v440_v24  ;;  %1520 = vmatmul.mubr.bf16.gmra.mrb[44].mxu1 %v440_v24  ;;  %v6172_v24 = vld [vmem:[%s8194_s3 + $0xe4] ss:$16 sps:$4 sm:$0xff]  }
  0xa7   : > { %1143 = vmatprep.mubr.bf16.mxu0 %v444_v25  ;;  %1529 = vmatprep.mubr.bf16.mxu1 %v444_v25  ;;  %v6175_v25 = vld [vmem:[%s8194_s3 + $0xec] ss:$16 sps:$4 sm:$0xff]  }
  0xae   : > { %1144 = vmatmul.mubr.bf16.gmra.mrb[48].mxu0 %v443_v31  ;;  %1530 = vmatmul.mubr.bf16.gmra.mrb[48].mxu1 %v443_v31  ;;  %v6181_v31 = vld [vmem:[%s8194_s3 + $0x10c] ss:$16 sps:$4 sm:$0xff]  }
  0xaf   : > { %1153 = vmatprep.mubr.bf16.mxu0 %v447_v32  ;;  %1539 = vmatprep.mubr.bf16.mxu1 %v447_v32  ;;  %v421_v32 = vpack.c.bf16 %v340_v27, %v337_v26  ;;  %v6226_v26 = vld [vmem:[%s8194_s3 + $0x204] ss:$16 sps:$4 sm:$0xff]  }
  0xb6   : > { %1154 = vmatmul.mubr.bf16.gmra.mrb[52].mxu0 %v446_v38  ;;  %1540 = vmatmul.mubr.bf16.gmra.mrb[52].mxu1 %v446_v38  ;;  %v346_v38 = vld [vmem:[%s6781_s16 + $0x118] sm:$0xff] }
  0xb7   : > { %1163 = vmatprep.mubr.bf16.mxu0 %v450_v39  ;;  %1549 = vmatprep.mubr.bf16.mxu1 %v450_v39  ;;  %v6182_v39 = vld [vmem:[%s8194_s3 + $0x120] ss:$16 sps:$4 sm:$0xff]   ;;  %v424_v43 = vpack.c.bf16 %v346_v38, %v343_v37 }
  0xbe   : > { %1164 = vmatmul.mubr.bf16.gmra.mrb[56].mxu0 %v449_v44  ;;  %1550 = vmatmul.mubr.bf16.gmra.mrb[56].mxu1 %v449_v44  ;;  %v6188_v44 = vld [vmem:[%s8194_s3 + $0x140] ss:$16 sps:$4 sm:$0xff]  }
  0xbf   : > { %1173 = vmatprep.mubr.bf16.mxu0 %v453_v45  ;;  %1559 = vmatprep.mubr.bf16.mxu1 %v453_v45  ;;  %v6191_v45 = vld [vmem:[%s8194_s3 + $0x148] ss:$16 sps:$4 sm:$0xff]  }
  0xc6   : > { %1174 = vmatmul.mubr.bf16.gmra.mrb[60].mxu0 %v452_v48  ;;  %1560 = vmatmul.mubr.bf16.gmra.mrb[60].mxu1 %v452_v48  ;;  %v349_v48 = vld [vmem:[%s6781_s16 + $0x130] sm:$0xff] }
  0xc7   : > { %1216 = vmatprep.mubr.bf16.mxu0 %v6568_v49  ;;  %1602 = vmatprep.mubr.bf16.mxu1 %v6568_v49 }
  0xce   : > { %4942 = vmatmul.mubr.msk.bf16.vlgmr.msra.gmra.mrb[0].mxu0 %vm929_vm1, %v409_v52  ;;  %4959 = vmatmul.mubr.msk.bf16.vlgmr.msra.gmra.mrb[0].mxu1 %vm929_vm1, %v409_v52  ;;  %v6197_v52 = vld [vmem:[%s8194_s3 + $0x168] ss:$16 sps:$4 sm:$0xff]  }
  0xcf   : > { %1226 = vmatprep.mubr.bf16.mxu0 %v6568_v49  ;;  %1612 = vmatprep.mubr.bf16.mxu1 %v6568_v49 }
  0xd0   : > { %2746 = vmatpush1.bf16.msra.mxu0 %v6128_v53  ;;  %3132 = vmatpush1.bf16.msra.mxu1 %v6131_v54  ;;  %v6202_v53 = vld [vmem:[%s8194_s3 + $0x184] ss:$16 sps:$4 sm:$0xff]   ;;  %v6205_v54 = vld [vmem:[%s8194_s3 + $0x18c] ss:$16 sps:$4 sm:$0xff]  }
  0xd1   : > { %2747 = vmatprep.subr.bf16.mxu0 %v6136_v55  ;;  %3133 = vmatprep.subr.bf16.mxu1 %v6139_v56  ;;  %v427_v55 = vpack.c.bf16 %v352_v50, %v349_v48  ;;  %v6200_v56 = vld [vmem:[%s8194_s3 + $0x180] ss:$16 sps:$4 sm:$0xff]  }
  0xd4   : > { %2748 = vmatpush1.bf16.msra.mxu0 %v6134_v59  ;;  %3134 = vmatpush1.bf16.msra.mxu1 %v6137_v60  ;;  %v6211_v59 = vld [vmem:[%s8194_s3 + $0x1ac] ss:$16 sps:$4 sm:$0xff]   ;;  %v355_v60 = vld [vmem:[%s6781_s16 + $0x160] sm:$0xff] }
  0xd5   : > { %2749 = vmatprep.subr.bf16.mxu0 %v6142_v61  ;;  %3135 = vmatprep.subr.bf16.mxu1 %v6145_v62  ;;  %v358_v61 = vld [vmem:[%s6781_s16 + $0x178] sm:$0xff]  ;;  %v6206_v62 = vld [vmem:[%s8194_s3 + $0x1a0] ss:$16 sps:$4 sm:$0xff]  }
  0xd6   : > { %4943 = vmatmul.mubr.msk.bf16.gmra.mrb[4].mxu0 %vm929_vm1, %v412_v63  ;;  %4960 = vmatmul.mubr.msk.bf16.gmra.mrb[4].mxu1 %vm929_vm1, %v412_v63  ;;  %v6209_v63 = vld [vmem:[%s8194_s3 + $0x1a8] ss:$16 sps:$4 sm:$0xff]  }
  0xd7   : > { %1236 = vmatprep.mubr.bf16.mxu0 %v6568_v49  ;;  %1622 = vmatprep.mubr.bf16.mxu1 %v6568_v49 }
  0xd8   : > { %2750 = vmatpush1.bf16.msra.mxu0 %v6140_v0  ;;  %3136 = vmatpush1.bf16.msra.mxu1 %v6143_v1  ;;  %v6214_v0 = vld [vmem:[%s8194_s3 + $0x1c4] ss:$16 sps:$4 sm:$0xff]   ;;  %v6217_v1 = vld [vmem:[%s8194_s3 + $0x1cc] ss:$16 sps:$4 sm:$0xff]  }
  0xd9   : > { %2751 = vmatprep.subr.bf16.mxu0 %v6148_v2  ;;  %3137 = vmatprep.subr.bf16.mxu1 %v6151_v3  ;;  %v430_v2 = vpack.c.bf16 %v358_v61, %v355_v60  ;;  %v6212_v3 = vld [vmem:[%s8194_s3 + $0x1c0] ss:$16 sps:$4 sm:$0xff]  }
  0xdc   : > { %2752 = vmatpush1.bf16.msra.mxu0 %v6146_v6  ;;  %3138 = vmatpush1.bf16.msra.mxu1 %v6149_v7  ;;  %v364_v6 = vld [vmem:[%s6781_s16 + $0x1a8] sm:$0xff] }
  0xdd   : > { %2753 = vmatprep.subr.bf16.mxu0 %v6154_v8  ;;  %3139 = vmatprep.subr.bf16.mxu1 %v6157_v9  ;;  %v433_v7 = vpack.c.bf16 %v364_v6, %v361_v5  ;;  %v367_v8 = vld [vmem:[%s6781_s16 + $0x1c0] sm:$0xff]  ;;  %v370_v9 = vld [vmem:[%s6781_s16 + $0x1d8] sm:$0xff] }
  0xde   : > { %4944 = vmatmul.mubr.msk.bf16.gmra.mrb[8].mxu0 %vm929_vm1, %v415_v10  ;;  %4961 = vmatmul.mubr.msk.bf16.gmra.mrb[8].mxu1 %vm929_vm1, %v415_v10  ;;  %v436_v10 = vpack.c.bf16 %v370_v9, %v367_v8 }
  0xdf   : > { %1246 = vmatprep.mubr.bf16.mxu0 %v6568_v49  ;;  %1632 = vmatprep.mubr.bf16.mxu1 %v6568_v49 }
  0xe0   : > { %2754 = vmatpush1.bf16.msra.mxu0 %v6152_v11  ;;  %3140 = vmatpush1.bf16.msra.mxu1 %v6155_v12  ;;  %v373_v11 = vld [vmem:[%s6781_s16 + $0x1f0] sm:$0xff]  ;;  %v376_v12 = vld [vmem:[%s6781_s16 + $0x208] sm:$0xff] }
  0xe1   : > { %2755 = vmatprep.subr.bf16.mxu0 %v6160_v13  ;;  %3141 = vmatprep.subr.bf16.mxu1 %v6163_v14  ;;  %v439_v13 = vpack.c.bf16 %v376_v12, %v373_v11  ;;  %v379_v14 = vld [vmem:[%s6781_s16 + $0x220] sm:$0xff] }
  0xe2   : > { %v442_v16 = vpack.c.bf16 %v382_v15, %v379_v14  ;;  %v6224_v12 = vld [vmem:[%s8194_s3 + $0x200] ss:$16 sps:$4 sm:$0xff]  }
  0xe4   : > { %2756 = vmatpush1.bf16.msra.mxu0 %v6158_v17  ;;  %3142 = vmatpush1.bf16.msra.mxu1 %v6161_v18  ;;  %v385_v17 = vld [vmem:[%s6781_s16 + $0x250] sm:$0xff] }
  0xe5   : > { %2757 = vmatprep.subr.bf16.mxu0 %v6166_v19  ;;  %3143 = vmatprep.subr.bf16.mxu1 %v6169_v20  ;;  %v6220_v18 = vld [vmem:[%s8194_s3 + $0x1e4] ss:$16 sps:$4 sm:$0xff]   ;;  %v6223_v19 = vld [vmem:[%s8194_s3 + $0x1ec] ss:$16 sps:$4 sm:$0xff]  }
  0xe6   : > { %4945 = vmatmul.mubr.msk.bf16.gmra.mrb[12].mxu0 %vm929_vm1, %v418_v21  ;;  %4962 = vmatmul.mubr.msk.bf16.gmra.mrb[12].mxu1 %vm929_vm1, %v418_v21  ;;  %v388_v20 = vld [vmem:[%s6781_s16 + $0x268] sm:$0xff]  ;;  %v6218_v21 = vld [vmem:[%s8194_s3 + $0x1e0] ss:$16 sps:$4 sm:$0xff]  }
  0xe7   : > { %1256 = vmatprep.mubr.bf16.mxu0 %v6568_v49  ;;  %1642 = vmatprep.mubr.bf16.mxu1 %v6568_v49 }
  0xe8   : > { %2758 = vmatpush1.bf16.msra.mxu0 %v6164_v22  ;;  %3144 = vmatpush1.bf16.msra.mxu1 %v6167_v23  ;;  %v6221_v22 = vld [vmem:[%s8194_s3 + $0x1e8] ss:$16 sps:$4 sm:$0xff]   ;;  %v445_v23 = vpack.c.bf16 %v388_v20, %v385_v17 }
  0xe9   : > { %2759 = vmatprep.subr.bf16.mxu0 %v6172_v24  ;;  %3145 = vmatprep.subr.bf16.mxu1 %v6175_v25  ;;  %v391_v24 = vld [vmem:[%s6781_s16 + $0x280] sm:$0xff]  ;;  %v394_v25 = vld [vmem:[%s6781_s16 + $0x298] sm:$0xff] }
  0xea   : > { %v448_v27 = vpack.c.bf16 %v394_v25, %v391_v24 }
  0xec   : > { %2760 = vmatpush1.bf16.msra.mxu0 %v6170_v28  ;;  %3146 = vmatpush1.bf16.msra.mxu1 %v6173_v29  ;;  %v6229_v28 = vld [vmem:[%s8194_s3 + $0x20c] ss:$16 sps:$4 sm:$0xff]   ;;  %v397_v29 = vld [vmem:[%s6781_s16 + $0x2b0] sm:$0xff] }
  0xed   : > { %2761 = vmatprep.subr.bf16.mxu0 %v6178_v30  ;;  %3147 = vmatprep.subr.bf16.mxu1 %v6181_v31  ;;  %v400_v30 = vld [vmem:[%s6781_s16 + $0x2c8] sm:$0xff] }
  0xee   : > { %4946 = vmatmul.mubr.msk.bf16.gmra.mrb[16].mxu0 %vm929_vm1, %v421_v32  ;;  %4963 = vmatmul.mubr.msk.bf16.gmra.mrb[16].mxu1 %vm929_vm1, %v421_v32  ;;  %v451_v31 = vpack.c.bf16 %v400_v30, %v397_v29  ;;  %v403_v32 = vld [vmem:[%s6781_s16 + $0x2e0] sm:$0xff] }
  0xef   : > { %1266 = vmatprep.mubr.bf16.mxu0 %v6568_v49  ;;  %1652 = vmatprep.mubr.bf16.mxu1 %v6568_v49  ;;  %v6230_v30 = vld [vmem:[%s8194_s3 + $0x220] ss:$16 sps:$4 sm:$0xff]  }
  0xf0   : > { %2762 = vmatpush1.bf16.msra.mxu0 %v6176_v33  ;;  %3148 = vmatpush1.bf16.msra.mxu1 %v6179_v34  ;;  %v406_v33 = vld [vmem:[%s6781_s16 + $0x2f8] sm:$0xff] }
  0xf1   : > { %2763 = vmatprep.subr.bf16.mxu0 %v6184_v35  ;;  %3149 = vmatprep.subr.bf16.mxu1 %v6187_v36  ;;  %v454_v34 = vpack.c.bf16 %v406_v33, %v403_v32  ;;  %v533_v35 = vlaneseq  ;;  %v6238_v32 = vld [vmem:[%s8194_s3 + $0x244] ss:$16 sps:$4 sm:$0xff]  }
  0xf3   : > { %v7241_v36 = vshrl.u32 %v533_v35, 7 }
  0xf4   : > { %2764 = vmatpush1.bf16.msra.mxu0 %v6182_v39  ;;  %3150 = vmatpush1.bf16.msra.mxu1 %v6185_v40  ;;  %v531_v39 = vld [vmem:[%s8193_s2] sm:$0xf] }
  0xf5   : > { %2765 = vmatprep.subr.bf16.mxu0 %v6190_v41  ;;  %3151 = vmatprep.subr.bf16.mxu1 %v6193_v42  ;;  %v535_v37 = vsub.s32 0, %v7241_v36  ;;  %v543_v38 = vsub.s32 2, %v7241_v36  ;;  %v547_v40 = vsub.s32 3, %v7241_v36 }
  0xf6   : > { %4947 = vmatmul.mubr.msk.bf16.gmra.mrb[20].mxu0 %vm929_vm1, %v424_v43  ;;  %4964 = vmatmul.mubr.msk.bf16.gmra.mrb[20].mxu1 %vm929_vm1, %v424_v43 }
  0xf7   : > { %1276 = vmatprep.mubr.bf16.mxu0 %v6568_v49  ;;  %1662 = vmatprep.mubr.bf16.mxu1 %v6568_v49  ;;  %v7252_v41 = vrot.slane %v531_v39, %v535_v37  ;;  %v7256_v42 = vrot.slane %v531_v39, %v543_v38 }
  0xf8   : > { %2766 = vmatpush1.bf16.msra.mxu0 %v6188_v44  ;;  %3152 = vmatpush1.bf16.msra.mxu1 %v6191_v45  ;;  %v7264_v44 = vrot.slane %v531_v39, %v547_v40 }
  0xf9   : > { %2767 = vmatprep.subr.bf16.mxu0 %v6196_v46  ;;  %3153 = vmatprep.subr.bf16.mxu1 %v6199_v47 }
  0xfc   : > { %2768 = vmatpush1.bf16.msra.mxu0 %v6194_v51  ;;  %3154 = vmatpush1.bf16.msra.mxu1 %v6197_v52 }
  0xfd   : > { %2769 = vmatprep.subr.bf16.mxu0 %v6202_v53  ;;  %3155 = vmatprep.subr.bf16.mxu1 %v6205_v54 }
  0xfe   : > { %4948 = vmatmul.mubr.msk.bf16.gmra.mrb[24].mxu0 %vm929_vm1, %v427_v55  ;;  %4965 = vmatmul.mubr.msk.bf16.gmra.mrb[24].mxu1 %vm929_vm1, %v427_v55 }
  0xff   : > { %1286 = vmatprep.mubr.bf16.mxu0 %v6568_v49  ;;  %1672 = vmatprep.mubr.bf16.mxu1 %v6568_v49 }
 0x100   : > { %2770 = vmatpush1.bf16.msra.mxu0 %v6200_v56  ;;  %3156 = vmatpush1.bf16.msra.mxu1 %v6203_v57 }
 0x101   : > { %2771 = vmatprep.subr.bf16.mxu0 %v6208_v58  ;;  %3157 = vmatprep.subr.bf16.mxu1 %v6211_v59 }
 0x104   : > { %2772 = vmatpush1.bf16.msra.mxu0 %v6206_v62  ;;  %3158 = vmatpush1.bf16.msra.mxu1 %v6209_v63 }
 0x105   : > { %2773 = vmatprep.subr.bf16.mxu0 %v6214_v0  ;;  %3159 = vmatprep.subr.bf16.mxu1 %v6217_v1 }
 0x106   : > { %4949 = vmatmul.mubr.msk.bf16.gmra.mrb[28].mxu0 %vm929_vm1, %v430_v2  ;;  %4966 = vmatmul.mubr.msk.bf16.gmra.mrb[28].mxu1 %vm929_vm1, %v430_v2 }
 0x107   : > { %1296 = vmatprep.mubr.bf16.mxu0 %v6568_v49  ;;  %1682 = vmatprep.mubr.bf16.mxu1 %v6568_v49 }
 0x108   : > { %2774 = vmatpush1.bf16.msra.mxu0 %v6212_v3  ;;  %3160 = vmatpush1.bf16.msra.mxu1 %v6215_v4 }
 0x109   : > { %2775 = vmatprep.subr.bf16.mxu0 %v6220_v18  ;;  %3161 = vmatprep.subr.bf16.mxu1 %v6223_v19  ;;  %v6232_v18 = vld [vmem:[%s8194_s3 + $0x224] ss:$16 sps:$4 sm:$0xff]   ;;  %v6235_v19 = vld [vmem:[%s8194_s3 + $0x22c] ss:$16 sps:$4 sm:$0xff]  }
 0x10c   : > { %2776 = vmatpush1.bf16.msra.mxu0 %v6218_v21  ;;  %3162 = vmatpush1.bf16.msra.mxu1 %v6221_v22 }
 0x10d   : > { %2938 = vmatprep.subr.bf16.mxu0 %v6226_v26  ;;  %3324 = vmatprep.subr.bf16.mxu1 %v6229_v28 }
 0x10e   : > { %4950 = vmatmul.mubr.msk.bf16.gmra.mrb[32].mxu0 %vm929_vm1, %v433_v7  ;;  %4967 = vmatmul.mubr.msk.bf16.gmra.mrb[32].mxu1 %vm929_vm1, %v433_v7 }
 0x10f   : > { %1306 = vmatprep.mubr.bf16.mxu0 %v6568_v49  ;;  %1692 = vmatprep.mubr.bf16.mxu1 %v6568_v49 }
 0x116   : > { %4951 = vmatmul.mubr.msk.bf16.gmra.mrb[36].mxu0 %vm929_vm1, %v436_v10  ;;  %4968 = vmatmul.mubr.msk.bf16.gmra.mrb[36].mxu1 %vm929_vm1, %v436_v10 }
 0x117   : > { %1316 = vmatprep.mubr.bf16.mxu0 %v6568_v49  ;;  %1702 = vmatprep.mubr.bf16.mxu1 %v6568_v49 }
 0x11e   : > { %4952 = vmatmul.mubr.msk.bf16.gmra.mrb[40].mxu0 %vm929_vm1, %v439_v13  ;;  %4969 = vmatmul.mubr.msk.bf16.gmra.mrb[40].mxu1 %vm929_vm1, %v439_v13  ;;  %v6227_v13 = vld [vmem:[%s8194_s3 + $0x208] ss:$16 sps:$4 sm:$0xff]  }
 0x11f   : > { %1326 = vmatprep.mubr.bf16.mxu0 %v6568_v49  ;;  %1712 = vmatprep.mubr.bf16.mxu1 %v6568_v49 }
 0x126   : > { %4953 = vmatmul.mubr.msk.bf16.gmra.mrb[44].mxu0 %vm929_vm1, %v442_v16  ;;  %4970 = vmatmul.mubr.msk.bf16.gmra.mrb[44].mxu1 %vm929_vm1, %v442_v16 }
 0x127   : > { %1336 = vmatprep.mubr.bf16.mxu0 %v6568_v49  ;;  %1722 = vmatprep.mubr.bf16.mxu1 %v6568_v49 }
 0x12e   : > { %4954 = vmatmul.mubr.msk.bf16.gmra.mrb[48].mxu0 %vm929_vm1, %v445_v23  ;;  %4971 = vmatmul.mubr.msk.bf16.gmra.mrb[48].mxu1 %vm929_vm1, %v445_v23 }
 0x12f   : > { %1346 = vmatprep.mubr.bf16.mxu0 %v6568_v49  ;;  %1732 = vmatprep.mubr.bf16.mxu1 %v6568_v49 }
 0x136   : > { %4955 = vmatmul.mubr.msk.bf16.gmra.mrb[52].mxu0 %vm929_vm1, %v448_v27  ;;  %4972 = vmatmul.mubr.msk.bf16.gmra.mrb[52].mxu1 %vm929_vm1, %v448_v27 }
 0x137   : > { %1356 = vmatprep.mubr.bf16.mxu0 %v6568_v49  ;;  %1742 = vmatprep.mubr.bf16.mxu1 %v6568_v49 }
 0x13e   : > { %4956 = vmatmul.mubr.msk.bf16.gmra.mrb[56].mxu0 %vm929_vm1, %v451_v31  ;;  %4973 = vmatmul.mubr.msk.bf16.gmra.mrb[56].mxu1 %vm929_vm1, %v451_v31  ;;  %v6233_v31 = vld [vmem:[%s8194_s3 + $0x228] ss:$16 sps:$4 sm:$0xff]  }
 0x13f   : > { %1366 = vmatprep.mubr.bf16.mxu0 %v6568_v49  ;;  %1752 = vmatprep.mubr.bf16.mxu1 %v6568_v49  ;;  %v539_v49 = vsub.s32 1, %v7241_v36 }
 0x141   : > { %v7260_v43 = vrot.slane %v531_v39, %v539_v49 }
 0x146   : > { %4957 = vmatmul.mubr.msk.bf16.gmra.mrb[60].mxu0 %vm929_vm1, %v454_v34  ;;  %4974 = vmatmul.mubr.msk.bf16.gmra.mrb[60].mxu1 %vm929_vm1, %v454_v34 }
 0x1a1   : > { %v1218_v45 = vpop.f32.mrb[0].mxu0  ;;  %v1604_v46 = vpop.f32.mrb[0].mxu1 }
 0x1a2   : > { %v5412_v47 = vadd.f32 %v1218_v45, %v7252_v41  ;;  %v5476_v48 = vadd.f32 %v1604_v46, %v7256_v42  ;;  %v1220_v50 = vpop.f32.mrb[1].mxu0  ;;  %v1606_v51 = vpop.f32.mrb[1].mxu1  ;;  %v6241_v45 = vld [vmem:[%s8194_s3 + $0x24c] ss:$16 sps:$4 sm:$0xff]  }
 0x1a3   : > { %v5413_v52 = vadd.f32 %v1220_v50, %v7260_v43  ;;  %v5477_v53 = vadd.f32 %v1606_v51, %v7264_v44  ;;  %v1222_v54 = vpop.f32.mrb[2].mxu0  ;;  %v1608_v55 = vpop.f32.mrb[2].mxu1 }
 0x1a4   : > { %v5414_v56 = vadd.f32 %v1222_v54, %v7252_v41  ;;  %v5478_v57 = vadd.f32 %v1608_v55, %v7256_v42  ;;  %v1224_v58 = vpop.f32.mrb[3].mxu0  ;;  %v1610_v59 = vpop.f32.mrb[3].mxu1  ;;  %v1763_v62 = vmax.f32 %v5412_v47, 0.0  ;;  %v1765_v63 = vmax.f32 %v5476_v48, 0.0 }
 0x1a5   : > { %v5415_v60 = vadd.f32 %v1224_v58, %v7260_v43  ;;  %v5479_v61 = vadd.f32 %v1610_v59, %v7264_v44  ;;  %v1764_v2 = vmax.f32 %v5413_v52, 0.0  ;;  %v1766_v3 = vmax.f32 %v5477_v53, 0.0  ;;  %v6239_v58 = vld [vmem:[%s8194_s3 + $0x248] ss:$16 sps:$4 sm:$0xff]  }
 0x1a6   : > { %v1767_v0 = vmax.f32 %v5414_v56, 0.0  ;;  %v1769_v1 = vmax.f32 %v5478_v57, 0.0  ;;  %v6236_v57 = vld [vmem:[%s8194_s3 + $0x240] ss:$16 sps:$4 sm:$0xff]  }
 0x1a7   : > { %v1768_v4 = vmax.f32 %v5415_v60, 0.0  ;;  %v1770_v5 = vmax.f32 %v5479_v61, 0.0 }
 0x1a8   : > { %v1891_v6 = vpack.c.bf16 %v1767_v0, %v1763_v62  ;;  %v7274_v7 = vpack.c.bf16 %v1769_v1, %v1765_v63  ;;  %v6244_v63 = vld [vmem:[%s8194_s3 + $0x264] ss:$16 sps:$4 sm:$0xff]   ;;  %v6247_v0 = vld [vmem:[%s8194_s3 + $0x26c] ss:$16 sps:$4 sm:$0xff]  }
 0x1a9   : > { %v1892_v8 = vpack.c.bf16 %v1768_v4, %v1764_v2  ;;  %v7276_v9 = vpack.c.bf16 %v1770_v5, %v1766_v3  ;;  %v1228_v10 = vpop.f32.mrb[4].mxu0  ;;  %v1614_v11 = vpop.f32.mrb[4].mxu1 }
 0x1aa   : > { %v5416_v14 = vadd.f32 %v1228_v10, %v7252_v41  ;;  %v5480_v15 = vadd.f32 %v1614_v11, %v7256_v42  ;;  %v1230_v16 = vpop.f32.mrb[5].mxu0  ;;  %v1616_v17 = vpop.f32.mrb[5].mxu1 }
 0x1ab   : > { %v5417_v20 = vadd.f32 %v1230_v16, %v7260_v43  ;;  %v5481_v21 = vadd.f32 %v1616_v17, %v7264_v44  ;;  %v1232_v22 = vpop.f32.mrb[6].mxu0  ;;  %v1618_v23 = vpop.f32.mrb[6].mxu1  ;;  %2777 = vmatprep.mubr.bf16.mxu0 %v1892_v8  ;;  %3163 = vmatprep.mubr.bf16.mxu1 %v1892_v8 }
 0x1ac   : > { %v5418_v24 = vadd.f32 %v1232_v22, %v7252_v41  ;;  %v5482_v25 = vadd.f32 %v1618_v23, %v7256_v42  ;;  %v1234_v26 = vpop.f32.mrb[7].mxu0  ;;  %v1620_v27 = vpop.f32.mrb[7].mxu1  ;;  %2778 = vmatmul.mubr.bf16.vlgmr.msra.gmra.mrb[64].mxu0 %v1891_v6  ;;  %3164 = vmatmul.mubr.bf16.vlgmr.msra.gmra.mrb[64].mxu1 %v1891_v6  ;;  %v1771_v33 = vmax.f32 %v5416_v14, 0.0  ;;  %v1773_v34 = vmax.f32 %v5480_v15, 0.0  ;;  %v6245_v14 = vld [vmem:[%s8194_s3 + $0x268] ss:$16 sps:$4 sm:$0xff]  }
 0x1ad   : > { %v5419_v28 = vadd.f32 %v1234_v26, %v7260_v43  ;;  %v5483_v29 = vadd.f32 %v1620_v27, %v7264_v44  ;;  %2939 = vmatpush1.bf16.msra.mxu0 %v6224_v12  ;;  %3325 = vmatpush1.bf16.msra.mxu1 %v6227_v13  ;;  %v1772_v46 = vmax.f32 %v5417_v20, 0.0  ;;  %v1774_v47 = vmax.f32 %v5481_v21, 0.0  ;;  %v6242_v13 = vld [vmem:[%s8194_s3 + $0x260] ss:$16 sps:$4 sm:$0xff]   ;;  %v6250_v15 = vld [vmem:[%s8194_s3 + $0x284] ss:$16 sps:$4 sm:$0xff]  }
 0x1ae   : > { %v1775_v35 = vmax.f32 %v5418_v24, 0.0  ;;  %v1777_v39 = vmax.f32 %v5482_v25, 0.0  ;;  %2940 = vmatprep.subr.bf16.mxu0 %v6232_v18  ;;  %3326 = vmatprep.subr.bf16.mxu1 %v6235_v19  ;;  %v6253_v20 = vld [vmem:[%s8194_s3 + $0x28c] ss:$16 sps:$4 sm:$0xff]  }
 0x1af   : > { %v1776_v48 = vmax.f32 %v5419_v28, 0.0  ;;  %v1778_v50 = vmax.f32 %v5483_v29, 0.0 }
 0x1b0   : > { %v1895_v51 = vpack.c.bf16 %v1775_v35, %v1771_v33  ;;  %v7310_v52 = vpack.c.bf16 %v1777_v39, %v1773_v34 }
 0x1b1   : > { %v1896_v53 = vpack.c.bf16 %v1776_v48, %v1772_v46  ;;  %v7312_v54 = vpack.c.bf16 %v1778_v50, %v1774_v47  ;;  %v1238_v55 = vpop.f32.mrb[8].mxu0  ;;  %v1624_v56 = vpop.f32.mrb[8].mxu1  ;;  %2941 = vmatpush1.bf16.msra.mxu0 %v6230_v30  ;;  %3327 = vmatpush1.bf16.msra.mxu1 %v6233_v31  ;;  %v6248_v31 = vld [vmem:[%s8194_s3 + $0x280] ss:$16 sps:$4 sm:$0xff]   ;;  %v6259_v46 = vld [vmem:[%s8194_s3 + $0x2ac] ss:$16 sps:$4 sm:$0xff]  }
 0x1b2   : > { %v5420_v59 = vadd.f32 %v1238_v55, %v7252_v41  ;;  %v5484_v60 = vadd.f32 %v1624_v56, %v7256_v42  ;;  %v1240_v61 = vpop.f32.mrb[9].mxu0  ;;  %v1626_v62 = vpop.f32.mrb[9].mxu1  ;;  %2942 = vmatprep.subr.bf16.mxu0 %v6238_v32  ;;  %3328 = vmatprep.subr.bf16.mxu1 %v6241_v45  ;;  %v6251_v32 = vld [vmem:[%s8194_s3 + $0x288] ss:$16 sps:$4 sm:$0xff]   ;;  %v6256_v45 = vld [vmem:[%s8194_s3 + $0x2a4] ss:$16 sps:$4 sm:$0xff]  }
 0x1b3   : > { %v5421_v1 = vadd.f32 %v1240_v61, %v7260_v43  ;;  %v5485_v2 = vadd.f32 %v1626_v62, %v7264_v44  ;;  %v1242_v3 = vpop.f32.mrb[10].mxu0  ;;  %v1628_v4 = vpop.f32.mrb[10].mxu1  ;;  %2787 = vmatprep.mubr.bf16.mxu0 %v1896_v53  ;;  %3173 = vmatprep.mubr.bf16.mxu1 %v1896_v53  ;;  %v6257_v61 = vld [vmem:[%s8194_s3 + $0x2a8] ss:$16 sps:$4 sm:$0xff]   ;;  %v6262_v62 = vld [vmem:[%s8194_s3 + $0x2c4] ss:$16 sps:$4 sm:$0xff]  }
 0x1b4   : > { %v5422_v5 = vadd.f32 %v1242_v3, %v7252_v41  ;;  %v5486_v6 = vadd.f32 %v1628_v4, %v7256_v42  ;;  %v1244_v8 = vpop.f32.mrb[11].mxu0  ;;  %v1630_v10 = vpop.f32.mrb[11].mxu1  ;;  %2788 = vmatmul.mubr.bf16.gmra.mrb[68].mxu0 %v1895_v51  ;;  %3174 = vmatmul.mubr.bf16.gmra.mrb[68].mxu1 %v1895_v51  ;;  %v1779_v16 = vmax.f32 %v5420_v59, 0.0  ;;  %v1781_v17 = vmax.f32 %v5484_v60, 0.0  ;;  %v6254_v60 = vld [vmem:[%s8194_s3 + $0x2a0] ss:$16 sps:$4 sm:$0xff]  }
 0x1b5   : > { %v5423_v11 = vadd.f32 %v1244_v8, %v7260_v43  ;;  %v5487_v12 = vadd.f32 %v1630_v10, %v7264_v44  ;;  %2943 = vmatpush1.bf16.msra.mxu0 %v6236_v57  ;;  %3329 = vmatpush1.bf16.msra.mxu1 %v6239_v58  ;;  %v1780_v21 = vmax.f32 %v5421_v1, 0.0  ;;  %v1782_v22 = vmax.f32 %v5485_v2, 0.0  ;;  %v6265_v3 = vld [vmem:[%s8194_s3 + $0x2cc] ss:$16 sps:$4 sm:$0xff]  }
 0x1b6   : > { %v1783_v18 = vmax.f32 %v5422_v5, 0.0  ;;  %v1785_v19 = vmax.f32 %v5486_v6, 0.0  ;;  %2944 = vmatprep.subr.bf16.mxu0 %v6244_v63  ;;  %3330 = vmatprep.subr.bf16.mxu1 %v6247_v0 }
 0x1b7   : > { %v1784_v23 = vmax.f32 %v5423_v11, 0.0  ;;  %v1786_v24 = vmax.f32 %v5487_v12, 0.0 }
 0x1b8   : > { %v1899_v25 = vpack.c.bf16 %v1783_v18, %v1779_v16  ;;  %v7346_v26 = vpack.c.bf16 %v1785_v19, %v1781_v17  ;;  %v6260_v16 = vld [vmem:[%s8194_s3 + $0x2c0] ss:$16 sps:$4 sm:$0xff]   ;;  %v6263_v17 = vld [vmem:[%s8194_s3 + $0x2c8] ss:$16 sps:$4 sm:$0xff]  }
 0x1b9   : > { %v1900_v27 = vpack.c.bf16 %v1784_v23, %v1780_v21  ;;  %v7348_v28 = vpack.c.bf16 %v1786_v24, %v1782_v22  ;;  %v1248_v29 = vpop.f32.mrb[12].mxu0  ;;  %v1634_v30 = vpop.f32.mrb[12].mxu1  ;;  %2945 = vmatpush1.bf16.msra.mxu0 %v6242_v13  ;;  %3331 = vmatpush1.bf16.msra.mxu1 %v6245_v14  ;;  %v6268_v22 = vld [vmem:[%s8194_s3 + $0x2e4] ss:$16 sps:$4 sm:$0xff]   ;;  %v6271_v23 = vld [vmem:[%s8194_s3 + $0x2ec] ss:$16 sps:$4 sm:$0xff]  }
 0x1ba   : > { %v5424_v33 = vadd.f32 %v1248_v29, %v7252_v41  ;;  %v5488_v34 = vadd.f32 %v1634_v30, %v7256_v42  ;;  %v1250_v35 = vpop.f32.mrb[13].mxu0  ;;  %v1636_v39 = vpop.f32.mrb[13].mxu1  ;;  %2946 = vmatprep.subr.bf16.mxu0 %v6250_v15  ;;  %3332 = vmatprep.subr.bf16.mxu1 %v6253_v20 }
 0x1bb   : > { %v5425_v47 = vadd.f32 %v1250_v35, %v7260_v43  ;;  %v5489_v48 = vadd.f32 %v1636_v39, %v7264_v44  ;;  %v1252_v50 = vpop.f32.mrb[14].mxu0  ;;  %v1638_v51 = vpop.f32.mrb[14].mxu1  ;;  %2797 = vmatprep.mubr.bf16.mxu0 %v1900_v27  ;;  %3183 = vmatprep.mubr.bf16.mxu1 %v1900_v27  ;;  %v6266_v39 = vld [vmem:[%s8194_s3 + $0x2e0] ss:$16 sps:$4 sm:$0xff]  }
 0x1bc   : > { %v5426_v53 = vadd.f32 %v1252_v50, %v7252_v41  ;;  %v5490_v55 = vadd.f32 %v1638_v51, %v7256_v42  ;;  %v1254_v56 = vpop.f32.mrb[15].mxu0  ;;  %v1640_v57 = vpop.f32.mrb[15].mxu1  ;;  %2798 = vmatmul.mubr.bf16.gmra.mrb[72].mxu0 %v1899_v25  ;;  %3184 = vmatmul.mubr.bf16.gmra.mrb[72].mxu1 %v1899_v25  ;;  %v1787_v63 = vmax.f32 %v5424_v33, 0.0  ;;  %v1789_v0 = vmax.f32 %v5488_v34, 0.0 }
 0x1bd   : > { %v5427_v58 = vadd.f32 %v1254_v56, %v7260_v43  ;;  %v5491_v59 = vadd.f32 %v1640_v57, %v7264_v44  ;;  %2947 = vmatpush1.bf16.msra.mxu0 %v6248_v31  ;;  %3333 = vmatpush1.bf16.msra.mxu1 %v6251_v32  ;;  %v1788_v4 = vmax.f32 %v5425_v47, 0.0  ;;  %v1790_v5 = vmax.f32 %v5489_v48, 0.0 }
 0x1be   : > { %v1791_v1 = vmax.f32 %v5426_v53, 0.0  ;;  %v1793_v2 = vmax.f32 %v5490_v55, 0.0  ;;  %2948 = vmatprep.subr.bf16.mxu0 %v6256_v45  ;;  %3334 = vmatprep.subr.bf16.mxu1 %v6259_v46  ;;  %v6269_v45 = vld [vmem:[%s8194_s3 + $0x2e8] ss:$16 sps:$4 sm:$0xff]   ;;  %v6274_v46 = vld [vmem:[%s8194_s3 + $0x304] ss:$16 sps:$4 sm:$0xff]  }
 0x1bf   : > { %v1792_v6 = vmax.f32 %v5427_v58, 0.0  ;;  %v1794_v8 = vmax.f32 %v5491_v59, 0.0  ;;  %v6277_v53 = vld [vmem:[%s8194_s3 + $0x30c] ss:$16 sps:$4 sm:$0xff]  }
 0x1c0   : > { %v1903_v10 = vpack.c.bf16 %v1791_v1, %v1787_v63  ;;  %v7382_v11 = vpack.c.bf16 %v1793_v2, %v1789_v0  ;;  %v6272_v1 = vld [vmem:[%s8194_s3 + $0x300] ss:$16 sps:$4 sm:$0xff]   ;;  %v6275_v2 = vld [vmem:[%s8194_s3 + $0x308] ss:$16 sps:$4 sm:$0xff]  }
 0x1c1   : > { %v1904_v12 = vpack.c.bf16 %v1792_v6, %v1788_v4  ;;  %v7384_v13 = vpack.c.bf16 %v1794_v8, %v1790_v5  ;;  %v1258_v14 = vpop.f32.mrb[16].mxu0  ;;  %v1644_v15 = vpop.f32.mrb[16].mxu1  ;;  %2949 = vmatpush1.bf16.msra.mxu0 %v6254_v60  ;;  %3335 = vmatpush1.bf16.msra.mxu1 %v6257_v61  ;;  %v6280_v8 = vld [vmem:[%s8194_s3 + $0x324] ss:$16 sps:$4 sm:$0xff]  }
 0x1c2   : > { %v5428_v18 = vadd.f32 %v1258_v14, %v7252_v41  ;;  %v5492_v19 = vadd.f32 %v1644_v15, %v7256_v42  ;;  %v1260_v20 = vpop.f32.mrb[17].mxu0  ;;  %v1646_v21 = vpop.f32.mrb[17].mxu1  ;;  %2950 = vmatprep.subr.bf16.mxu0 %v6262_v62  ;;  %3336 = vmatprep.subr.bf16.mxu1 %v6265_v3 }
 0x1c3   : > { %v5429_v24 = vadd.f32 %v1260_v20, %v7260_v43  ;;  %v5493_v25 = vadd.f32 %v1646_v21, %v7264_v44  ;;  %v1262_v27 = vpop.f32.mrb[18].mxu0  ;;  %v1648_v29 = vpop.f32.mrb[18].mxu1  ;;  %2807 = vmatprep.mubr.bf16.mxu0 %v1904_v12  ;;  %3193 = vmatprep.mubr.bf16.mxu1 %v1904_v12 }
 0x1c4   : > { %v5430_v30 = vadd.f32 %v1262_v27, %v7252_v41  ;;  %v5494_v31 = vadd.f32 %v1648_v29, %v7256_v42  ;;  %v1264_v32 = vpop.f32.mrb[19].mxu0  ;;  %v1650_v33 = vpop.f32.mrb[19].mxu1  ;;  %2808 = vmatmul.mubr.bf16.gmra.mrb[76].mxu0 %v1903_v10  ;;  %3194 = vmatmul.mubr.bf16.gmra.mrb[76].mxu1 %v1903_v10  ;;  %v1795_v47 = vmax.f32 %v5428_v18, 0.0  ;;  %v1797_v48 = vmax.f32 %v5492_v19, 0.0  ;;  %v6283_v10 = vld [vmem:[%s8194_s3 + $0x32c] ss:$16 sps:$4 sm:$0xff]  }
 0x1c5   : > { %v5431_v34 = vadd.f32 %v1264_v32, %v7260_v43  ;;  %v5495_v35 = vadd.f32 %v1650_v33, %v7264_v44  ;;  %2951 = vmatpush1.bf16.msra.mxu0 %v6260_v16  ;;  %3337 = vmatpush1.bf16.msra.mxu1 %v6263_v17  ;;  %v1796_v55 = vmax.f32 %v5429_v24, 0.0  ;;  %v1798_v56 = vmax.f32 %v5493_v25, 0.0  ;;  %v6281_v24 = vld [vmem:[%s8194_s3 + $0x328] ss:$16 sps:$4 sm:$0xff]   ;;  %v6286_v25 = vld [vmem:[%s8194_s3 + $0x344] ss:$16 sps:$4 sm:$0xff]  }
 0x1c6   : > { %v1799_v50 = vmax.f32 %v5430_v30, 0.0  ;;  %v1801_v51 = vmax.f32 %v5494_v31, 0.0  ;;  %2952 = vmatprep.subr.bf16.mxu0 %v6268_v22  ;;  %3338 = vmatprep.subr.bf16.mxu1 %v6271_v23  ;;  %v6278_v23 = vld [vmem:[%s8194_s3 + $0x320] ss:$16 sps:$4 sm:$0xff]   ;;  %v6289_v32 = vld [vmem:[%s8194_s3 + $0x34c] ss:$16 sps:$4 sm:$0xff]  }
 0x1c7   : > { %v1800_v57 = vmax.f32 %v5431_v34, 0.0  ;;  %v1802_v58 = vmax.f32 %v5495_v35, 0.0 }
 0x1c8   : > { %v1907_v59 = vpack.c.bf16 %v1799_v50, %v1795_v47  ;;  %v7418_v60 = vpack.c.bf16 %v1801_v51, %v1797_v48 }
 0x1c9   : > { %v1908_v61 = vpack.c.bf16 %v1800_v57, %v1796_v55  ;;  %v7420_v62 = vpack.c.bf16 %v1802_v58, %v1798_v56  ;;  %v1268_v63 = vpop.f32.mrb[20].mxu0  ;;  %v1654_v0 = vpop.f32.mrb[20].mxu1  ;;  %2953 = vmatpush1.bf16.msra.mxu0 %v6266_v39  ;;  %3339 = vmatpush1.bf16.msra.mxu1 %v6269_v45  ;;  %v6287_v55 = vld [vmem:[%s8194_s3 + $0x348] ss:$16 sps:$4 sm:$0xff]  }
 0x1ca   : > { %v5432_v3 = vadd.f32 %v1268_v63, %v7252_v41  ;;  %v5496_v4 = vadd.f32 %v1654_v0, %v7256_v42  ;;  %v1270_v5 = vpop.f32.mrb[21].mxu0  ;;  %v1656_v6 = vpop.f32.mrb[21].mxu1  ;;  %2954 = vmatprep.subr.bf16.mxu0 %v6274_v46  ;;  %3340 = vmatprep.subr.bf16.mxu1 %v6277_v53  ;;  %v6284_v53 = vld [vmem:[%s8194_s3 + $0x340] ss:$16 sps:$4 sm:$0xff]   ;;  %v6295_v63 = vld [vmem:[%s8194_s3 + $0x36c] ss:$16 sps:$4 sm:$0xff]  }
 0x1cb   : > { %v5433_v12 = vadd.f32 %v1270_v5, %v7260_v43  ;;  %v5497_v14 = vadd.f32 %v1656_v6, %v7264_v44  ;;  %v1272_v15 = vpop.f32.mrb[22].mxu0  ;;  %v1658_v16 = vpop.f32.mrb[22].mxu1  ;;  %2817 = vmatprep.mubr.bf16.mxu0 %v1908_v61  ;;  %3203 = vmatprep.mubr.bf16.mxu1 %v1908_v61  ;;  %v6292_v61 = vld [vmem:[%s8194_s3 + $0x364] ss:$16 sps:$4 sm:$0xff]  }
 0x1cc   : > { %v5434_v17 = vadd.f32 %v1272_v15, %v7252_v41  ;;  %v5498_v18 = vadd.f32 %v1658_v16, %v7256_v42  ;;  %v1274_v19 = vpop.f32.mrb[23].mxu0  ;;  %v1660_v20 = vpop.f32.mrb[23].mxu1  ;;  %2818 = vmatmul.mubr.bf16.gmra.mrb[80].mxu0 %v1907_v59  ;;  %3204 = vmatmul.mubr.bf16.gmra.mrb[80].mxu1 %v1907_v59  ;;  %v1803_v27 = vmax.f32 %v5432_v3, 0.0  ;;  %v1805_v29 = vmax.f32 %v5496_v4, 0.0  ;;  %v6293_v15 = vld [vmem:[%s8194_s3 + $0x368] ss:$16 sps:$4 sm:$0xff]  }
 0x1cd   : > { %v5435_v21 = vadd.f32 %v1274_v19, %v7260_v43  ;;  %v5499_v22 = vadd.f32 %v1660_v20, %v7264_v44  ;;  %2955 = vmatpush1.bf16.msra.mxu0 %v6272_v1  ;;  %3341 = vmatpush1.bf16.msra.mxu1 %v6275_v2  ;;  %v1804_v33 = vmax.f32 %v5433_v12, 0.0  ;;  %v1806_v34 = vmax.f32 %v5497_v14, 0.0  ;;  %v6290_v14 = vld [vmem:[%s8194_s3 + $0x360] ss:$16 sps:$4 sm:$0xff]   ;;  %v6298_v16 = vld [vmem:[%s8194_s3 + $0x384] ss:$16 sps:$4 sm:$0xff]  }
 0x1ce   : > { %v1807_v30 = vmax.f32 %v5434_v17, 0.0  ;;  %v1809_v31 = vmax.f32 %v5498_v18, 0.0  ;;  %2956 = vmatprep.subr.bf16.mxu0 %v6280_v8  ;;  %3342 = vmatprep.subr.bf16.mxu1 %v6283_v10 }
 0x1cf   : > { %v1808_v35 = vmax.f32 %v5435_v21, 0.0  ;;  %v1810_v39 = vmax.f32 %v5499_v22, 0.0  ;;  %v6301_v21 = vld [vmem:[%s8194_s3 + $0x38c] ss:$16 sps:$4 sm:$0xff]  }
 0x1d0   : > { %v1911_v45 = vpack.c.bf16 %v1807_v30, %v1803_v27  ;;  %v7454_v46 = vpack.c.bf16 %v1809_v31, %v1805_v29 }
 0x1d1   : > { %v1912_v47 = vpack.c.bf16 %v1808_v35, %v1804_v33  ;;  %v7456_v48 = vpack.c.bf16 %v1810_v39, %v1806_v34  ;;  %v1278_v50 = vpop.f32.mrb[24].mxu0  ;;  %v1664_v51 = vpop.f32.mrb[24].mxu1  ;;  %2957 = vmatpush1.bf16.msra.mxu0 %v6278_v23  ;;  %3343 = vmatpush1.bf16.msra.mxu1 %v6281_v24  ;;  %v6296_v34 = vld [vmem:[%s8194_s3 + $0x380] ss:$16 sps:$4 sm:$0xff]   ;;  %v6299_v35 = vld [vmem:[%s8194_s3 + $0x388] ss:$16 sps:$4 sm:$0xff]  }
 0x1d2   : > { %v5436_v56 = vadd.f32 %v1278_v50, %v7252_v41  ;;  %v5500_v57 = vadd.f32 %v1664_v51, %v7256_v42  ;;  %v1280_v58 = vpop.f32.mrb[25].mxu0  ;;  %v1666_v59 = vpop.f32.mrb[25].mxu1  ;;  %2958 = vmatprep.subr.bf16.mxu0 %v6286_v25  ;;  %3344 = vmatprep.subr.bf16.mxu1 %v6289_v32  ;;  %v6304_v51 = vld [vmem:[%s8194_s3 + $0x3a4] ss:$16 sps:$4 sm:$0xff]  }
 0x1d3   : > { %v5437_v0 = vadd.f32 %v1280_v58, %v7260_v43  ;;  %v5501_v1 = vadd.f32 %v1666_v59, %v7264_v44  ;;  %v1282_v2 = vpop.f32.mrb[26].mxu0  ;;  %v1668_v3 = vpop.f32.mrb[26].mxu1  ;;  %2827 = vmatprep.mubr.bf16.mxu0 %v1912_v47  ;;  %3213 = vmatprep.mubr.bf16.mxu1 %v1912_v47 }
 0x1d4   : > { %v5438_v4 = vadd.f32 %v1282_v2, %v7252_v41  ;;  %v5502_v5 = vadd.f32 %v1668_v3, %v7256_v42  ;;  %v1284_v6 = vpop.f32.mrb[27].mxu0  ;;  %v1670_v8 = vpop.f32.mrb[27].mxu1  ;;  %2828 = vmatmul.mubr.bf16.gmra.mrb[84].mxu0 %v1911_v45  ;;  %3214 = vmatmul.mubr.bf16.gmra.mrb[84].mxu1 %v1911_v45  ;;  %v1811_v17 = vmax.f32 %v5436_v56, 0.0  ;;  %v1813_v18 = vmax.f32 %v5500_v57, 0.0  ;;  %v6302_v3 = vld [vmem:[%s8194_s3 + $0x3a0] ss:$16 sps:$4 sm:$0xff]  }
 0x1d5   : > { %v5439_v10 = vadd.f32 %v1284_v6, %v7260_v43  ;;  %v5503_v12 = vadd.f32 %v1670_v8, %v7264_v44  ;;  %2959 = vmatpush1.bf16.msra.mxu0 %v6284_v53  ;;  %3345 = vmatpush1.bf16.msra.mxu1 %v6287_v55  ;;  %v1812_v22 = vmax.f32 %v5437_v0, 0.0  ;;  %v1814_v23 = vmax.f32 %v5501_v1, 0.0  ;;  %v6307_v53 = vld [vmem:[%s8194_s3 + $0x3ac] ss:$16 sps:$4 sm:$0xff]  }
 0x1d6   : > { %v1815_v19 = vmax.f32 %v5438_v4, 0.0  ;;  %v1817_v20 = vmax.f32 %v5502_v5, 0.0  ;;  %2960 = vmatprep.subr.bf16.mxu0 %v6292_v61  ;;  %3346 = vmatprep.subr.bf16.mxu1 %v6295_v63  ;;  %v6305_v4 = vld [vmem:[%s8194_s3 + $0x3a8] ss:$16 sps:$4 sm:$0xff]   ;;  %v6310_v5 = vld [vmem:[%s8194_s3 + $0x3c4] ss:$16 sps:$4 sm:$0xff]  }
 0x1d7   : > { %v1816_v24 = vmax.f32 %v5439_v10, 0.0  ;;  %v1818_v25 = vmax.f32 %v5503_v12, 0.0 }
 0x1d8   : > { %v1915_v27 = vpack.c.bf16 %v1815_v19, %v1811_v17  ;;  %v7490_v29 = vpack.c.bf16 %v1817_v20, %v1813_v18 }
 0x1d9   : > { %v1916_v30 = vpack.c.bf16 %v1816_v24, %v1812_v22  ;;  %v7492_v31 = vpack.c.bf16 %v1818_v25, %v1814_v23  ;;  %v1288_v32 = vpop.f32.mrb[28].mxu0  ;;  %v1674_v33 = vpop.f32.mrb[28].mxu1  ;;  %2961 = vmatpush1.bf16.msra.mxu0 %v6290_v14  ;;  %3347 = vmatpush1.bf16.msra.mxu1 %v6293_v15  ;;  %v6313_v14 = vld [vmem:[%s8194_s3 + $0x3cc] ss:$16 sps:$4 sm:$0xff]   ;;  %v6308_v25 = vld [vmem:[%s8194_s3 + $0x3c0] ss:$16 sps:$4 sm:$0xff]  }
 0x1da   : > { %v5440_v39 = vadd.f32 %v1288_v32, %v7252_v41  ;;  %v5504_v45 = vadd.f32 %v1674_v33, %v7256_v42  ;;  %v1290_v47 = vpop.f32.mrb[29].mxu0  ;;  %v1676_v50 = vpop.f32.mrb[29].mxu1  ;;  %2962 = vmatprep.subr.bf16.mxu0 %v6298_v16  ;;  %3348 = vmatprep.subr.bf16.mxu1 %v6301_v21 }
 0x1db   : > { %v5441_v55 = vadd.f32 %v1290_v47, %v7260_v43  ;;  %v5505_v56 = vadd.f32 %v1676_v50, %v7264_v44  ;;  %v1292_v57 = vpop.f32.mrb[30].mxu0  ;;  %v1678_v58 = vpop.f32.mrb[30].mxu1  ;;  %2837 = vmatprep.mubr.bf16.mxu0 %v1916_v30  ;;  %3223 = vmatprep.mubr.bf16.mxu1 %v1916_v30 }
 0x1dc   : > { %v5442_v59 = vadd.f32 %v1292_v57, %v7252_v41  ;;  %v5506_v61 = vadd.f32 %v1678_v58, %v7256_v42  ;;  %v1294_v63 = vpop.f32.mrb[31].mxu0  ;;  %v1680_v0 = vpop.f32.mrb[31].mxu1  ;;  %2838 = vmatmul.mubr.bf16.gmra.mrb[88].mxu0 %v1915_v27  ;;  %3224 = vmatmul.mubr.bf16.gmra.mrb[88].mxu1 %v1915_v27  ;;  %v1819_v6 = vmax.f32 %v5440_v39, 0.0  ;;  %v1821_v8 = vmax.f32 %v5504_v45, 0.0  ;;  %v6311_v27 = vld [vmem:[%s8194_s3 + $0x3c8] ss:$16 sps:$4 sm:$0xff]  }
 0x1dd   : > { %v5443_v1 = vadd.f32 %v1294_v63, %v7260_v43  ;;  %v5507_v2 = vadd.f32 %v1680_v0, %v7264_v44  ;;  %2963 = vmatpush1.bf16.msra.mxu0 %v6296_v34  ;;  %3349 = vmatpush1.bf16.msra.mxu1 %v6299_v35  ;;  %v1820_v15 = vmax.f32 %v5441_v55, 0.0  ;;  %v1822_v16 = vmax.f32 %v5505_v56, 0.0  ;;  %v6316_v35 = vld [vmem:[%s8194_s3 + $0x3e4] ss:$16 sps:$4 sm:$0xff]   ;;  %v6319_v39 = vld [vmem:[%s8194_s3 + $0x3ec] ss:$16 sps:$4 sm:$0xff]  }
 0x1de   : > { %v1823_v10 = vmax.f32 %v5442_v59, 0.0  ;;  %v1825_v12 = vmax.f32 %v5506_v61, 0.0  ;;  %2964 = vmatprep.subr.bf16.mxu0 %v6304_v51  ;;  %3350 = vmatprep.subr.bf16.mxu1 %v6307_v53  ;;  %v6314_v61 = vld [vmem:[%s8194_s3 + $0x3e0] ss:$16 sps:$4 sm:$0xff]   ;;  %v6317_v63 = vld [vmem:[%s8194_s3 + $0x3e8] ss:$16 sps:$4 sm:$0xff]  }
 0x1df   : > { %v1824_v17 = vmax.f32 %v5443_v1, 0.0  ;;  %v1826_v18 = vmax.f32 %v5507_v2, 0.0 }
 0x1e0   : > { %v1919_v19 = vpack.c.bf16 %v1823_v10, %v1819_v6  ;;  %v7526_v20 = vpack.c.bf16 %v1825_v12, %v1821_v8 }
 0x1e1   : > { %v1920_v21 = vpack.c.bf16 %v1824_v17, %v1820_v15  ;;  %v7528_v22 = vpack.c.bf16 %v1826_v18, %v1822_v16  ;;  %v1298_v23 = vpop.f32.mrb[32].mxu0  ;;  %v1684_v24 = vpop.f32.mrb[32].mxu1  ;;  %2965 = vmatpush1.bf16.msra.mxu0 %v6302_v3  ;;  %3351 = vmatpush1.bf16.msra.mxu1 %v6305_v4 }
 0x1e2   : > { %v5444_v30 = vadd.f32 %v1298_v23, %v7252_v41  ;;  %v5508_v32 = vadd.f32 %v1684_v24, %v7256_v42  ;;  %v1300_v33 = vpop.f32.mrb[33].mxu0  ;;  %v1686_v34 = vpop.f32.mrb[33].mxu1  ;;  %2966 = vmatprep.subr.bf16.mxu0 %v6310_v5  ;;  %3352 = vmatprep.subr.bf16.mxu1 %v6313_v14 }
 0x1e3   : > { %v5445_v45 = vadd.f32 %v1300_v33, %v7260_v43  ;;  %v5509_v47 = vadd.f32 %v1686_v34, %v7264_v44  ;;  %v1302_v50 = vpop.f32.mrb[34].mxu0  ;;  %v1688_v51 = vpop.f32.mrb[34].mxu1  ;;  %2847 = vmatprep.mubr.bf16.mxu0 %v1920_v21  ;;  %3233 = vmatprep.mubr.bf16.mxu1 %v1920_v21 }
 0x1e4   : > { %v5446_v53 = vadd.f32 %v1302_v50, %v7252_v41  ;;  %v5510_v55 = vadd.f32 %v1688_v51, %v7256_v42  ;;  %v1304_v56 = vpop.f32.mrb[35].mxu0  ;;  %v1690_v57 = vpop.f32.mrb[35].mxu1  ;;  %2848 = vmatmul.mubr.bf16.gmra.mrb[92].mxu0 %v1919_v19  ;;  %3234 = vmatmul.mubr.bf16.gmra.mrb[92].mxu1 %v1919_v19  ;;  %v1827_v0 = vmax.f32 %v5444_v30, 0.0  ;;  %v1829_v1 = vmax.f32 %v5508_v32, 0.0 }
 0x1e5   : > { %v5447_v58 = vadd.f32 %v1304_v56, %v7260_v43  ;;  %v5511_v59 = vadd.f32 %v1690_v57, %v7264_v44  ;;  %2967 = vmatpush1.bf16.msra.mxu0 %v6308_v25  ;;  %3353 = vmatpush1.bf16.msra.mxu1 %v6311_v27  ;;  %v1828_v4 = vmax.f32 %v5445_v45, 0.0  ;;  %v1830_v5 = vmax.f32 %v5509_v47, 0.0 }
 0x1e6   : > { %v1831_v2 = vmax.f32 %v5446_v53, 0.0  ;;  %v1833_v3 = vmax.f32 %v5510_v55, 0.0  ;;  %2968 = vmatprep.subr.bf16.mxu0 %v6316_v35  ;;  %3354 = vmatprep.subr.bf16.mxu1 %v6319_v39 }
 0x1e7   : > { %v1832_v6 = vmax.f32 %v5447_v58, 0.0  ;;  %v1834_v8 = vmax.f32 %v5511_v59, 0.0 }
 0x1e8   : > { %v1923_v10 = vpack.c.bf16 %v1831_v2, %v1827_v0  ;;  %v7556_v12 = vpack.c.bf16 %v1833_v3, %v1829_v1 }
 0x1e9   : > { %v1924_v14 = vpack.c.bf16 %v1832_v6, %v1828_v4  ;;  %v7558_v15 = vpack.c.bf16 %v1834_v8, %v1830_v5  ;;  %v1308_v16 = vpop.f32.mrb[36].mxu0  ;;  %v1694_v17 = vpop.f32.mrb[36].mxu1  ;;  %2969 = vmatpush1.bf16.msra.mxu0 %v6314_v61  ;;  %3355 = vmatpush1.bf16.msra.mxu1 %v6317_v63 }
 0x1ea   : > { %v5448_v18 = vadd.f32 %v1308_v16, %v7252_v41  ;;  %v5512_v19 = vadd.f32 %v1694_v17, %v7256_v42  ;;  %v1310_v21 = vpop.f32.mrb[37].mxu0  ;;  %v1696_v23 = vpop.f32.mrb[37].mxu1 }
 0x1eb   : > { %v5449_v24 = vadd.f32 %v1310_v21, %v7260_v43  ;;  %v5513_v25 = vadd.f32 %v1696_v23, %v7264_v44  ;;  %v1312_v27 = vpop.f32.mrb[38].mxu0  ;;  %v1698_v30 = vpop.f32.mrb[38].mxu1  ;;  %2857 = vmatprep.mubr.bf16.mxu0 %v1924_v14  ;;  %3243 = vmatprep.mubr.bf16.mxu1 %v1924_v14 }
 0x1ec   : > { %v5450_v32 = vadd.f32 %v1312_v27, %v7252_v41  ;;  %v5514_v33 = vadd.f32 %v1698_v30, %v7256_v42  ;;  %v1314_v34 = vpop.f32.mrb[39].mxu0  ;;  %v1700_v35 = vpop.f32.mrb[39].mxu1  ;;  %2858 = vmatmul.mubr.bf16.gmra.mrb[96].mxu0 %v1923_v10  ;;  %3244 = vmatmul.mubr.bf16.gmra.mrb[96].mxu1 %v1923_v10  ;;  %v1835_v47 = vmax.f32 %v5448_v18, 0.0  ;;  %v1837_v50 = vmax.f32 %v5512_v19, 0.0 }
 0x1ed   : > { %v5451_v39 = vadd.f32 %v1314_v34, %v7260_v43  ;;  %v5515_v45 = vadd.f32 %v1700_v35, %v7264_v44  ;;  %v1836_v55 = vmax.f32 %v5449_v24, 0.0  ;;  %v1838_v56 = vmax.f32 %v5513_v25, 0.0 }
 0x1ee   : > { %v1839_v51 = vmax.f32 %v5450_v32, 0.0  ;;  %v1841_v53 = vmax.f32 %v5514_v33, 0.0 }
 0x1ef   : > { %v1840_v57 = vmax.f32 %v5451_v39, 0.0  ;;  %v1842_v58 = vmax.f32 %v5515_v45, 0.0 }
 0x1f0   : > { %v1927_v59 = vpack.c.bf16 %v1839_v51, %v1835_v47  ;;  %v7568_v61 = vpack.c.bf16 %v1841_v53, %v1837_v50 }
 0x1f1   : > { %v1928_v63 = vpack.c.bf16 %v1840_v57, %v1836_v55  ;;  %v7570_v0 = vpack.c.bf16 %v1842_v58, %v1838_v56  ;;  %v1318_v1 = vpop.f32.mrb[40].mxu0  ;;  %v1704_v2 = vpop.f32.mrb[40].mxu1 }
 0x1f2   : > { %v5452_v3 = vadd.f32 %v1318_v1, %v7252_v41  ;;  %v5516_v4 = vadd.f32 %v1704_v2, %v7256_v42  ;;  %v1320_v5 = vpop.f32.mrb[41].mxu0  ;;  %v1706_v6 = vpop.f32.mrb[41].mxu1 }
 0x1f3   : > { %v5453_v8 = vadd.f32 %v1320_v5, %v7260_v43  ;;  %v5517_v10 = vadd.f32 %v1706_v6, %v7264_v44  ;;  %v1322_v14 = vpop.f32.mrb[42].mxu0  ;;  %v1708_v16 = vpop.f32.mrb[42].mxu1  ;;  %2867 = vmatprep.mubr.bf16.mxu0 %v1928_v63  ;;  %3253 = vmatprep.mubr.bf16.mxu1 %v1928_v63 }
 0x1f4   : > { %v5454_v17 = vadd.f32 %v1322_v14, %v7252_v41  ;;  %v5518_v18 = vadd.f32 %v1708_v16, %v7256_v42  ;;  %v1324_v19 = vpop.f32.mrb[43].mxu0  ;;  %v1710_v21 = vpop.f32.mrb[43].mxu1  ;;  %2868 = vmatmul.mubr.bf16.gmra.mrb[100].mxu0 %v1927_v59  ;;  %3254 = vmatmul.mubr.bf16.gmra.mrb[100].mxu1 %v1927_v59  ;;  %v1843_v25 = vmax.f32 %v5452_v3, 0.0  ;;  %v1845_v27 = vmax.f32 %v5516_v4, 0.0 }
 0x1f5   : > { %v5455_v23 = vadd.f32 %v1324_v19, %v7260_v43  ;;  %v5519_v24 = vadd.f32 %v1710_v21, %v7264_v44  ;;  %v1844_v33 = vmax.f32 %v5453_v8, 0.0  ;;  %v1846_v34 = vmax.f32 %v5517_v10, 0.0 }
 0x1f6   : > { %v1847_v30 = vmax.f32 %v5454_v17, 0.0  ;;  %v1849_v32 = vmax.f32 %v5518_v18, 0.0 }
 0x1f7   : > { %v1848_v35 = vmax.f32 %v5455_v23, 0.0  ;;  %v1850_v39 = vmax.f32 %v5519_v24, 0.0 }
 0x1f8   : > { %v1931_v45 = vpack.c.bf16 %v1847_v30, %v1843_v25  ;;  %v7580_v47 = vpack.c.bf16 %v1849_v32, %v1845_v27 }
 0x1f9   : > { %v1932_v50 = vpack.c.bf16 %v1848_v35, %v1844_v33  ;;  %v7582_v51 = vpack.c.bf16 %v1850_v39, %v1846_v34  ;;  %v1328_v53 = vpop.f32.mrb[44].mxu0  ;;  %v1714_v55 = vpop.f32.mrb[44].mxu1 }
 0x1fa   : > { %v5456_v56 = vadd.f32 %v1328_v53, %v7252_v41  ;;  %v5520_v57 = vadd.f32 %v1714_v55, %v7256_v42  ;;  %v1330_v58 = vpop.f32.mrb[45].mxu0  ;;  %v1716_v59 = vpop.f32.mrb[45].mxu1 }
 0x1fb   : > { %v5457_v63 = vadd.f32 %v1330_v58, %v7260_v43  ;;  %v5521_v1 = vadd.f32 %v1716_v59, %v7264_v44  ;;  %v1332_v2 = vpop.f32.mrb[46].mxu0  ;;  %v1718_v3 = vpop.f32.mrb[46].mxu1  ;;  %2877 = vmatprep.mubr.bf16.mxu0 %v1932_v50  ;;  %3263 = vmatprep.mubr.bf16.mxu1 %v1932_v50 }
 0x1fc   : > { %v5458_v4 = vadd.f32 %v1332_v2, %v7252_v41  ;;  %v5522_v5 = vadd.f32 %v1718_v3, %v7256_v42  ;;  %v1334_v6 = vpop.f32.mrb[47].mxu0  ;;  %v1720_v8 = vpop.f32.mrb[47].mxu1  ;;  %2878 = vmatmul.mubr.bf16.gmra.mrb[104].mxu0 %v1931_v45  ;;  %3264 = vmatmul.mubr.bf16.gmra.mrb[104].mxu1 %v1931_v45  ;;  %v1851_v16 = vmax.f32 %v5456_v56, 0.0  ;;  %v1853_v17 = vmax.f32 %v5520_v57, 0.0 }
 0x1fd   : > { %v5459_v10 = vadd.f32 %v1334_v6, %v7260_v43  ;;  %v5523_v14 = vadd.f32 %v1720_v8, %v7264_v44  ;;  %v1852_v21 = vmax.f32 %v5457_v63, 0.0  ;;  %v1854_v23 = vmax.f32 %v5521_v1, 0.0 }
 0x1fe   : > { %v1855_v18 = vmax.f32 %v5458_v4, 0.0  ;;  %v1857_v19 = vmax.f32 %v5522_v5, 0.0  ;;  %v6320_v5 = vld [vmem:[%s8196_s5 + $0x40] sm:$0xff]  }
 0x1ff   : > { %v1856_v24 = vmax.f32 %v5459_v10, 0.0  ;;  %v1858_v25 = vmax.f32 %v5523_v14, 0.0  ;;  %5188 = vmatprep.subr.bf16.mxu0 %v6320_v5 }
 0x200   : > { %v1935_v27 = vpack.c.bf16 %v1855_v18, %v1851_v16  ;;  %v7592_v30 = vpack.c.bf16 %v1857_v19, %v1853_v17 }
 0x201   : > { %v1936_v32 = vpack.c.bf16 %v1856_v24, %v1852_v21  ;;  %v7594_v33 = vpack.c.bf16 %v1858_v25, %v1854_v23  ;;  %v1338_v34 = vpop.f32.mrb[48].mxu0  ;;  %v1724_v35 = vpop.f32.mrb[48].mxu1 }
 0x202   : > { %v5460_v39 = vadd.f32 %v1338_v34, %v7252_v41  ;;  %v5524_v45 = vadd.f32 %v1724_v35, %v7256_v42  ;;  %v1340_v50 = vpop.f32.mrb[49].mxu0  ;;  %v1726_v53 = vpop.f32.mrb[49].mxu1 }
 0x203   : > { %v5461_v55 = vadd.f32 %v1340_v50, %v7260_v43  ;;  %v5525_v56 = vadd.f32 %v1726_v53, %v7264_v44  ;;  %v1342_v57 = vpop.f32.mrb[50].mxu0  ;;  %v1728_v58 = vpop.f32.mrb[50].mxu1  ;;  %2887 = vmatprep.mubr.bf16.mxu0 %v1936_v32  ;;  %3273 = vmatprep.mubr.bf16.mxu1 %v1936_v32 }
 0x204   : > { %v5462_v59 = vadd.f32 %v1342_v57, %v7252_v41  ;;  %v5526_v63 = vadd.f32 %v1728_v58, %v7256_v42  ;;  %v1344_v1 = vpop.f32.mrb[51].mxu0  ;;  %v1730_v2 = vpop.f32.mrb[51].mxu1  ;;  %2888 = vmatmul.mubr.bf16.gmra.mrb[108].mxu0 %v1935_v27  ;;  %3274 = vmatmul.mubr.bf16.gmra.mrb[108].mxu1 %v1935_v27  ;;  %v1859_v6 = vmax.f32 %v5460_v39, 0.0  ;;  %v1861_v8 = vmax.f32 %v5524_v45, 0.0 }
 0x205   : > { %v5463_v3 = vadd.f32 %v1344_v1, %v7260_v43  ;;  %v5527_v4 = vadd.f32 %v1730_v2, %v7264_v44  ;;  %v1860_v16 = vmax.f32 %v5461_v55, 0.0  ;;  %v1862_v17 = vmax.f32 %v5525_v56, 0.0  ;;  %v6322_v1 = vld [vmem:[%s8196_s5 + $0xc0] sm:$0xff]  }
 0x206   : > { %v1863_v10 = vmax.f32 %v5462_v59, 0.0  ;;  %v1865_v14 = vmax.f32 %v5526_v63, 0.0  ;;  %5300 = vmatprep.subr.bf16.mxu1 %v6322_v1 }
 0x207   : > { %v1864_v18 = vmax.f32 %v5463_v3, 0.0  ;;  %v1866_v19 = vmax.f32 %v5527_v4, 0.0 }
 0x208   : > { %v1939_v21 = vpack.c.bf16 %v1863_v10, %v1859_v6  ;;  %v7607_v23 = vpack.c.bf16 %v1865_v14, %v1861_v8 }
 0x209   : > { %v1940_v24 = vpack.c.bf16 %v1864_v18, %v1860_v16  ;;  %v7609_v25 = vpack.c.bf16 %v1866_v19, %v1862_v17  ;;  %v1348_v27 = vpop.f32.mrb[52].mxu0  ;;  %v1734_v32 = vpop.f32.mrb[52].mxu1 }
 0x20a   : > { %v5464_v34 = vadd.f32 %v1348_v27, %v7252_v41  ;;  %v5528_v35 = vadd.f32 %v1734_v32, %v7256_v42  ;;  %v1350_v39 = vpop.f32.mrb[53].mxu0  ;;  %v1736_v45 = vpop.f32.mrb[53].mxu1 }
 0x20b   : > { %v5465_v50 = vadd.f32 %v1350_v39, %v7260_v43  ;;  %v5529_v53 = vadd.f32 %v1736_v45, %v7264_v44  ;;  %v1352_v55 = vpop.f32.mrb[54].mxu0  ;;  %v1738_v56 = vpop.f32.mrb[54].mxu1  ;;  %2897 = vmatprep.mubr.bf16.mxu0 %v1940_v24  ;;  %3283 = vmatprep.mubr.bf16.mxu1 %v1940_v24 }
 0x20c   : > { %v5466_v57 = vadd.f32 %v1352_v55, %v7252_v41  ;;  %v5530_v58 = vadd.f32 %v1738_v56, %v7256_v42  ;;  %v1354_v59 = vpop.f32.mrb[55].mxu0  ;;  %v1740_v63 = vpop.f32.mrb[55].mxu1  ;;  %2898 = vmatmul.mubr.bf16.gmra.mrb[112].mxu0 %v1939_v21  ;;  %3284 = vmatmul.mubr.bf16.gmra.mrb[112].mxu1 %v1939_v21  ;;  %v1867_v4 = vmax.f32 %v5464_v34, 0.0  ;;  %v1869_v5 = vmax.f32 %v5528_v35, 0.0 }
 0x20d   : > { %v5467_v2 = vadd.f32 %v1354_v59, %v7260_v43  ;;  %v5531_v3 = vadd.f32 %v1740_v63, %v7264_v44  ;;  %v1868_v10 = vmax.f32 %v5465_v50, 0.0  ;;  %v1870_v14 = vmax.f32 %v5529_v53, 0.0 }
 0x20e   : > { %v1871_v6 = vmax.f32 %v5466_v57, 0.0  ;;  %v1873_v8 = vmax.f32 %v5530_v58, 0.0 }
 0x20f   : > { %v1872_v16 = vmax.f32 %v5467_v2, 0.0  ;;  %v1874_v17 = vmax.f32 %v5531_v3, 0.0 }
 0x210   : > { %v1943_v18 = vpack.c.bf16 %v1871_v6, %v1867_v4  ;;  %v7622_v19 = vpack.c.bf16 %v1873_v8, %v1869_v5 }
 0x211   : > { %v1944_v21 = vpack.c.bf16 %v1872_v16, %v1868_v10  ;;  %v7624_v24 = vpack.c.bf16 %v1874_v17, %v1870_v14  ;;  %v1358_v27 = vpop.f32.mrb[56].mxu0  ;;  %v1744_v32 = vpop.f32.mrb[56].mxu1 }
 0x212   : > { %v5468_v39 = vadd.f32 %v1358_v27, %v7252_v41  ;;  %v5532_v34 = vadd.f32 %v1744_v32, %v7256_v42  ;;  %v1360_v35 = vpop.f32.mrb[57].mxu0  ;;  %v1746_v45 = vpop.f32.mrb[57].mxu1 }
 0x213   : > { %v5469_v55 = vadd.f32 %v1360_v35, %v7260_v43  ;;  %v5533_v50 = vadd.f32 %v1746_v45, %v7264_v44  ;;  %v1362_v53 = vpop.f32.mrb[58].mxu0  ;;  %v1748_v56 = vpop.f32.mrb[58].mxu1  ;;  %2907 = vmatprep.mubr.bf16.mxu0 %v1944_v21  ;;  %3293 = vmatprep.mubr.bf16.mxu1 %v1944_v21 }
 0x214   : > { %v5470_v57 = vadd.f32 %v1362_v53, %v7252_v41  ;;  %v5534_v58 = vadd.f32 %v1748_v56, %v7256_v42  ;;  %v1364_v59 = vpop.f32.mrb[59].mxu0  ;;  %v1750_v63 = vpop.f32.mrb[59].mxu1  ;;  %2908 = vmatmul.mubr.bf16.gmra.mrb[116].mxu0 %v1943_v18  ;;  %3294 = vmatmul.mubr.bf16.gmra.mrb[116].mxu1 %v1943_v18  ;;  %v1875_v3 = vmax.f32 %v5468_v39, 0.0  ;;  %v1877_v4 = vmax.f32 %v5532_v34, 0.0 }
 0x215   : > { %v5471_v1 = vadd.f32 %v1364_v59, %v7260_v43  ;;  %v5535_v2 = vadd.f32 %v1750_v63, %v7264_v44  ;;  %v1876_v8 = vmax.f32 %v5469_v55, 0.0  ;;  %v1878_v10 = vmax.f32 %v5533_v50, 0.0 }
 0x216   : > { %v1879_v5 = vmax.f32 %v5470_v57, 0.0  ;;  %v1881_v6 = vmax.f32 %v5534_v58, 0.0 }
 0x217   : > { %v1880_v14 = vmax.f32 %v5471_v1, 0.0  ;;  %v1882_v16 = vmax.f32 %v5535_v2, 0.0 }
 0x218   : > { %v1947_v17 = vpack.c.bf16 %v1879_v5, %v1875_v3  ;;  %v7634_v21 = vpack.c.bf16 %v1881_v6, %v1877_v4 }
 0x219   : > { %v1948_v27 = vpack.c.bf16 %v1880_v14, %v1876_v8  ;;  %v7636_v32 = vpack.c.bf16 %v1882_v16, %v1878_v10  ;;  %v1368_v35 = vpop.f32.mrb[60].mxu0  ;;  %v1754_v18 = vpop.f32.mrb[60].mxu1 }
 0x21a   : > { %v5472_v45 = vadd.f32 %v1368_v35, %v7252_v41  ;;  %v5536_v53 = vadd.f32 %v1754_v18, %v7256_v42  ;;  %v1370_v39 = vpop.f32.mrb[61].mxu0  ;;  %v1756_v34 = vpop.f32.mrb[61].mxu1 }
 0x21b   : > { %v5473_v56 = vadd.f32 %v1370_v39, %v7260_v43  ;;  %v5537_v55 = vadd.f32 %v1756_v34, %v7264_v44  ;;  %v1372_v50 = vpop.f32.mrb[62].mxu0  ;;  %v1758_v57 = vpop.f32.mrb[62].mxu1  ;;  %2917 = vmatprep.mubr.bf16.mxu0 %v1948_v27  ;;  %3303 = vmatprep.mubr.bf16.mxu1 %v1948_v27  ;;  %v6329_v39 = vld [vmem:[%s8196_s5 + $0x10] sm:$0xff]  }
 0x21c   : > { %v5474_v58 = vadd.f32 %v1372_v50, %v7252_v41  ;;  %v5538_v59 = vadd.f32 %v1758_v57, %v7256_v42  ;;  %v1374_v63 = vpop.f32.mrb[63].mxu0  ;;  %v1760_v1 = vpop.f32.mrb[63].mxu1  ;;  %2918 = vmatmul.mubr.bf16.gmra.mrb[120].mxu0 %v1947_v17  ;;  %3304 = vmatmul.mubr.bf16.gmra.mrb[120].mxu1 %v1947_v17  ;;  %v1883_v4 = vmax.f32 %v5472_v45, 0.0  ;;  %v1885_v5 = vmax.f32 %v5536_v53, 0.0  ;;  %v6324_v17 = vld [vmem:[%s8196_s5 + $0x48] sm:$0xff]   ;;  %v6331_v34 = vld [vmem:[%s8196_s5 + $0x90] sm:$0xff]  }
 0x21d   : > { %v5475_v2 = vadd.f32 %v1374_v63, %v7260_v43  ;;  %v5539_v3 = vadd.f32 %v1760_v1, %v7264_v44  ;;  %v1884_v10 = vmax.f32 %v5473_v56, 0.0  ;;  %v1886_v14 = vmax.f32 %v5537_v55, 0.0  ;;  %v6321_v43 = vld [vmem:[%s8196_s5] sm:$0xff]   ;;  %v6326_v45 = vld [vmem:[%s8196_s5 + $0xc8] sm:$0xff]   ;;  %v6332_v56 = vld [vmem:[%s8196_s5 + $0x58] sm:$0xff]  }
 0x21e   : > { %v1887_v6 = vmax.f32 %v5474_v58, 0.0  ;;  %v1889_v8 = vmax.f32 %v5538_v59, 0.0  ;;  %v6323_v44 = vld [vmem:[%s8196_s5 + $0x80] sm:$0xff]   ;;  %v6327_v53 = vld [vmem:[%s8196_s5 + $0x88] sm:$0xff]   ;;  %v6334_v55 = vld [vmem:[%s8196_s5 + $0xd8] sm:$0xff]  }
 0x21f   : > { %v1888_v16 = vmax.f32 %v5475_v2, 0.0  ;;  %v1890_v27 = vmax.f32 %v5539_v3, 0.0  ;;  %v6333_v50 = vld [vmem:[%s8196_s5 + $0x18] sm:$0xff]   ;;  %v6337_v58 = vld [vmem:[%s8196_s5 + $0x20] sm:$0xff]   ;;  %v6340_v63 = vld [vmem:[%s8196_s5 + $0x68] sm:$0xff]  }
 0x220   : > { %v1951_v35 = vpack.c.bf16 %v1887_v6, %v1883_v4  ;;  %v7646_v41 = vpack.c.bf16 %v1889_v8, %v1885_v5  ;;  %v6335_v57 = vld [vmem:[%s8196_s5 + $0x98] sm:$0xff]   ;;  %v6339_v59 = vld [vmem:[%s8196_s5 + $0xa0] sm:$0xff]   ;;  %v6342_v1 = vld [vmem:[%s8196_s5 + $0xe8] sm:$0xff]  }
 0x221   : > { %v1952_v42 = vpack.c.bf16 %v1888_v16, %v1884_v10  ;;  %v7648_v18 = vpack.c.bf16 %v1890_v27, %v1886_v14  ;;  %v6341_v2 = vld [vmem:[%s8196_s5 + $0x28] sm:$0xff]   ;;  %v6345_v4 = vld [vmem:[%s8196_s5 + $0x30] sm:$0xff]   ;;  %v6348_v6 = vld [vmem:[%s8196_s5 + $0x78] sm:$0xff]  }
 0x222   : > { %v6343_v3 = vld [vmem:[%s8196_s5 + $0xa8] sm:$0xff]   ;;  %v6347_v5 = vld [vmem:[%s8196_s5 + $0xb0] sm:$0xff]   ;;  %v6350_v8 = vld [vmem:[%s8196_s5 + $0xf8] sm:$0xff]  }
 0x223   : > { %2927 = vmatprep.mubr.bf16.mxu0 %v1952_v42  ;;  %3313 = vmatprep.mubr.bf16.mxu1 %v1952_v42  ;;  %v6349_v10 = vld [vmem:[%s8196_s5 + $0x38] sm:$0xff]  }
 0x224   : > { %2928 = vmatmul.mubr.bf16.gmra.mrb[124].mxu0 %v1951_v35  ;;  %3314 = vmatmul.mubr.bf16.gmra.mrb[124].mxu1 %v1951_v35  ;;  %v6351_v14 = vld [vmem:[%s8196_s5 + $0xb8] sm:$0xff]  }
 0x225   : > { %2970 = vmatprep.mubr.bf16.mxu0 %v7276_v9  ;;  %3356 = vmatprep.mubr.bf16.mxu1 %v7276_v9  ;;  %v6325_v9 = vld [vmem:[%s8196_s5 + $0x8] sm:$0xff]  }
 0x22c   : > { %2971 = vmatmul.mubr.bf16.vlgmr.msra.gmra.mrb[64].mxu0 %v7274_v7  ;;  %3357 = vmatmul.mubr.bf16.vlgmr.msra.gmra.mrb[64].mxu1 %v7274_v7  ;;  %v6328_v7 = vld [vmem:[%s8196_s5 + $0x50] sm:$0xff]  }
 0x22d   : > { %2980 = vmatprep.mubr.bf16.mxu0 %v7312_v54  ;;  %3366 = vmatprep.mubr.bf16.mxu1 %v7312_v54  ;;  %v6330_v54 = vld [vmem:[%s8196_s5 + $0xd0] sm:$0xff]  }
 0x22e   : > { %5189 = vmatpush3.bf16.msra.mxu0 %v6321_v43  ;;  %5301 = vmatpush3.bf16.msra.mxu1 %v6323_v44 }
 0x22f   : > { %5190 = vmatprep.subr.bf16.mxu0 %v6324_v17  ;;  %5302 = vmatprep.subr.bf16.mxu1 %v6326_v45 }
 0x232   : > { %5191 = vmatpush3.bf16.msra.mxu0 %v6325_v9  ;;  %5303 = vmatpush3.bf16.msra.mxu1 %v6327_v53 }
 0x233   : > { %5192 = vmatprep.subr.bf16.mxu0 %v6328_v7  ;;  %5304 = vmatprep.subr.bf16.mxu1 %v6330_v54 }
 0x234   : > { %2981 = vmatmul.mubr.bf16.gmra.mrb[68].mxu0 %v7310_v52  ;;  %3367 = vmatmul.mubr.bf16.gmra.mrb[68].mxu1 %v7310_v52  ;;  %v6336_v52 = vld [vmem:[%s8196_s5 + $0x60] sm:$0xff]  }
 0x235   : > { %2990 = vmatprep.mubr.bf16.mxu0 %v7348_v28  ;;  %3376 = vmatprep.mubr.bf16.mxu1 %v7348_v28  ;;  %v6338_v28 = vld [vmem:[%s8196_s5 + $0xe0] sm:$0xff]  }
 0x236   : > { %5193 = vmatpush3.bf16.msra.mxu0 %v6329_v39  ;;  %5305 = vmatpush3.bf16.msra.mxu1 %v6331_v34 }
 0x237   : > { %5194 = vmatprep.subr.bf16.mxu0 %v6332_v56  ;;  %5306 = vmatprep.subr.bf16.mxu1 %v6334_v55 }
 0x23a   : > { %5195 = vmatpush3.bf16.msra.mxu0 %v6333_v50  ;;  %5307 = vmatpush3.bf16.msra.mxu1 %v6335_v57 }
 0x23b   : > { %5196 = vmatprep.subr.bf16.mxu0 %v6336_v52  ;;  %5308 = vmatprep.subr.bf16.mxu1 %v6338_v28 }
 0x23c   : > { %2991 = vmatmul.mubr.bf16.gmra.mrb[72].mxu0 %v7346_v26  ;;  %3377 = vmatmul.mubr.bf16.gmra.mrb[72].mxu1 %v7346_v26  ;;  %v6344_v26 = vld [vmem:[%s8196_s5 + $0x70] sm:$0xff]  }
 0x23d   : > { %3000 = vmatprep.mubr.bf16.mxu0 %v7384_v13  ;;  %3386 = vmatprep.mubr.bf16.mxu1 %v7384_v13  ;;  %v6346_v13 = vld [vmem:[%s8196_s5 + $0xf0] sm:$0xff]  }
 0x23e   : > { %5197 = vmatpush3.bf16.msra.mxu0 %v6337_v58  ;;  %5309 = vmatpush3.bf16.msra.mxu1 %v6339_v59 }
 0x23f   : > { %5198 = vmatprep.subr.bf16.mxu0 %v6340_v63  ;;  %5310 = vmatprep.subr.bf16.mxu1 %v6342_v1 }
 0x242   : > { %5199 = vmatpush3.bf16.msra.mxu0 %v6341_v2  ;;  %5311 = vmatpush3.bf16.msra.mxu1 %v6343_v3 }
 0x243   : > { %5200 = vmatprep.subr.bf16.mxu0 %v6344_v26  ;;  %5312 = vmatprep.subr.bf16.mxu1 %v6346_v13 }
 0x244   : > { %3001 = vmatmul.mubr.bf16.gmra.mrb[76].mxu0 %v7382_v11  ;;  %3387 = vmatmul.mubr.bf16.gmra.mrb[76].mxu1 %v7382_v11  ;;  %v2083_v11 = vld [vmem:[%s8195_s4] sm:$0xf] }
 0x245   : > { %3010 = vmatprep.mubr.bf16.mxu0 %v7420_v62  ;;  %3396 = vmatprep.mubr.bf16.mxu1 %v7420_v62  ;;  %v7813_v62 = vrot.slane %v2083_v11, %v543_v38 }
 0x246   : > { %5201 = vmatpush3.bf16.msra.mxu0 %v6345_v4  ;;  %5313 = vmatpush3.bf16.msra.mxu1 %v6347_v5 }
 0x247   : > { %5202 = vmatprep.subr.bf16.mxu0 %v6348_v6  ;;  %5314 = vmatprep.subr.bf16.mxu1 %v6350_v8 }
 0x24a   : > { %5203 = vmatpush3.bf16.msra.mxu0 %v6349_v10  ;;  %5315 = vmatpush3.bf16.msra.mxu1 %v6351_v14 }
 0x24c   : > { %3011 = vmatmul.mubr.bf16.gmra.mrb[80].mxu0 %v7418_v60  ;;  %3397 = vmatmul.mubr.bf16.gmra.mrb[80].mxu1 %v7418_v60  ;;  %v7809_v60 = vrot.slane %v2083_v11, %v535_v37 }
 0x24d   : > { %3020 = vmatprep.mubr.bf16.mxu0 %v7456_v48  ;;  %3406 = vmatprep.mubr.bf16.mxu1 %v7456_v48  ;;  %v7821_v48 = vrot.slane %v2083_v11, %v547_v40 }
 0x254   : > { %3021 = vmatmul.mubr.bf16.gmra.mrb[84].mxu0 %v7454_v46  ;;  %3407 = vmatmul.mubr.bf16.gmra.mrb[84].mxu1 %v7454_v46  ;;  %v7817_v46 = vrot.slane %v2083_v11, %v539_v49 }
 0x255   : > { %3030 = vmatprep.mubr.bf16.mxu0 %v7492_v31  ;;  %3416 = vmatprep.mubr.bf16.mxu1 %v7492_v31 }
 0x25c   : > { %3031 = vmatmul.mubr.bf16.gmra.mrb[88].mxu0 %v7490_v29  ;;  %3417 = vmatmul.mubr.bf16.gmra.mrb[88].mxu1 %v7490_v29 }
 0x25d   : > { %3040 = vmatprep.mubr.bf16.mxu0 %v7528_v22  ;;  %3426 = vmatprep.mubr.bf16.mxu1 %v7528_v22 }
 0x264   : > { %3041 = vmatmul.mubr.bf16.gmra.mrb[92].mxu0 %v7526_v20  ;;  %3427 = vmatmul.mubr.bf16.gmra.mrb[92].mxu1 %v7526_v20 }
 0x265   : > { %3050 = vmatprep.mubr.bf16.mxu0 %v7558_v15  ;;  %3436 = vmatprep.mubr.bf16.mxu1 %v7558_v15 }
 0x26c   : > { %3051 = vmatmul.mubr.bf16.gmra.mrb[96].mxu0 %v7556_v12  ;;  %3437 = vmatmul.mubr.bf16.gmra.mrb[96].mxu1 %v7556_v12 }
 0x26d   : > { %3060 = vmatprep.mubr.bf16.mxu0 %v7570_v0  ;;  %3446 = vmatprep.mubr.bf16.mxu1 %v7570_v0 }
 0x274   : > { %3061 = vmatmul.mubr.bf16.gmra.mrb[100].mxu0 %v7568_v61  ;;  %3447 = vmatmul.mubr.bf16.gmra.mrb[100].mxu1 %v7568_v61 }
 0x275   : > { %3070 = vmatprep.mubr.bf16.mxu0 %v7582_v51  ;;  %3456 = vmatprep.mubr.bf16.mxu1 %v7582_v51 }
 0x27c   : > { %3071 = vmatmul.mubr.bf16.gmra.mrb[104].mxu0 %v7580_v47  ;;  %3457 = vmatmul.mubr.bf16.gmra.mrb[104].mxu1 %v7580_v47 }
 0x27d   : > { %3080 = vmatprep.mubr.bf16.mxu0 %v7594_v33  ;;  %3466 = vmatprep.mubr.bf16.mxu1 %v7594_v33 }
 0x284   : > { %3081 = vmatmul.mubr.bf16.gmra.mrb[108].mxu0 %v7592_v30  ;;  %3467 = vmatmul.mubr.bf16.gmra.mrb[108].mxu1 %v7592_v30 }
 0x285   : > { %3090 = vmatprep.mubr.bf16.mxu0 %v7609_v25  ;;  %3476 = vmatprep.mubr.bf16.mxu1 %v7609_v25 }
 0x28c   : > { %3091 = vmatmul.mubr.bf16.gmra.mrb[112].mxu0 %v7607_v23  ;;  %3477 = vmatmul.mubr.bf16.gmra.mrb[112].mxu1 %v7607_v23 }
 0x28d   : > { %3100 = vmatprep.mubr.bf16.mxu0 %v7624_v24  ;;  %3486 = vmatprep.mubr.bf16.mxu1 %v7624_v24 }
 0x294   : > { %3101 = vmatmul.mubr.bf16.gmra.mrb[116].mxu0 %v7622_v19  ;;  %3487 = vmatmul.mubr.bf16.gmra.mrb[116].mxu1 %v7622_v19 }
 0x295   : > { %3110 = vmatprep.mubr.bf16.mxu0 %v7636_v32  ;;  %3496 = vmatprep.mubr.bf16.mxu1 %v7636_v32 }
 0x29c   : > { %3111 = vmatmul.mubr.bf16.gmra.mrb[120].mxu0 %v7634_v21  ;;  %3497 = vmatmul.mubr.bf16.gmra.mrb[120].mxu1 %v7634_v21 }
 0x29d   : > { %3120 = vmatprep.mubr.bf16.mxu0 %v7648_v18  ;;  %3506 = vmatprep.mubr.bf16.mxu1 %v7648_v18 }
 0x2a4   : > { %3121 = vmatmul.mubr.bf16.gmra.mrb[124].mxu0 %v7646_v41  ;;  %3507 = vmatmul.mubr.bf16.gmra.mrb[124].mxu1 %v7646_v41 }
 0x2ff   : > { %v2972_v29 = vpop.f32.mrb[64].mxu0  ;;  %v3358_v31 = vpop.f32.mrb[64].mxu1 }
 0x300   : > { %v5540_v20 = vadd.f32 %v2972_v29, %v7809_v60  ;;  %v5604_v22 = vadd.f32 %v3358_v31, %v7813_v62  ;;  %v2974_v37 = vpop.f32.mrb[65].mxu0  ;;  %v3360_v12 = vpop.f32.mrb[65].mxu1 }
 0x301   : > { %v5541_v15 = vadd.f32 %v2974_v37, %v7817_v46  ;;  %v5605_v38 = vadd.f32 %v3360_v12, %v7821_v48  ;;  %v2976_v61 = vpop.f32.mrb[66].mxu0  ;;  %v3362_v0 = vpop.f32.mrb[66].mxu1 }
 0x302   : > { %v5542_v49 = vadd.f32 %v2976_v61, %v7809_v60  ;;  %v5606_v36 = vadd.f32 %v3362_v0, %v7813_v62  ;;  %v2978_v40 = vpop.f32.mrb[67].mxu0  ;;  %v3364_v47 = vpop.f32.mrb[67].mxu1  ;;  %v3517_v33 = vmax.f32 %v5540_v20, 0.0  ;;  %v3519_v23 = vmax.f32 %v5604_v22, 0.0 }
 0x303   : > { %v5543_v51 = vadd.f32 %v2978_v40, %v7817_v46  ;;  %v5607_v30 = vadd.f32 %v3364_v47, %v7821_v48  ;;  %v3518_v24 = vmax.f32 %v5541_v15, 0.0  ;;  %v3520_v21 = vmax.f32 %v5605_v38, 0.0 }
 0x304   : > { %v3521_v25 = vmax.f32 %v5542_v49, 0.0  ;;  %v3523_v19 = vmax.f32 %v5606_v36, 0.0 }
 0x305   : > { %v3522_v32 = vmax.f32 %v5543_v51, 0.0  ;;  %v3524_v16 = vmax.f32 %v5607_v30, 0.0 }
 0x306   : > { %v3645_v27 = vpack.c.bf16 %v3521_v25, %v3517_v33  ;;  %v3647_v35 = vpack.c.bf16 %v3523_v19, %v3519_v23 }
 0x307   : > { %v3646_v41 = vpack.c.bf16 %v3522_v32, %v3518_v24  ;;  %v3648_v42 = vpack.c.bf16 %v3524_v16, %v3520_v21  ;;  %v2982_v18 = vpop.f32.mrb[68].mxu0  ;;  %v3368_v43 = vpop.f32.mrb[68].mxu1 }
 0x308   : > { %v5544_v44 = vadd.f32 %v2982_v18, %v7809_v60  ;;  %v5608_v17 = vadd.f32 %v3368_v43, %v7813_v62  ;;  %v2984_v45 = vpop.f32.mrb[69].mxu0  ;;  %v3370_v9 = vpop.f32.mrb[69].mxu1 }
 0x309   : > { %v5545_v53 = vadd.f32 %v2984_v45, %v7817_v46  ;;  %v5609_v7 = vadd.f32 %v3370_v9, %v7821_v48  ;;  %v2986_v54 = vpop.f32.mrb[70].mxu0  ;;  %v3372_v39 = vpop.f32.mrb[70].mxu1  ;;  %4004 = vmatprep.mubr.bf16.mxu0 %v3646_v41  ;;  %4165 = vmatprep.mubr.bf16.mxu1 %v3648_v42 }
 0x30a   : > { %v5546_v34 = vadd.f32 %v2986_v54, %v7809_v60  ;;  %v5610_v56 = vadd.f32 %v3372_v39, %v7813_v62  ;;  %v2988_v55 = vpop.f32.mrb[71].mxu0  ;;  %v3374_v50 = vpop.f32.mrb[71].mxu1  ;;  %4005 = vmatmul.mubr.bf16.vlgmr.msra.gmra.mrb[128].mxu0 %v3645_v27  ;;  %4166 = vmatmul.mubr.bf16.vlgmr.msra.gmra.mrb[128].mxu1 %v3647_v35  ;;  %v3525_v28 = vmax.f32 %v5544_v44, 0.0  ;;  %v3527_v58 = vmax.f32 %v5608_v17, 0.0 }
 0x30b   : > { %v5547_v57 = vadd.f32 %v2988_v55, %v7817_v46  ;;  %v5611_v52 = vadd.f32 %v3374_v50, %v7821_v48  ;;  %v3526_v1 = vmax.f32 %v5545_v53, 0.0  ;;  %v3528_v2 = vmax.f32 %v5609_v7, 0.0 }
 0x30c   : > { %v3529_v59 = vmax.f32 %v5546_v34, 0.0  ;;  %v3531_v63 = vmax.f32 %v5610_v56, 0.0 }
 0x30d   : > { %v3530_v3 = vmax.f32 %v5547_v57, 0.0  ;;  %v3532_v26 = vmax.f32 %v5611_v52, 0.0 }
 0x30e   : > { %v3649_v13 = vpack.c.bf16 %v3529_v59, %v3525_v28  ;;  %v3651_v4 = vpack.c.bf16 %v3531_v63, %v3527_v58 }
 0x30f   : > { %v3650_v5 = vpack.c.bf16 %v3530_v3, %v3526_v1  ;;  %v3652_v6 = vpack.c.bf16 %v3532_v26, %v3528_v2  ;;  %v2992_v8 = vpop.f32.mrb[72].mxu0  ;;  %v3378_v10 = vpop.f32.mrb[72].mxu1 }
 0x310   : > { %v5548_v14 = vadd.f32 %v2992_v8, %v7809_v60  ;;  %v5612_v11 = vadd.f32 %v3378_v10, %v7813_v62  ;;  %v2994_v29 = vpop.f32.mrb[73].mxu0  ;;  %v3380_v31 = vpop.f32.mrb[73].mxu1 }
 0x311   : > { %v5549_v20 = vadd.f32 %v2994_v29, %v7817_v46  ;;  %v5613_v22 = vadd.f32 %v3380_v31, %v7821_v48  ;;  %v2996_v37 = vpop.f32.mrb[74].mxu0  ;;  %v3382_v12 = vpop.f32.mrb[74].mxu1  ;;  %4012 = vmatprep.mubr.bf16.mxu0 %v3650_v5  ;;  %4173 = vmatprep.mubr.bf16.mxu1 %v3652_v6 }
 0x312   : > { %v5550_v15 = vadd.f32 %v2996_v37, %v7809_v60  ;;  %v5614_v38 = vadd.f32 %v3382_v12, %v7813_v62  ;;  %v2998_v61 = vpop.f32.mrb[75].mxu0  ;;  %v3384_v0 = vpop.f32.mrb[75].mxu1  ;;  %4013 = vmatmul.mubr.bf16.gmra.mrb[132].mxu0 %v3649_v13  ;;  %4174 = vmatmul.mubr.bf16.gmra.mrb[132].mxu1 %v3651_v4  ;;  %v3533_v40 = vmax.f32 %v5548_v14, 0.0  ;;  %v3535_v47 = vmax.f32 %v5612_v11, 0.0 }
 0x313   : > { %v5551_v49 = vadd.f32 %v2998_v61, %v7817_v46  ;;  %v5615_v36 = vadd.f32 %v3384_v0, %v7821_v48  ;;  %v3534_v33 = vmax.f32 %v5549_v20, 0.0  ;;  %v3536_v23 = vmax.f32 %v5613_v22, 0.0 }
 0x314   : > { %v3537_v51 = vmax.f32 %v5550_v15, 0.0  ;;  %v3539_v30 = vmax.f32 %v5614_v38, 0.0 }
 0x315   : > { %v3538_v25 = vmax.f32 %v5551_v49, 0.0  ;;  %v3540_v19 = vmax.f32 %v5615_v36, 0.0 }
 0x316   : > { %v3653_v24 = vpack.c.bf16 %v3537_v51, %v3533_v40  ;;  %v3655_v21 = vpack.c.bf16 %v3539_v30, %v3535_v47 }
 0x317   : > { %v3654_v32 = vpack.c.bf16 %v3538_v25, %v3534_v33  ;;  %v3656_v16 = vpack.c.bf16 %v3540_v19, %v3536_v23  ;;  %v3002_v27 = vpop.f32.mrb[76].mxu0  ;;  %v3388_v35 = vpop.f32.mrb[76].mxu1 }
 0x318   : > { %v5552_v41 = vadd.f32 %v3002_v27, %v7809_v60  ;;  %v5616_v42 = vadd.f32 %v3388_v35, %v7813_v62  ;;  %v3004_v18 = vpop.f32.mrb[77].mxu0  ;;  %v3390_v43 = vpop.f32.mrb[77].mxu1 }
 0x319   : > { %v5553_v44 = vadd.f32 %v3004_v18, %v7817_v46  ;;  %v5617_v17 = vadd.f32 %v3390_v43, %v7821_v48  ;;  %v3006_v45 = vpop.f32.mrb[78].mxu0  ;;  %v3392_v9 = vpop.f32.mrb[78].mxu1  ;;  %4020 = vmatprep.mubr.bf16.mxu0 %v3654_v32  ;;  %4181 = vmatprep.mubr.bf16.mxu1 %v3656_v16 }
 0x31a   : > { %v5554_v53 = vadd.f32 %v3006_v45, %v7809_v60  ;;  %v5618_v7 = vadd.f32 %v3392_v9, %v7813_v62  ;;  %v3008_v54 = vpop.f32.mrb[79].mxu0  ;;  %v3394_v39 = vpop.f32.mrb[79].mxu1  ;;  %4021 = vmatmul.mubr.bf16.gmra.mrb[136].mxu0 %v3653_v24  ;;  %4182 = vmatmul.mubr.bf16.gmra.mrb[136].mxu1 %v3655_v21  ;;  %v3541_v55 = vmax.f32 %v5552_v41, 0.0  ;;  %v3543_v50 = vmax.f32 %v5616_v42, 0.0 }
 0x31b   : > { %v5555_v34 = vadd.f32 %v3008_v54, %v7817_v46  ;;  %v5619_v56 = vadd.f32 %v3394_v39, %v7821_v48  ;;  %v3542_v28 = vmax.f32 %v5553_v44, 0.0  ;;  %v3544_v58 = vmax.f32 %v5617_v17, 0.0 }
 0x31c   : > { %v3545_v57 = vmax.f32 %v5554_v53, 0.0  ;;  %v3547_v52 = vmax.f32 %v5618_v7, 0.0 }
 0x31d   : > { %v3546_v59 = vmax.f32 %v5555_v34, 0.0  ;;  %v3548_v63 = vmax.f32 %v5619_v56, 0.0 }
 0x31e   : > { %v3657_v1 = vpack.c.bf16 %v3545_v57, %v3541_v55  ;;  %v3659_v2 = vpack.c.bf16 %v3547_v52, %v3543_v50 }
 0x31f   : > { %v3658_v3 = vpack.c.bf16 %v3546_v59, %v3542_v28  ;;  %v3660_v26 = vpack.c.bf16 %v3548_v63, %v3544_v58  ;;  %v3012_v13 = vpop.f32.mrb[80].mxu0  ;;  %v3398_v4 = vpop.f32.mrb[80].mxu1 }
 0x320   : > { %v5556_v5 = vadd.f32 %v3012_v13, %v7809_v60  ;;  %v5620_v6 = vadd.f32 %v3398_v4, %v7813_v62  ;;  %v3014_v8 = vpop.f32.mrb[81].mxu0  ;;  %v3400_v10 = vpop.f32.mrb[81].mxu1 }
 0x321   : > { %v5557_v14 = vadd.f32 %v3014_v8, %v7817_v46  ;;  %v5621_v11 = vadd.f32 %v3400_v10, %v7821_v48  ;;  %v3016_v29 = vpop.f32.mrb[82].mxu0  ;;  %v3402_v31 = vpop.f32.mrb[82].mxu1  ;;  %4028 = vmatprep.mubr.bf16.mxu0 %v3658_v3  ;;  %4189 = vmatprep.mubr.bf16.mxu1 %v3660_v26 }
 0x322   : > { %v5558_v20 = vadd.f32 %v3016_v29, %v7809_v60  ;;  %v5622_v22 = vadd.f32 %v3402_v31, %v7813_v62  ;;  %v3018_v37 = vpop.f32.mrb[83].mxu0  ;;  %v3404_v12 = vpop.f32.mrb[83].mxu1  ;;  %4029 = vmatmul.mubr.bf16.gmra.mrb[140].mxu0 %v3657_v1  ;;  %4190 = vmatmul.mubr.bf16.gmra.mrb[140].mxu1 %v3659_v2  ;;  %v3549_v61 = vmax.f32 %v5556_v5, 0.0  ;;  %v3551_v0 = vmax.f32 %v5620_v6, 0.0 }
 0x323   : > { %v5559_v15 = vadd.f32 %v3018_v37, %v7817_v46  ;;  %v5623_v38 = vadd.f32 %v3404_v12, %v7821_v48  ;;  %v3550_v40 = vmax.f32 %v5557_v14, 0.0  ;;  %v3552_v47 = vmax.f32 %v5621_v11, 0.0 }
 0x324   : > { %v3553_v49 = vmax.f32 %v5558_v20, 0.0  ;;  %v3555_v36 = vmax.f32 %v5622_v22, 0.0 }
 0x325   : > { %v3554_v51 = vmax.f32 %v5559_v15, 0.0  ;;  %v3556_v30 = vmax.f32 %v5623_v38, 0.0 }
 0x326   : > { %v3661_v33 = vpack.c.bf16 %v3553_v49, %v3549_v61  ;;  %v3663_v23 = vpack.c.bf16 %v3555_v36, %v3551_v0 }
 0x327   : > { %v3662_v25 = vpack.c.bf16 %v3554_v51, %v3550_v40  ;;  %v3664_v19 = vpack.c.bf16 %v3556_v30, %v3552_v47  ;;  %v3022_v24 = vpop.f32.mrb[84].mxu0  ;;  %v3408_v21 = vpop.f32.mrb[84].mxu1 }
 0x328   : > { %v5560_v32 = vadd.f32 %v3022_v24, %v7809_v60  ;;  %v5624_v16 = vadd.f32 %v3408_v21, %v7813_v62  ;;  %v3024_v27 = vpop.f32.mrb[85].mxu0  ;;  %v3410_v35 = vpop.f32.mrb[85].mxu1 }
 0x329   : > { %v5561_v41 = vadd.f32 %v3024_v27, %v7817_v46  ;;  %v5625_v42 = vadd.f32 %v3410_v35, %v7821_v48  ;;  %v3026_v18 = vpop.f32.mrb[86].mxu0  ;;  %v3412_v43 = vpop.f32.mrb[86].mxu1  ;;  %4036 = vmatprep.mubr.bf16.mxu0 %v3662_v25  ;;  %4197 = vmatprep.mubr.bf16.mxu1 %v3664_v19 }
 0x32a   : > { %v5562_v44 = vadd.f32 %v3026_v18, %v7809_v60  ;;  %v5626_v17 = vadd.f32 %v3412_v43, %v7813_v62  ;;  %v3028_v45 = vpop.f32.mrb[87].mxu0  ;;  %v3414_v9 = vpop.f32.mrb[87].mxu1  ;;  %4037 = vmatmul.mubr.bf16.gmra.mrb[144].mxu0 %v3661_v33  ;;  %4198 = vmatmul.mubr.bf16.gmra.mrb[144].mxu1 %v3663_v23  ;;  %v3557_v54 = vmax.f32 %v5560_v32, 0.0  ;;  %v3559_v39 = vmax.f32 %v5624_v16, 0.0 }
 0x32b   : > { %v5563_v53 = vadd.f32 %v3028_v45, %v7817_v46  ;;  %v5627_v7 = vadd.f32 %v3414_v9, %v7821_v48  ;;  %v3558_v55 = vmax.f32 %v5561_v41, 0.0  ;;  %v3560_v50 = vmax.f32 %v5625_v42, 0.0 }
 0x32c   : > { %v3561_v34 = vmax.f32 %v5562_v44, 0.0  ;;  %v3563_v56 = vmax.f32 %v5626_v17, 0.0 }
 0x32d   : > { %v3562_v57 = vmax.f32 %v5563_v53, 0.0  ;;  %v3564_v52 = vmax.f32 %v5627_v7, 0.0 }
 0x32e   : > { %v3665_v28 = vpack.c.bf16 %v3561_v34, %v3557_v54  ;;  %v3667_v58 = vpack.c.bf16 %v3563_v56, %v3559_v39 }
 0x32f   : > { %v3666_v59 = vpack.c.bf16 %v3562_v57, %v3558_v55  ;;  %v3668_v63 = vpack.c.bf16 %v3564_v52, %v3560_v50  ;;  %v3032_v1 = vpop.f32.mrb[88].mxu0  ;;  %v3418_v2 = vpop.f32.mrb[88].mxu1 }
 0x330   : > { %v5564_v3 = vadd.f32 %v3032_v1, %v7809_v60  ;;  %v5628_v26 = vadd.f32 %v3418_v2, %v7813_v62  ;;  %v3034_v13 = vpop.f32.mrb[89].mxu0  ;;  %v3420_v4 = vpop.f32.mrb[89].mxu1 }
 0x331   : > { %v5565_v5 = vadd.f32 %v3034_v13, %v7817_v46  ;;  %v5629_v6 = vadd.f32 %v3420_v4, %v7821_v48  ;;  %v3036_v8 = vpop.f32.mrb[90].mxu0  ;;  %v3422_v10 = vpop.f32.mrb[90].mxu1  ;;  %4044 = vmatprep.mubr.bf16.mxu0 %v3666_v59  ;;  %4205 = vmatprep.mubr.bf16.mxu1 %v3668_v63 }
 0x332   : > { %v5566_v14 = vadd.f32 %v3036_v8, %v7809_v60  ;;  %v5630_v11 = vadd.f32 %v3422_v10, %v7813_v62  ;;  %v3038_v29 = vpop.f32.mrb[91].mxu0  ;;  %v3424_v31 = vpop.f32.mrb[91].mxu1  ;;  %4045 = vmatmul.mubr.bf16.gmra.mrb[148].mxu0 %v3665_v28  ;;  %4206 = vmatmul.mubr.bf16.gmra.mrb[148].mxu1 %v3667_v58  ;;  %v3565_v37 = vmax.f32 %v5564_v3, 0.0  ;;  %v3567_v12 = vmax.f32 %v5628_v26, 0.0 }
 0x333   : > { %v5567_v20 = vadd.f32 %v3038_v29, %v7817_v46  ;;  %v5631_v22 = vadd.f32 %v3424_v31, %v7821_v48  ;;  %v3566_v61 = vmax.f32 %v5565_v5, 0.0  ;;  %v3568_v0 = vmax.f32 %v5629_v6, 0.0 }
 0x334   : > { %v3569_v15 = vmax.f32 %v5566_v14, 0.0  ;;  %v3571_v38 = vmax.f32 %v5630_v11, 0.0 }
 0x335   : > { %v3570_v49 = vmax.f32 %v5567_v20, 0.0  ;;  %v3572_v36 = vmax.f32 %v5631_v22, 0.0 }
 0x336   : > { %v3669_v40 = vpack.c.bf16 %v3569_v15, %v3565_v37  ;;  %v3671_v47 = vpack.c.bf16 %v3571_v38, %v3567_v12 }
 0x337   : > { %v3670_v51 = vpack.c.bf16 %v3570_v49, %v3566_v61  ;;  %v3672_v30 = vpack.c.bf16 %v3572_v36, %v3568_v0  ;;  %v3042_v33 = vpop.f32.mrb[92].mxu0  ;;  %v3428_v23 = vpop.f32.mrb[92].mxu1 }
 0x338   : > { %v5568_v25 = vadd.f32 %v3042_v33, %v7809_v60  ;;  %v5632_v19 = vadd.f32 %v3428_v23, %v7813_v62  ;;  %v3044_v24 = vpop.f32.mrb[93].mxu0  ;;  %v3430_v21 = vpop.f32.mrb[93].mxu1 }
 0x339   : > { %v5569_v32 = vadd.f32 %v3044_v24, %v7817_v46  ;;  %v5633_v16 = vadd.f32 %v3430_v21, %v7821_v48  ;;  %v3046_v27 = vpop.f32.mrb[94].mxu0  ;;  %v3432_v35 = vpop.f32.mrb[94].mxu1  ;;  %4052 = vmatprep.mubr.bf16.mxu0 %v3670_v51  ;;  %4213 = vmatprep.mubr.bf16.mxu1 %v3672_v30 }
 0x33a   : > { %v5570_v41 = vadd.f32 %v3046_v27, %v7809_v60  ;;  %v5634_v42 = vadd.f32 %v3432_v35, %v7813_v62  ;;  %v3048_v18 = vpop.f32.mrb[95].mxu0  ;;  %v3434_v43 = vpop.f32.mrb[95].mxu1  ;;  %4053 = vmatmul.mubr.bf16.gmra.mrb[152].mxu0 %v3669_v40  ;;  %4214 = vmatmul.mubr.bf16.gmra.mrb[152].mxu1 %v3671_v47  ;;  %v3573_v45 = vmax.f32 %v5568_v25, 0.0  ;;  %v3575_v9 = vmax.f32 %v5632_v19, 0.0 }
 0x33b   : > { %v5571_v44 = vadd.f32 %v3048_v18, %v7817_v46  ;;  %v5635_v17 = vadd.f32 %v3434_v43, %v7821_v48  ;;  %v3574_v54 = vmax.f32 %v5569_v32, 0.0  ;;  %v3576_v39 = vmax.f32 %v5633_v16, 0.0 }
 0x33c   : > { %v3577_v53 = vmax.f32 %v5570_v41, 0.0  ;;  %v3579_v7 = vmax.f32 %v5634_v42, 0.0 }
 0x33d   : > { %v3578_v34 = vmax.f32 %v5571_v44, 0.0  ;;  %v3580_v56 = vmax.f32 %v5635_v17, 0.0 }
 0x33e   : > { %v3673_v55 = vpack.c.bf16 %v3577_v53, %v3573_v45  ;;  %v3675_v50 = vpack.c.bf16 %v3579_v7, %v3575_v9 }
 0x33f   : > { %v3674_v57 = vpack.c.bf16 %v3578_v34, %v3574_v54  ;;  %v3676_v52 = vpack.c.bf16 %v3580_v56, %v3576_v39  ;;  %v3052_v28 = vpop.f32.mrb[96].mxu0  ;;  %v3438_v58 = vpop.f32.mrb[96].mxu1 }
 0x340   : > { %v5572_v59 = vadd.f32 %v3052_v28, %v7809_v60  ;;  %v5636_v63 = vadd.f32 %v3438_v58, %v7813_v62  ;;  %v3054_v1 = vpop.f32.mrb[97].mxu0  ;;  %v3440_v2 = vpop.f32.mrb[97].mxu1 }
 0x341   : > { %v5573_v3 = vadd.f32 %v3054_v1, %v7817_v46  ;;  %v5637_v26 = vadd.f32 %v3440_v2, %v7821_v48  ;;  %v3056_v13 = vpop.f32.mrb[98].mxu0  ;;  %v3442_v4 = vpop.f32.mrb[98].mxu1  ;;  %4060 = vmatprep.mubr.bf16.mxu0 %v3674_v57  ;;  %4221 = vmatprep.mubr.bf16.mxu1 %v3676_v52 }
 0x342   : > { %v5574_v5 = vadd.f32 %v3056_v13, %v7809_v60  ;;  %v5638_v6 = vadd.f32 %v3442_v4, %v7813_v62  ;;  %v3058_v8 = vpop.f32.mrb[99].mxu0  ;;  %v3444_v10 = vpop.f32.mrb[99].mxu1  ;;  %4061 = vmatmul.mubr.bf16.gmra.mrb[156].mxu0 %v3673_v55  ;;  %4222 = vmatmul.mubr.bf16.gmra.mrb[156].mxu1 %v3675_v50  ;;  %v3581_v29 = vmax.f32 %v5572_v59, 0.0  ;;  %v3583_v31 = vmax.f32 %v5636_v63, 0.0 }
 0x343   : > { %v5575_v14 = vadd.f32 %v3058_v8, %v7817_v46  ;;  %v5639_v11 = vadd.f32 %v3444_v10, %v7821_v48  ;;  %v3582_v37 = vmax.f32 %v5573_v3, 0.0  ;;  %v3584_v12 = vmax.f32 %v5637_v26, 0.0 }
 0x344   : > { %v3585_v20 = vmax.f32 %v5574_v5, 0.0  ;;  %v3587_v22 = vmax.f32 %v5638_v6, 0.0 }
 0x345   : > { %v3586_v15 = vmax.f32 %v5575_v14, 0.0  ;;  %v3588_v38 = vmax.f32 %v5639_v11, 0.0 }
 0x346   : > { %v3677_v61 = vpack.c.bf16 %v3585_v20, %v3581_v29  ;;  %v3679_v0 = vpack.c.bf16 %v3587_v22, %v3583_v31 }
 0x347   : > { %v3678_v49 = vpack.c.bf16 %v3586_v15, %v3582_v37  ;;  %v3680_v36 = vpack.c.bf16 %v3588_v38, %v3584_v12  ;;  %v3062_v40 = vpop.f32.mrb[100].mxu0  ;;  %v3448_v47 = vpop.f32.mrb[100].mxu1 }
 0x348   : > { %v5576_v51 = vadd.f32 %v3062_v40, %v7809_v60  ;;  %v5640_v30 = vadd.f32 %v3448_v47, %v7813_v62  ;;  %v3064_v33 = vpop.f32.mrb[101].mxu0  ;;  %v3450_v23 = vpop.f32.mrb[101].mxu1 }
 0x349   : > { %v5577_v25 = vadd.f32 %v3064_v33, %v7817_v46  ;;  %v5641_v19 = vadd.f32 %v3450_v23, %v7821_v48  ;;  %v3066_v24 = vpop.f32.mrb[102].mxu0  ;;  %v3452_v21 = vpop.f32.mrb[102].mxu1  ;;  %4068 = vmatprep.mubr.bf16.mxu0 %v3678_v49  ;;  %4229 = vmatprep.mubr.bf16.mxu1 %v3680_v36 }
 0x34a   : > { %v5578_v32 = vadd.f32 %v3066_v24, %v7809_v60  ;;  %v5642_v16 = vadd.f32 %v3452_v21, %v7813_v62  ;;  %v3068_v27 = vpop.f32.mrb[103].mxu0  ;;  %v3454_v35 = vpop.f32.mrb[103].mxu1  ;;  %4069 = vmatmul.mubr.bf16.gmra.mrb[160].mxu0 %v3677_v61  ;;  %4230 = vmatmul.mubr.bf16.gmra.mrb[160].mxu1 %v3679_v0  ;;  %v3589_v18 = vmax.f32 %v5576_v51, 0.0  ;;  %v3591_v43 = vmax.f32 %v5640_v30, 0.0 }
 0x34b   : > { %v5579_v41 = vadd.f32 %v3068_v27, %v7817_v46  ;;  %v5643_v42 = vadd.f32 %v3454_v35, %v7821_v48  ;;  %v3590_v45 = vmax.f32 %v5577_v25, 0.0  ;;  %v3592_v9 = vmax.f32 %v5641_v19, 0.0 }
 0x34c   : > { %v3593_v44 = vmax.f32 %v5578_v32, 0.0  ;;  %v3595_v17 = vmax.f32 %v5642_v16, 0.0 }
 0x34d   : > { %v3594_v53 = vmax.f32 %v5579_v41, 0.0  ;;  %v3596_v7 = vmax.f32 %v5643_v42, 0.0 }
 0x34e   : > { %v3681_v54 = vpack.c.bf16 %v3593_v44, %v3589_v18  ;;  %v3683_v39 = vpack.c.bf16 %v3595_v17, %v3591_v43 }
 0x34f   : > { %v3682_v34 = vpack.c.bf16 %v3594_v53, %v3590_v45  ;;  %v3684_v56 = vpack.c.bf16 %v3596_v7, %v3592_v9  ;;  %v3072_v55 = vpop.f32.mrb[104].mxu0  ;;  %v3458_v50 = vpop.f32.mrb[104].mxu1 }
 0x350   : > { %v5580_v57 = vadd.f32 %v3072_v55, %v7809_v60  ;;  %v5644_v52 = vadd.f32 %v3458_v50, %v7813_v62  ;;  %v3074_v28 = vpop.f32.mrb[105].mxu0  ;;  %v3460_v58 = vpop.f32.mrb[105].mxu1 }
 0x351   : > { %v5581_v59 = vadd.f32 %v3074_v28, %v7817_v46  ;;  %v5645_v63 = vadd.f32 %v3460_v58, %v7821_v48  ;;  %v3076_v1 = vpop.f32.mrb[106].mxu0  ;;  %v3462_v2 = vpop.f32.mrb[106].mxu1  ;;  %4076 = vmatprep.mubr.bf16.mxu0 %v3682_v34  ;;  %4237 = vmatprep.mubr.bf16.mxu1 %v3684_v56 }
 0x352   : > { %v5582_v3 = vadd.f32 %v3076_v1, %v7809_v60  ;;  %v5646_v26 = vadd.f32 %v3462_v2, %v7813_v62  ;;  %v3078_v13 = vpop.f32.mrb[107].mxu0  ;;  %v3464_v4 = vpop.f32.mrb[107].mxu1  ;;  %4077 = vmatmul.mubr.bf16.gmra.mrb[164].mxu0 %v3681_v54  ;;  %4238 = vmatmul.mubr.bf16.gmra.mrb[164].mxu1 %v3683_v39  ;;  %v3597_v8 = vmax.f32 %v5580_v57, 0.0  ;;  %v3599_v10 = vmax.f32 %v5644_v52, 0.0 }
 0x353   : > { %v5583_v5 = vadd.f32 %v3078_v13, %v7817_v46  ;;  %v5647_v6 = vadd.f32 %v3464_v4, %v7821_v48  ;;  %v3598_v29 = vmax.f32 %v5581_v59, 0.0  ;;  %v3600_v31 = vmax.f32 %v5645_v63, 0.0 }
 0x354   : > { %v3601_v14 = vmax.f32 %v5582_v3, 0.0  ;;  %v3603_v11 = vmax.f32 %v5646_v26, 0.0 }
 0x355   : > { %v3602_v20 = vmax.f32 %v5583_v5, 0.0  ;;  %v3604_v22 = vmax.f32 %v5647_v6, 0.0 }
 0x356   : > { %v3685_v37 = vpack.c.bf16 %v3601_v14, %v3597_v8  ;;  %v3687_v12 = vpack.c.bf16 %v3603_v11, %v3599_v10 }
 0x357   : > { %v3686_v15 = vpack.c.bf16 %v3602_v20, %v3598_v29  ;;  %v3688_v38 = vpack.c.bf16 %v3604_v22, %v3600_v31  ;;  %v3082_v61 = vpop.f32.mrb[108].mxu0  ;;  %v3468_v0 = vpop.f32.mrb[108].mxu1 }
 0x358   : > { %v5584_v49 = vadd.f32 %v3082_v61, %v7809_v60  ;;  %v5648_v36 = vadd.f32 %v3468_v0, %v7813_v62  ;;  %v3084_v40 = vpop.f32.mrb[109].mxu0  ;;  %v3470_v47 = vpop.f32.mrb[109].mxu1 }
 0x359   : > { %v5585_v51 = vadd.f32 %v3084_v40, %v7817_v46  ;;  %v5649_v30 = vadd.f32 %v3470_v47, %v7821_v48  ;;  %v3086_v33 = vpop.f32.mrb[110].mxu0  ;;  %v3472_v23 = vpop.f32.mrb[110].mxu1  ;;  %4084 = vmatprep.mubr.bf16.mxu0 %v3686_v15  ;;  %4245 = vmatprep.mubr.bf16.mxu1 %v3688_v38 }
 0x35a   : > { %v5586_v25 = vadd.f32 %v3086_v33, %v7809_v60  ;;  %v5650_v19 = vadd.f32 %v3472_v23, %v7813_v62  ;;  %v3088_v24 = vpop.f32.mrb[111].mxu0  ;;  %v3474_v21 = vpop.f32.mrb[111].mxu1  ;;  %4085 = vmatmul.mubr.bf16.gmra.mrb[168].mxu0 %v3685_v37  ;;  %4246 = vmatmul.mubr.bf16.gmra.mrb[168].mxu1 %v3687_v12  ;;  %v3605_v27 = vmax.f32 %v5584_v49, 0.0  ;;  %v3607_v35 = vmax.f32 %v5648_v36, 0.0 }
 0x35b   : > { %v5587_v32 = vadd.f32 %v3088_v24, %v7817_v46  ;;  %v5651_v16 = vadd.f32 %v3474_v21, %v7821_v48  ;;  %v3606_v18 = vmax.f32 %v5585_v51, 0.0  ;;  %v3608_v43 = vmax.f32 %v5649_v30, 0.0 }
 0x35c   : > { %v3609_v41 = vmax.f32 %v5586_v25, 0.0  ;;  %v3611_v42 = vmax.f32 %v5650_v19, 0.0 }
 0x35d   : > { %v3610_v44 = vmax.f32 %v5587_v32, 0.0  ;;  %v3612_v17 = vmax.f32 %v5651_v16, 0.0 }
 0x35e   : > { %v3689_v45 = vpack.c.bf16 %v3609_v41, %v3605_v27  ;;  %v3691_v9 = vpack.c.bf16 %v3611_v42, %v3607_v35 }
 0x35f   : > { %v3690_v53 = vpack.c.bf16 %v3610_v44, %v3606_v18  ;;  %v3692_v7 = vpack.c.bf16 %v3612_v17, %v3608_v43  ;;  %v3092_v54 = vpop.f32.mrb[112].mxu0  ;;  %v3478_v39 = vpop.f32.mrb[112].mxu1 }
 0x360   : > { %v5588_v34 = vadd.f32 %v3092_v54, %v7809_v60  ;;  %v5652_v56 = vadd.f32 %v3478_v39, %v7813_v62  ;;  %v3094_v55 = vpop.f32.mrb[113].mxu0  ;;  %v3480_v50 = vpop.f32.mrb[113].mxu1 }
 0x361   : > { %v5589_v57 = vadd.f32 %v3094_v55, %v7817_v46  ;;  %v5653_v52 = vadd.f32 %v3480_v50, %v7821_v48  ;;  %v3096_v28 = vpop.f32.mrb[114].mxu0  ;;  %v3482_v58 = vpop.f32.mrb[114].mxu1  ;;  %4092 = vmatprep.mubr.bf16.mxu0 %v3690_v53  ;;  %4253 = vmatprep.mubr.bf16.mxu1 %v3692_v7 }
 0x362   : > { %v5590_v59 = vadd.f32 %v3096_v28, %v7809_v60  ;;  %v5654_v63 = vadd.f32 %v3482_v58, %v7813_v62  ;;  %v3098_v1 = vpop.f32.mrb[115].mxu0  ;;  %v3484_v2 = vpop.f32.mrb[115].mxu1  ;;  %4093 = vmatmul.mubr.bf16.gmra.mrb[172].mxu0 %v3689_v45  ;;  %4254 = vmatmul.mubr.bf16.gmra.mrb[172].mxu1 %v3691_v9  ;;  %v3613_v13 = vmax.f32 %v5588_v34, 0.0  ;;  %v3615_v4 = vmax.f32 %v5652_v56, 0.0 }
 0x363   : > { %v5591_v3 = vadd.f32 %v3098_v1, %v7817_v46  ;;  %v5655_v26 = vadd.f32 %v3484_v2, %v7821_v48  ;;  %v3614_v8 = vmax.f32 %v5589_v57, 0.0  ;;  %v3616_v10 = vmax.f32 %v5653_v52, 0.0 }
 0x364   : > { %v3617_v5 = vmax.f32 %v5590_v59, 0.0  ;;  %v3619_v6 = vmax.f32 %v5654_v63, 0.0 }
 0x365   : > { %v3618_v14 = vmax.f32 %v5591_v3, 0.0  ;;  %v3620_v11 = vmax.f32 %v5655_v26, 0.0 }
 0x366   : > { %v3693_v29 = vpack.c.bf16 %v3617_v5, %v3613_v13  ;;  %v3695_v31 = vpack.c.bf16 %v3619_v6, %v3615_v4 }
 0x367   : > { %v3694_v20 = vpack.c.bf16 %v3618_v14, %v3614_v8  ;;  %v3696_v22 = vpack.c.bf16 %v3620_v11, %v3616_v10  ;;  %v3102_v37 = vpop.f32.mrb[116].mxu0  ;;  %v3488_v12 = vpop.f32.mrb[116].mxu1 }
 0x368   : > { %v5592_v15 = vadd.f32 %v3102_v37, %v7809_v60  ;;  %v5656_v38 = vadd.f32 %v3488_v12, %v7813_v62  ;;  %v3104_v61 = vpop.f32.mrb[117].mxu0  ;;  %v3490_v0 = vpop.f32.mrb[117].mxu1 }
 0x369   : > { %v5593_v49 = vadd.f32 %v3104_v61, %v7817_v46  ;;  %v5657_v36 = vadd.f32 %v3490_v0, %v7821_v48  ;;  %v3106_v40 = vpop.f32.mrb[118].mxu0  ;;  %v3492_v47 = vpop.f32.mrb[118].mxu1  ;;  %4100 = vmatprep.mubr.bf16.mxu0 %v3694_v20  ;;  %4261 = vmatprep.mubr.bf16.mxu1 %v3696_v22 }
 0x36a   : > { %v5594_v51 = vadd.f32 %v3106_v40, %v7809_v60  ;;  %v5658_v30 = vadd.f32 %v3492_v47, %v7813_v62  ;;  %v3108_v33 = vpop.f32.mrb[119].mxu0  ;;  %v3494_v23 = vpop.f32.mrb[119].mxu1  ;;  %4101 = vmatmul.mubr.bf16.gmra.mrb[176].mxu0 %v3693_v29  ;;  %4262 = vmatmul.mubr.bf16.gmra.mrb[176].mxu1 %v3695_v31  ;;  %v3621_v24 = vmax.f32 %v5592_v15, 0.0  ;;  %v3623_v21 = vmax.f32 %v5656_v38, 0.0 }
 0x36b   : > { %v5595_v25 = vadd.f32 %v3108_v33, %v7817_v46  ;;  %v5659_v19 = vadd.f32 %v3494_v23, %v7821_v48  ;;  %v3622_v27 = vmax.f32 %v5593_v49, 0.0  ;;  %v3624_v35 = vmax.f32 %v5657_v36, 0.0 }
 0x36c   : > { %v3625_v32 = vmax.f32 %v5594_v51, 0.0  ;;  %v3627_v16 = vmax.f32 %v5658_v30, 0.0 }
 0x36d   : > { %v3626_v41 = vmax.f32 %v5595_v25, 0.0  ;;  %v3628_v42 = vmax.f32 %v5659_v19, 0.0 }
 0x36e   : > { %v3697_v18 = vpack.c.bf16 %v3625_v32, %v3621_v24  ;;  %v3699_v43 = vpack.c.bf16 %v3627_v16, %v3623_v21 }
 0x36f   : > { %v3698_v44 = vpack.c.bf16 %v3626_v41, %v3622_v27  ;;  %v3700_v17 = vpack.c.bf16 %v3628_v42, %v3624_v35  ;;  %v3112_v45 = vpop.f32.mrb[120].mxu0  ;;  %v3498_v9 = vpop.f32.mrb[120].mxu1  ;;  %v7951_v42 = vld [vmem:[#allocation2] ss:$0 sm:$0xff] }
 0x370   : > { %v5596_v53 = vadd.f32 %v3112_v45, %v7809_v60  ;;  %v5660_v7 = vadd.f32 %v3498_v9, %v7813_v62  ;;  %v3114_v54 = vpop.f32.mrb[121].mxu0  ;;  %v3500_v39 = vpop.f32.mrb[121].mxu1 }
 0x371   : > { %v5597_v34 = vadd.f32 %v3114_v54, %v7817_v46  ;;  %v5661_v56 = vadd.f32 %v3500_v39, %v7821_v48  ;;  %v3116_v55 = vpop.f32.mrb[122].mxu0  ;;  %v3502_v50 = vpop.f32.mrb[122].mxu1  ;;  %4108 = vmatprep.mubr.bf16.mxu0 %v3698_v44  ;;  %4269 = vmatprep.mubr.bf16.mxu1 %v3700_v17 }
 0x372   : > { %v5598_v57 = vadd.f32 %v3116_v55, %v7809_v60  ;;  %v5662_v52 = vadd.f32 %v3502_v50, %v7813_v62  ;;  %v3118_v28 = vpop.f32.mrb[123].mxu0  ;;  %v3504_v58 = vpop.f32.mrb[123].mxu1  ;;  %4109 = vmatmul.mubr.bf16.gmra.mrb[180].mxu0 %v3697_v18  ;;  %4270 = vmatmul.mubr.bf16.gmra.mrb[180].mxu1 %v3699_v43  ;;  %v3629_v1 = vmax.f32 %v5596_v53, 0.0  ;;  %v3631_v2 = vmax.f32 %v5660_v7, 0.0 }
 0x373   : > { %v5599_v59 = vadd.f32 %v3118_v28, %v7817_v46  ;;  %v5663_v63 = vadd.f32 %v3504_v58, %v7821_v48  ;;  %v3630_v13 = vmax.f32 %v5597_v34, 0.0  ;;  %v3632_v4 = vmax.f32 %v5661_v56, 0.0 }
 0x374   : > { %v3633_v3 = vmax.f32 %v5598_v57, 0.0  ;;  %v3635_v26 = vmax.f32 %v5662_v52, 0.0 }
 0x375   : > { %v3634_v5 = vmax.f32 %v5599_v59, 0.0  ;;  %v3636_v6 = vmax.f32 %v5663_v63, 0.0 }
 0x376   : > { %v3701_v8 = vpack.c.bf16 %v3633_v3, %v3629_v1  ;;  %v3703_v10 = vpack.c.bf16 %v3635_v26, %v3631_v2 }
 0x377   : > { %v3702_v14 = vpack.c.bf16 %v3634_v5, %v3630_v13  ;;  %v3704_v11 = vpack.c.bf16 %v3636_v6, %v3632_v4  ;;  %v3122_v29 = vpop.f32.mrb[124].mxu0  ;;  %v3508_v31 = vpop.f32.mrb[124].mxu1 }
 0x378   : > { %v5600_v20 = vadd.f32 %v3122_v29, %v7809_v60  ;;  %v5664_v22 = vadd.f32 %v3508_v31, %v7813_v62  ;;  %v3124_v37 = vpop.f32.mrb[125].mxu0  ;;  %v3510_v12 = vpop.f32.mrb[125].mxu1 }
 0x379   : > { %v5601_v15 = vadd.f32 %v3124_v37, %v7817_v46  ;;  %v5665_v38 = vadd.f32 %v3510_v12, %v7821_v48  ;;  %v3126_v61 = vpop.f32.mrb[126].mxu0  ;;  %v3512_v0 = vpop.f32.mrb[126].mxu1  ;;  %4116 = vmatprep.mubr.bf16.mxu0 %v3702_v14  ;;  %4277 = vmatprep.mubr.bf16.mxu1 %v3704_v11 }
 0x37a   : > { %v5602_v49 = vadd.f32 %v3126_v61, %v7809_v60  ;;  %v5666_v36 = vadd.f32 %v3512_v0, %v7813_v62  ;;  %v3128_v40 = vpop.f32.mrb[127].mxu0  ;;  %v3514_v47 = vpop.f32.mrb[127].mxu1  ;;  %4117 = vmatmul.mubr.bf16.gmra.mrb[184].mxu0 %v3701_v8  ;;  %4278 = vmatmul.mubr.bf16.gmra.mrb[184].mxu1 %v3703_v10  ;;  %v3637_v33 = vmax.f32 %v5600_v20, 0.0  ;;  %v3639_v23 = vmax.f32 %v5664_v22, 0.0 }
 0x37b   : > { %v5603_v51 = vadd.f32 %v3128_v40, %v7817_v46  ;;  %v5667_v30 = vadd.f32 %v3514_v47, %v7821_v48  ;;  %v3638_v24 = vmax.f32 %v5601_v15, 0.0  ;;  %v3640_v21 = vmax.f32 %v5665_v38, 0.0 }
 0x37c   : > { %v3641_v25 = vmax.f32 %v5602_v49, 0.0  ;;  %v3643_v19 = vmax.f32 %v5666_v36, 0.0 }
 0x37d   : > { %v3642_v32 = vmax.f32 %v5603_v51, 0.0  ;;  %v3644_v16 = vmax.f32 %v5667_v30, 0.0 }
 0x37e   : > { %v3705_v27 = vpack.c.bf16 %v3641_v25, %v3637_v33  ;;  %v3707_v60 = vpack.c.bf16 %v3643_v19, %v3639_v23 }
 0x37f   : > { %v3706_v35 = vpack.c.bf16 %v3642_v32, %v3638_v24  ;;  %v3708_v62 = vpack.c.bf16 %v3644_v16, %v3640_v21 }
 0x381   : > { %4124 = vmatprep.mubr.bf16.mxu0 %v3706_v35  ;;  %4285 = vmatprep.mubr.bf16.mxu1 %v3708_v62 }
 0x382   : > { %4125 = vmatmul.mubr.bf16.gmra.mrb[188].mxu0 %v3705_v27  ;;  %4286 = vmatmul.mubr.bf16.gmra.mrb[188].mxu1 %v3707_v60 }
 0x3dd   : > { %v5204_v41 = vpop.f32.mrb[128].mxu0  ;;  %v5316_v46 = vpop.f32.mrb[128].mxu1 }
 0x3de   : > { %v5205_v48 = vpop.f32.mrb[129].mxu0  ;;  %v5317_v18 = vpop.f32.mrb[129].mxu1 }
 0x3df   : > { %v5206_v43 = vadd.f32 %v5205_v48, %v5204_v41  ;;  %v5318_v44 = vadd.f32 %v5317_v18, %v5316_v46  ;;  %v5207_v17 = vpop.f32.mrb[130].mxu0  ;;  %v5319_v45 = vpop.f32.mrb[130].mxu1 }
 0x3e0   : > { %v5208_v9 = vpop.f32.mrb[131].mxu0  ;;  %v5320_v53 = vpop.f32.mrb[131].mxu1 }
 0x3e1   : > { %v4007_v7 = vadd.f32 %v5206_v43, %v7951_v42  ;;  %v5209_v54 = vadd.f32 %v5208_v9, %v5207_v17  ;;  %v5321_v39 = vadd.f32 %v5320_v53, %v5319_v45 }
 0x3e3   : > { %v4168_v34 = vadd.f32 %v5318_v44, %v4007_v7  ;;  %v4010_v56 = vadd.f32 %v5209_v54, %v7951_v42 }
 0x3e5   : > { %v5136_v55 = vmul.f32 -1.442695, %v4168_v34  ;;  %v4171_v50 = vadd.f32 %v5321_v39, %v4010_v56  ;;  %v5210_v57 = vpop.f32.mrb[132].mxu0  ;;  %v5322_v52 = vpop.f32.mrb[132].mxu1 }
 0x3e6   : > { %v5211_v28 = vpop.f32.mrb[133].mxu0  ;;  %v5323_v58 = vpop.f32.mrb[133].mxu1 }
 0x3e7   : > { %6352 = vpow2.f32 %v5136_v55  ;;  %v5137_v59 = vmul.f32 -1.442695, %v4171_v50  ;;  %v5212_v63 = vadd.f32 %v5211_v28, %v5210_v57  ;;  %v5324_v1 = vadd.f32 %v5323_v58, %v5322_v52  ;;  %v5213_v2 = vpop.f32.mrb[134].mxu0  ;;  %v5325_v3 = vpop.f32.mrb[134].mxu1 }
 0x3e8   : > { %v5214_v26 = vpop.f32.mrb[135].mxu0  ;;  %v5326_v13 = vpop.f32.mrb[135].mxu1 }
 0x3e9   : > { %6354 = vpow2.f32 %v5137_v59  ;;  %v4015_v4 = vadd.f32 %v5212_v63, %v7951_v42  ;;  %v5215_v5 = vadd.f32 %v5214_v26, %v5213_v2  ;;  %v5327_v6 = vadd.f32 %v5326_v13, %v5325_v3 }
 0x3eb   : > { %v4176_v8 = vadd.f32 %v5324_v1, %v4015_v4  ;;  %v4018_v10 = vadd.f32 %v5215_v5, %v7951_v42 }
 0x3ed   : > { %v5138_v14 = vmul.f32 -1.442695, %v4176_v8  ;;  %v4179_v11 = vadd.f32 %v5327_v6, %v4018_v10  ;;  %v5216_v29 = vpop.f32.mrb[136].mxu0  ;;  %v5328_v31 = vpop.f32.mrb[136].mxu1 }
 0x3ee   : > { %v5217_v20 = vpop.f32.mrb[137].mxu0  ;;  %v5329_v22 = vpop.f32.mrb[137].mxu1 }
 0x3ef   : > { %6356 = vpow2.f32 %v5138_v14  ;;  %v5139_v37 = vmul.f32 -1.442695, %v4179_v11  ;;  %v5218_v12 = vadd.f32 %v5217_v20, %v5216_v29  ;;  %v5330_v15 = vadd.f32 %v5329_v22, %v5328_v31  ;;  %v5219_v38 = vpop.f32.mrb[138].mxu0  ;;  %v5331_v61 = vpop.f32.mrb[138].mxu1 }
 0x3f0   : > { %v5220_v0 = vpop.f32.mrb[139].mxu0  ;;  %v5332_v49 = vpop.f32.mrb[139].mxu1 }
 0x3f1   : > { %v6353_v36 = vpop.eup %6352  ;;  %6358 = vpow2.f32 %v5139_v37  ;;  %v4023_v40 = vadd.f32 %v5218_v12, %v7951_v42  ;;  %v5221_v47 = vadd.f32 %v5220_v0, %v5219_v38  ;;  %v5333_v51 = vadd.f32 %v5332_v49, %v5331_v61 }
 0x3f2   : > { %v4390_v30 = vadd.f32 1.0, %v6353_v36 }
 0x3f3   : > { %v6355_v33 = vpop.eup %6354  ;;  %v4184_v23 = vadd.f32 %v5330_v15, %v4023_v40  ;;  %v4026_v25 = vadd.f32 %v5221_v47, %v7951_v42 }
 0x3f4   : > { %6360 = vrcp.f32 %v4390_v30  ;;  %v4391_v19 = vadd.f32 1.0, %v6355_v33 }
 0x3f5   : > { %v5140_v24 = vmul.f32 -1.442695, %v4184_v23  ;;  %v4187_v21 = vadd.f32 %v5333_v51, %v4026_v25  ;;  %v5222_v32 = vpop.f32.mrb[140].mxu0  ;;  %v5334_v16 = vpop.f32.mrb[140].mxu1 }
 0x3f6   : > { %6362 = vrcp.f32 %v4391_v19  ;;  %v5223_v27 = vpop.f32.mrb[141].mxu0  ;;  %v5335_v60 = vpop.f32.mrb[141].mxu1 }
 0x3f7   : > { %6364 = vpow2.f32 %v5140_v24  ;;  %v5141_v35 = vmul.f32 -1.442695, %v4187_v21  ;;  %v5224_v62 = vadd.f32 %v5223_v27, %v5222_v32  ;;  %v5336_v41 = vadd.f32 %v5335_v60, %v5334_v16  ;;  %v5225_v46 = vpop.f32.mrb[142].mxu0  ;;  %v5337_v48 = vpop.f32.mrb[142].mxu1 }
 0x3f8   : > { %v5226_v18 = vpop.f32.mrb[143].mxu0  ;;  %v5338_v43 = vpop.f32.mrb[143].mxu1 }
 0x3f9   : > { %v6357_v44 = vpop.eup %6356  ;;  %6366 = vpow2.f32 %v5141_v35  ;;  %v4031_v17 = vadd.f32 %v5224_v62, %v7951_v42  ;;  %v5227_v45 = vadd.f32 %v5226_v18, %v5225_v46  ;;  %v5339_v9 = vadd.f32 %v5338_v43, %v5337_v48 }
 0x3fa   : > { %v4392_v53 = vadd.f32 1.0, %v6357_v44 }
 0x3fb   : > { %v6359_v7 = vpop.eup %6358  ;;  %v4192_v54 = vadd.f32 %v5336_v41, %v4031_v17  ;;  %v4034_v39 = vadd.f32 %v5227_v45, %v7951_v42 }
 0x3fc   : > { %6368 = vrcp.f32 %v4392_v53  ;;  %v4393_v34 = vadd.f32 1.0, %v6359_v7 }
 0x3fd   : > { %v5142_v56 = vmul.f32 -1.442695, %v4192_v54  ;;  %v4195_v55 = vadd.f32 %v5339_v9, %v4034_v39  ;;  %v5228_v50 = vpop.f32.mrb[144].mxu0  ;;  %v5340_v57 = vpop.f32.mrb[144].mxu1 }
 0x3fe   : > { %v6361_v52 = vpop.eup %6360  ;;  %6370 = vrcp.f32 %v4393_v34  ;;  %v5229_v28 = vpop.f32.mrb[145].mxu0 }
 0x3ff   : > { %v5341_v58 = vpop.f32.mrb[145].mxu1  ;;  %4487 = vst.msk [vmem:[%s7962_s26] sm:$0xff] %vm4486_vm2, %v6361_v52  ;;  %6372 = vpow2.f32 %v5142_v56  ;;  %v5143_v59 = vmul.f32 -1.442695, %v4195_v55  ;;  %v5230_v63 = vadd.f32 %v5229_v28, %v5228_v50  ;;  %v5231_v2 = vpop.f32.mrb[146].mxu0 }
 0x400   : > { %v5342_v1 = vadd.f32 %v5341_v58, %v5340_v57  ;;  %v5343_v3 = vpop.f32.mrb[146].mxu1  ;;  %v6363_v26 = vpop.eup %6362 }
 0x401   : > { %v5232_v13 = vpop.f32.mrb[147].mxu0  ;;  %v5344_v4 = vpop.f32.mrb[147].mxu1  ;;  %4488 = vst.msk [vmem:[%s7962_s26 + $0x8] sm:$0xff] %vm4486_vm2, %v6363_v26  ;;  %6374 = vpow2.f32 %v5143_v59  ;;  %v4039_v6 = vadd.f32 %v5230_v63, %v7951_v42 }
 0x402   : > { %v6365_v5 = vpop.eup %6364  ;;  %v5233_v8 = vadd.f32 %v5232_v13, %v5231_v2  ;;  %v5345_v10 = vadd.f32 %v5344_v4, %v5343_v3 }
 0x403   : > { %v4394_v14 = vadd.f32 1.0, %v6365_v5  ;;  %v6367_v11 = vpop.eup %6366  ;;  %v4200_v29 = vadd.f32 %v5342_v1, %v4039_v6 }
 0x404   : > { %v4042_v31 = vadd.f32 %v5233_v8, %v7951_v42  ;;  %v4395_v20 = vadd.f32 1.0, %v6367_v11 }
 0x405   : > { %6376 = vrcp.f32 %v4394_v14  ;;  %v5144_v22 = vmul.f32 -1.442695, %v4200_v29  ;;  %v5234_v12 = vpop.f32.mrb[148].mxu0  ;;  %v5346_v15 = vpop.f32.mrb[148].mxu1 }
 0x406   : > { %v4203_v37 = vadd.f32 %v5345_v10, %v4042_v31  ;;  %v6369_v38 = vpop.eup %6368  ;;  %6378 = vrcp.f32 %v4395_v20  ;;  %v5235_v61 = vpop.f32.mrb[149].mxu0 }
 0x407   : > { %v5347_v0 = vpop.f32.mrb[149].mxu1  ;;  %4489 = vst.msk [vmem:[%s7962_s26 + $0x10] sm:$0xff] %vm4486_vm2, %v6369_v38  ;;  %6380 = vpow2.f32 %v5144_v22  ;;  %v5236_v36 = vadd.f32 %v5235_v61, %v5234_v12  ;;  %v5237_v47 = vpop.f32.mrb[150].mxu0 }
 0x408   : > { %v5145_v49 = vmul.f32 -1.442695, %v4203_v37  ;;  %v5348_v40 = vadd.f32 %v5347_v0, %v5346_v15  ;;  %v5349_v51 = vpop.f32.mrb[150].mxu1  ;;  %v6371_v30 = vpop.eup %6370 }
 0x409   : > { %v5238_v33 = vpop.f32.mrb[151].mxu0  ;;  %v5350_v23 = vpop.f32.mrb[151].mxu1  ;;  %4490 = vst.msk [vmem:[%s7962_s26 + $0x18] sm:$0xff] %vm4486_vm2, %v6371_v30  ;;  %v4047_v19 = vadd.f32 %v5236_v36, %v7951_v42 }
 0x40a   : > { %v6373_v25 = vpop.eup %6372  ;;  %6382 = vpow2.f32 %v5145_v49  ;;  %v5239_v24 = vadd.f32 %v5238_v33, %v5237_v47  ;;  %v5351_v21 = vadd.f32 %v5350_v23, %v5349_v51 }
 0x40b   : > { %v4396_v32 = vadd.f32 1.0, %v6373_v25  ;;  %v6375_v16 = vpop.eup %6374  ;;  %v4208_v27 = vadd.f32 %v5348_v40, %v4047_v19 }
 0x40c   : > { %v4050_v60 = vadd.f32 %v5239_v24, %v7951_v42  ;;  %v4397_v35 = vadd.f32 1.0, %v6375_v16 }
 0x40d   : > { %6384 = vrcp.f32 %v4396_v32  ;;  %v5146_v62 = vmul.f32 -1.442695, %v4208_v27  ;;  %v5240_v46 = vpop.f32.mrb[152].mxu0  ;;  %v5352_v48 = vpop.f32.mrb[152].mxu1 }
 0x40e   : > { %v4211_v41 = vadd.f32 %v5351_v21, %v4050_v60  ;;  %6386 = vrcp.f32 %v4397_v35  ;;  %v5241_v43 = vpop.f32.mrb[153].mxu0  ;;  %v5353_v44 = vpop.f32.mrb[153].mxu1 }
 0x40f   : > { %v6377_v18 = vpop.eup %6376  ;;  %6388 = vpow2.f32 %v5146_v62  ;;  %v5242_v45 = vadd.f32 %v5241_v43, %v5240_v46  ;;  %v5354_v9 = vadd.f32 %v5353_v44, %v5352_v48  ;;  %v5243_v53 = vpop.f32.mrb[154].mxu0 }
 0x410   : > { %4491 = vst.msk [vmem:[%s7962_s26 + $0x20] sm:$0xff] %vm4486_vm2, %v6377_v18  ;;  %v5147_v17 = vmul.f32 -1.442695, %v4211_v41  ;;  %v5355_v7 = vpop.f32.mrb[154].mxu1  ;;  %v6379_v54 = vpop.eup %6378 }
 0x411   : > { %v5244_v39 = vpop.f32.mrb[155].mxu0  ;;  %v5356_v34 = vpop.f32.mrb[155].mxu1  ;;  %4492 = vst.msk [vmem:[%s7962_s26 + $0x28] sm:$0xff] %vm4486_vm2, %v6379_v54  ;;  %v4055_v55 = vadd.f32 %v5242_v45, %v7951_v42 }
 0x412   : > { %v6381_v56 = vpop.eup %6380  ;;  %6390 = vpow2.f32 %v5147_v17  ;;  %v5245_v50 = vadd.f32 %v5244_v39, %v5243_v53  ;;  %v5357_v57 = vadd.f32 %v5356_v34, %v5355_v7 }
 0x413   : > { %v4398_v52 = vadd.f32 1.0, %v6381_v56  ;;  %v4216_v58 = vadd.f32 %v5354_v9, %v4055_v55 }
 0x414   : > { %v6383_v28 = vpop.eup %6382  ;;  %v4058_v59 = vadd.f32 %v5245_v50, %v7951_v42 }
 0x415   : > { %6392 = vrcp.f32 %v4398_v52  ;;  %v4399_v63 = vadd.f32 1.0, %v6383_v28  ;;  %v5148_v1 = vmul.f32 -1.442695, %v4216_v58  ;;  %v5246_v3 = vpop.f32.mrb[156].mxu0  ;;  %v5358_v26 = vpop.f32.mrb[156].mxu1 }
 0x416   : > { %v4219_v2 = vadd.f32 %v5357_v57, %v4058_v59  ;;  %v5247_v4 = vpop.f32.mrb[157].mxu0  ;;  %v5359_v5 = vpop.f32.mrb[157].mxu1 }
 0x417   : > { %v6385_v13 = vpop.eup %6384  ;;  %6394 = vrcp.f32 %v4399_v63  ;;  %v5248_v8 = vadd.f32 %v5247_v4, %v5246_v3  ;;  %v5360_v10 = vadd.f32 %v5359_v5, %v5358_v26  ;;  %v5249_v14 = vpop.f32.mrb[158].mxu0 }
 0x418   : > { %4493 = vst.msk [vmem:[%s7962_s26 + $0x30] sm:$0xff] %vm4486_vm2, %v6385_v13  ;;  %6396 = vpow2.f32 %v5148_v1  ;;  %v5149_v6 = vmul.f32 -1.442695, %v4219_v2  ;;  %v5361_v11 = vpop.f32.mrb[158].mxu1  ;;  %v6387_v29 = vpop.eup %6386 }
 0x419   : > { %v5250_v31 = vpop.f32.mrb[159].mxu0  ;;  %v5362_v20 = vpop.f32.mrb[159].mxu1  ;;  %4494 = vst.msk [vmem:[%s7962_s26 + $0x38] sm:$0xff] %vm4486_vm2, %v6387_v29  ;;  %v4063_v37 = vadd.f32 %v5248_v8, %v7951_v42 }
 0x41a   : > { %v6389_v22 = vpop.eup %6388  ;;  %6398 = vpow2.f32 %v5149_v6  ;;  %v5251_v12 = vadd.f32 %v5250_v31, %v5249_v14  ;;  %v5363_v15 = vadd.f32 %v5362_v20, %v5361_v11 }
 0x41b   : > { %v4400_v38 = vadd.f32 1.0, %v6389_v22  ;;  %v4224_v0 = vadd.f32 %v5360_v10, %v4063_v37 }
 0x41c   : > { %v6391_v61 = vpop.eup %6390  ;;  %v4066_v49 = vadd.f32 %v5251_v12, %v7951_v42 }
 0x41d   : > { %6400 = vrcp.f32 %v4400_v38  ;;  %v4401_v36 = vadd.f32 1.0, %v6391_v61  ;;  %v5150_v40 = vmul.f32 -1.442695, %v4224_v0  ;;  %v5252_v51 = vpop.f32.mrb[160].mxu0  ;;  %v5364_v30 = vpop.f32.mrb[160].mxu1 }
 0x41e   : > { %v4227_v47 = vadd.f32 %v5363_v15, %v4066_v49  ;;  %v5253_v23 = vpop.f32.mrb[161].mxu0  ;;  %v5365_v25 = vpop.f32.mrb[161].mxu1 }
 0x41f   : > { %v6393_v33 = vpop.eup %6392  ;;  %6402 = vrcp.f32 %v4401_v36  ;;  %v5254_v24 = vadd.f32 %v5253_v23, %v5252_v51  ;;  %v5366_v21 = vadd.f32 %v5365_v25, %v5364_v30  ;;  %v5255_v32 = vpop.f32.mrb[162].mxu0 }
 0x420   : > { %4495 = vst.msk [vmem:[%s7962_s26 + $0x40] sm:$0xff] %vm4486_vm2, %v6393_v33  ;;  %6404 = vpow2.f32 %v5150_v40  ;;  %v5151_v19 = vmul.f32 -1.442695, %v4227_v47  ;;  %v5367_v16 = vpop.f32.mrb[162].mxu1  ;;  %v5256_v60 = vpop.f32.mrb[163].mxu0 }
 0x421   : > { %v6395_v27 = vpop.eup %6394  ;;  %v5368_v35 = vpop.f32.mrb[163].mxu1  ;;  %v4071_v41 = vadd.f32 %v5254_v24, %v7951_v42  ;;  %v5257_v46 = vadd.f32 %v5256_v60, %v5255_v32 }
 0x422   : > { %v6397_v62 = vpop.eup %6396  ;;  %4496 = vst.msk [vmem:[%s7962_s26 + $0x48] sm:$0xff] %vm4486_vm2, %v6395_v27  ;;  %6406 = vpow2.f32 %v5151_v19  ;;  %v5369_v48 = vadd.f32 %v5368_v35, %v5367_v16 }
 0x423   : > { %v4402_v18 = vadd.f32 1.0, %v6397_v62  ;;  %v4232_v44 = vadd.f32 %v5366_v21, %v4071_v41  ;;  %v4074_v17 = vadd.f32 %v5257_v46, %v7951_v42 }
 0x424   : > { %v6399_v43 = vpop.eup %6398 }
 0x425   : > { %6408 = vrcp.f32 %v4402_v18  ;;  %v4403_v45 = vadd.f32 1.0, %v6399_v43  ;;  %v5152_v9 = vmul.f32 -1.442695, %v4232_v44  ;;  %v4235_v53 = vadd.f32 %v5369_v48, %v4074_v17  ;;  %v5258_v7 = vpop.f32.mrb[164].mxu0  ;;  %v5370_v54 = vpop.f32.mrb[164].mxu1 }
 0x426   : > { %v5259_v34 = vpop.f32.mrb[165].mxu0  ;;  %v5371_v56 = vpop.f32.mrb[165].mxu1 }
 0x427   : > { %v6401_v39 = vpop.eup %6400  ;;  %6410 = vrcp.f32 %v4403_v45  ;;  %v5153_v55 = vmul.f32 -1.442695, %v4235_v53  ;;  %v5260_v50 = vadd.f32 %v5259_v34, %v5258_v7  ;;  %v5372_v57 = vadd.f32 %v5371_v56, %v5370_v54  ;;  %v5261_v52 = vpop.f32.mrb[166].mxu0 }
 0x428   : > { %4497 = vst.msk [vmem:[%s7962_s26 + $0x50] sm:$0xff] %vm4486_vm2, %v6401_v39  ;;  %6412 = vpow2.f32 %v5152_v9  ;;  %v5373_v28 = vpop.f32.mrb[166].mxu1  ;;  %v5262_v59 = vpop.f32.mrb[167].mxu0 }
 0x429   : > { %v6403_v58 = vpop.eup %6402  ;;  %v5374_v63 = vpop.f32.mrb[167].mxu1  ;;  %6414 = vpow2.f32 %v5153_v55  ;;  %v4079_v2 = vadd.f32 %v5260_v50, %v7951_v42  ;;  %v5263_v3 = vadd.f32 %v5262_v59, %v5261_v52 }
 0x42a   : > { %v6405_v1 = vpop.eup %6404  ;;  %4498 = vst.msk [vmem:[%s7962_s26 + $0x58] sm:$0xff] %vm4486_vm2, %v6403_v58  ;;  %v5375_v26 = vadd.f32 %v5374_v63, %v5373_v28 }
 0x42b   : > { %v4404_v13 = vadd.f32 1.0, %v6405_v1  ;;  %v4240_v5 = vadd.f32 %v5372_v57, %v4079_v2  ;;  %v4082_v6 = vadd.f32 %v5263_v3, %v7951_v42 }
 0x42c   : > { %v6407_v4 = vpop.eup %6406 }
 0x42d   : > { %6416 = vrcp.f32 %v4404_v13  ;;  %v4405_v8 = vadd.f32 1.0, %v6407_v4  ;;  %v5154_v10 = vmul.f32 -1.442695, %v4240_v5  ;;  %v4243_v14 = vadd.f32 %v5375_v26, %v4082_v6  ;;  %v5264_v11 = vpop.f32.mrb[168].mxu0  ;;  %v5376_v29 = vpop.f32.mrb[168].mxu1 }
 0x42e   : > { %v5265_v20 = vpop.f32.mrb[169].mxu0  ;;  %v5377_v22 = vpop.f32.mrb[169].mxu1 }
 0x42f   : > { %v6409_v31 = vpop.eup %6408  ;;  %6418 = vrcp.f32 %v4405_v8  ;;  %v5155_v37 = vmul.f32 -1.442695, %v4243_v14  ;;  %v5266_v12 = vadd.f32 %v5265_v20, %v5264_v11  ;;  %v5378_v15 = vadd.f32 %v5377_v22, %v5376_v29  ;;  %v5267_v38 = vpop.f32.mrb[170].mxu0 }
 0x430   : > { %4499 = vst.msk [vmem:[%s7962_s26 + $0x60] sm:$0xff] %vm4486_vm2, %v6409_v31  ;;  %6420 = vpow2.f32 %v5154_v10  ;;  %v5379_v61 = vpop.f32.mrb[170].mxu1  ;;  %v5268_v49 = vpop.f32.mrb[171].mxu0 }
 0x431   : > { %v6411_v0 = vpop.eup %6410  ;;  %v5380_v36 = vpop.f32.mrb[171].mxu1  ;;  %6422 = vpow2.f32 %v5155_v37  ;;  %v4087_v47 = vadd.f32 %v5266_v12, %v7951_v42  ;;  %v5269_v51 = vadd.f32 %v5268_v49, %v5267_v38 }
 0x432   : > { %v6413_v40 = vpop.eup %6412  ;;  %4500 = vst.msk [vmem:[%s7962_s26 + $0x68] sm:$0xff] %vm4486_vm2, %v6411_v0  ;;  %v5381_v30 = vadd.f32 %v5380_v36, %v5379_v61 }
 0x433   : > { %v4406_v33 = vadd.f32 1.0, %v6413_v40  ;;  %v6415_v23 = vpop.eup %6414  ;;  %v4248_v25 = vadd.f32 %v5378_v15, %v4087_v47  ;;  %v4090_v19 = vadd.f32 %v5269_v51, %v7951_v42 }
 0x434   : > { %v4407_v24 = vadd.f32 1.0, %v6415_v23 }
 0x435   : > { %6424 = vrcp.f32 %v4406_v33  ;;  %v5156_v21 = vmul.f32 -1.442695, %v4248_v25  ;;  %v4251_v32 = vadd.f32 %v5381_v30, %v4090_v19  ;;  %v5270_v16 = vpop.f32.mrb[172].mxu0  ;;  %v5382_v27 = vpop.f32.mrb[172].mxu1 }
 0x436   : > { %6426 = vrcp.f32 %v4407_v24  ;;  %v5271_v35 = vpop.f32.mrb[173].mxu0  ;;  %v5383_v62 = vpop.f32.mrb[173].mxu1 }
 0x437   : > { %v6417_v60 = vpop.eup %6416  ;;  %6428 = vpow2.f32 %v5156_v21  ;;  %v5157_v41 = vmul.f32 -1.442695, %v4251_v32  ;;  %v5272_v46 = vadd.f32 %v5271_v35, %v5270_v16  ;;  %v5384_v48 = vadd.f32 %v5383_v62, %v5382_v27  ;;  %v5273_v18 = vpop.f32.mrb[174].mxu0 }
 0x438   : > { %4501 = vst.msk [vmem:[%s7962_s26 + $0x70] sm:$0xff] %vm4486_vm2, %v6417_v60  ;;  %v5385_v43 = vpop.f32.mrb[174].mxu1  ;;  %v5274_v17 = vpop.f32.mrb[175].mxu0 }
 0x439   : > { %v6419_v44 = vpop.eup %6418  ;;  %v5386_v45 = vpop.f32.mrb[175].mxu1  ;;  %6430 = vpow2.f32 %v5157_v41  ;;  %v4095_v53 = vadd.f32 %v5272_v46, %v7951_v42  ;;  %v5275_v7 = vadd.f32 %v5274_v17, %v5273_v18 }
 0x43a   : > { %v6421_v9 = vpop.eup %6420  ;;  %4502 = vst.msk [vmem:[%s7962_s26 + $0x78] sm:$0xff] %vm4486_vm2, %v6419_v44  ;;  %v5387_v54 = vadd.f32 %v5386_v45, %v5385_v43 }
 0x43b   : > { %v4408_v39 = vadd.f32 1.0, %v6421_v9  ;;  %v6423_v34 = vpop.eup %6422  ;;  %v4256_v56 = vadd.f32 %v5384_v48, %v4095_v53  ;;  %v4098_v55 = vadd.f32 %v5275_v7, %v7951_v42 }
 0x43c   : > { %v4409_v50 = vadd.f32 1.0, %v6423_v34 }
 0x43d   : > { %6432 = vrcp.f32 %v4408_v39  ;;  %v5158_v57 = vmul.f32 -1.442695, %v4256_v56  ;;  %v4259_v52 = vadd.f32 %v5387_v54, %v4098_v55  ;;  %v5276_v28 = vpop.f32.mrb[176].mxu0  ;;  %v5388_v58 = vpop.f32.mrb[176].mxu1 }
 0x43e   : > { %6434 = vrcp.f32 %v4409_v50  ;;  %v5277_v63 = vpop.f32.mrb[177].mxu0  ;;  %v5389_v1 = vpop.f32.mrb[177].mxu1 }
 0x43f   : > { %v6425_v59 = vpop.eup %6424  ;;  %6436 = vpow2.f32 %v5158_v57  ;;  %v5159_v2 = vmul.f32 -1.442695, %v4259_v52  ;;  %v5278_v3 = vadd.f32 %v5277_v63, %v5276_v28  ;;  %v5390_v26 = vadd.f32 %v5389_v1, %v5388_v58  ;;  %v5279_v13 = vpop.f32.mrb[178].mxu0 }
 0x440   : > { %4503 = vst.msk [vmem:[%s7962_s26 + $0x80] sm:$0xff] %vm4486_vm2, %v6425_v59  ;;  %v5391_v4 = vpop.f32.mrb[178].mxu1  ;;  %v6427_v5 = vpop.eup %6426 }
 0x441   : > { %v5280_v6 = vpop.f32.mrb[179].mxu0  ;;  %v5392_v8 = vpop.f32.mrb[179].mxu1  ;;  %4504 = vst.msk [vmem:[%s7962_s26 + $0x88] sm:$0xff] %vm4486_vm2, %v6427_v5  ;;  %6438 = vpow2.f32 %v5159_v2  ;;  %v4103_v14 = vadd.f32 %v5278_v3, %v7951_v42 }
 0x442   : > { %v6429_v10 = vpop.eup %6428  ;;  %v5281_v11 = vadd.f32 %v5280_v6, %v5279_v13  ;;  %v5393_v29 = vadd.f32 %v5392_v8, %v5391_v4 }
 0x443   : > { %v4410_v31 = vadd.f32 1.0, %v6429_v10  ;;  %v6431_v20 = vpop.eup %6430  ;;  %v4264_v22 = vadd.f32 %v5390_v26, %v4103_v14 }
 0x444   : > { %v4106_v37 = vadd.f32 %v5281_v11, %v7951_v42  ;;  %v4411_v12 = vadd.f32 1.0, %v6431_v20 }
 0x445   : > { %6440 = vrcp.f32 %v4410_v31  ;;  %v5160_v15 = vmul.f32 -1.442695, %v4264_v22  ;;  %v5282_v61 = vpop.f32.mrb[180].mxu0  ;;  %v5394_v0 = vpop.f32.mrb[180].mxu1 }
 0x446   : > { %v4267_v38 = vadd.f32 %v5393_v29, %v4106_v37  ;;  %6442 = vrcp.f32 %v4411_v12  ;;  %v5283_v36 = vpop.f32.mrb[181].mxu0  ;;  %v5395_v40 = vpop.f32.mrb[181].mxu1 }
 0x447   : > { %v6433_v49 = vpop.eup %6432  ;;  %6444 = vpow2.f32 %v5160_v15  ;;  %v5284_v51 = vadd.f32 %v5283_v36, %v5282_v61  ;;  %v5396_v30 = vadd.f32 %v5395_v40, %v5394_v0  ;;  %v5285_v33 = vpop.f32.mrb[182].mxu0 }
 0x448   : > { %4505 = vst.msk [vmem:[%s7962_s26 + $0x90] sm:$0xff] %vm4486_vm2, %v6433_v49  ;;  %v5161_v47 = vmul.f32 -1.442695, %v4267_v38  ;;  %v5397_v23 = vpop.f32.mrb[182].mxu1  ;;  %v6435_v25 = vpop.eup %6434 }
 0x449   : > { %v5286_v19 = vpop.f32.mrb[183].mxu0  ;;  %v5398_v24 = vpop.f32.mrb[183].mxu1  ;;  %4506 = vst.msk [vmem:[%s7962_s26 + $0x98] sm:$0xff] %vm4486_vm2, %v6435_v25  ;;  %v4111_v32 = vadd.f32 %v5284_v51, %v7951_v42 }
 0x44a   : > { %v6437_v21 = vpop.eup %6436  ;;  %6446 = vpow2.f32 %v5161_v47  ;;  %v5287_v16 = vadd.f32 %v5286_v19, %v5285_v33  ;;  %v5399_v27 = vadd.f32 %v5398_v24, %v5397_v23 }
 0x44b   : > { %v4412_v60 = vadd.f32 1.0, %v6437_v21  ;;  %v6439_v35 = vpop.eup %6438  ;;  %v4272_v62 = vadd.f32 %v5396_v30, %v4111_v32 }
 0x44c   : > { %v4114_v41 = vadd.f32 %v5287_v16, %v7951_v42  ;;  %v4413_v46 = vadd.f32 1.0, %v6439_v35 }
 0x44d   : > { %6448 = vrcp.f32 %v4412_v60  ;;  %v5162_v48 = vmul.f32 -1.442695, %v4272_v62  ;;  %v5288_v43 = vpop.f32.mrb[184].mxu0  ;;  %v5400_v44 = vpop.f32.mrb[184].mxu1 }
 0x44e   : > { %v4275_v18 = vadd.f32 %v5399_v27, %v4114_v41  ;;  %6450 = vrcp.f32 %v4413_v46  ;;  %v5289_v45 = vpop.f32.mrb[185].mxu0  ;;  %v5401_v9 = vpop.f32.mrb[185].mxu1 }
 0x44f   : > { %v6441_v17 = vpop.eup %6440  ;;  %6452 = vpow2.f32 %v5162_v48  ;;  %v5290_v7 = vadd.f32 %v5289_v45, %v5288_v43  ;;  %v5402_v54 = vadd.f32 %v5401_v9, %v5400_v44  ;;  %v5291_v39 = vpop.f32.mrb[186].mxu0 }
 0x450   : > { %4507 = vst.msk [vmem:[%s7962_s26 + $0xa0] sm:$0xff] %vm4486_vm2, %v6441_v17  ;;  %v5163_v53 = vmul.f32 -1.442695, %v4275_v18  ;;  %v5403_v34 = vpop.f32.mrb[186].mxu1  ;;  %v6443_v56 = vpop.eup %6442 }
 0x451   : > { %v5292_v55 = vpop.f32.mrb[187].mxu0  ;;  %v5404_v50 = vpop.f32.mrb[187].mxu1  ;;  %4508 = vst.msk [vmem:[%s7962_s26 + $0xa8] sm:$0xff] %vm4486_vm2, %v6443_v56  ;;  %v4119_v52 = vadd.f32 %v5290_v7, %v7951_v42 }
 0x452   : > { %v6445_v57 = vpop.eup %6444  ;;  %6454 = vpow2.f32 %v5163_v53  ;;  %v5293_v28 = vadd.f32 %v5292_v55, %v5291_v39  ;;  %v5405_v58 = vadd.f32 %v5404_v50, %v5403_v34 }
 0x453   : > { %v4414_v59 = vadd.f32 1.0, %v6445_v57  ;;  %v4280_v1 = vadd.f32 %v5402_v54, %v4119_v52 }
 0x454   : > { %v6447_v63 = vpop.eup %6446  ;;  %v4122_v2 = vadd.f32 %v5293_v28, %v7951_v42 }
 0x455   : > { %6456 = vrcp.f32 %v4414_v59  ;;  %v4415_v3 = vadd.f32 1.0, %v6447_v63  ;;  %v5164_v26 = vmul.f32 -1.442695, %v4280_v1  ;;  %v5294_v4 = vpop.f32.mrb[188].mxu0  ;;  %v5406_v5 = vpop.f32.mrb[188].mxu1 }
 0x456   : > { %v4283_v13 = vadd.f32 %v5405_v58, %v4122_v2  ;;  %v5295_v8 = vpop.f32.mrb[189].mxu0  ;;  %v5407_v10 = vpop.f32.mrb[189].mxu1 }
 0x457   : > { %v6449_v6 = vpop.eup %6448  ;;  %6458 = vrcp.f32 %v4415_v3  ;;  %v5296_v11 = vadd.f32 %v5295_v8, %v5294_v4  ;;  %v5408_v29 = vadd.f32 %v5407_v10, %v5406_v5  ;;  %v5297_v31 = vpop.f32.mrb[190].mxu0 }
 0x458   : > { %4509 = vst.msk [vmem:[%s7962_s26 + $0xb0] sm:$0xff] %vm4486_vm2, %v6449_v6  ;;  %6460 = vpow2.f32 %v5164_v26  ;;  %v5165_v14 = vmul.f32 -1.442695, %v4283_v13  ;;  %v5409_v20 = vpop.f32.mrb[190].mxu1  ;;  %v6451_v22 = vpop.eup %6450 }
 0x459   : > { %v5298_v37 = vpop.f32.mrb[191].mxu0  ;;  %v5410_v12 = vpop.f32.mrb[191].mxu1  ;;  %4510 = vst.msk [vmem:[%s7962_s26 + $0xb8] sm:$0xff] %vm4486_vm2, %v6451_v22  ;;  %v4127_v38 = vadd.f32 %v5296_v11, %v7951_v42 }
 0x45a   : > { %v6453_v15 = vpop.eup %6452  ;;  %6462 = vpow2.f32 %v5165_v14  ;;  %v5299_v61 = vadd.f32 %v5298_v37, %v5297_v31  ;;  %v5411_v0 = vadd.f32 %v5410_v12, %v5409_v20 }
 0x45b   : > { %v4416_v49 = vadd.f32 1.0, %v6453_v15  ;;  %v4288_v40 = vadd.f32 %v5408_v29, %v4127_v38 }
 0x45c   : > { %v6455_v36 = vpop.eup %6454  ;;  %v4130_v47 = vadd.f32 %v5299_v61, %v7951_v42 }
 0x45d   : > { %6464 = vrcp.f32 %v4416_v49  ;;  %v4417_v51 = vadd.f32 1.0, %v6455_v36  ;;  %v5166_v30 = vmul.f32 -1.442695, %v4288_v40 }
 0x45e   : > { %v4291_v33 = vadd.f32 %v5411_v0, %v4130_v47 }
 0x45f   : > { %v6457_v23 = vpop.eup %6456  ;;  %6466 = vrcp.f32 %v4417_v51 }
 0x460   : > { %4511 = vst.msk [vmem:[%s7962_s26 + $0xc0] sm:$0xff] %vm4486_vm2, %v6457_v23  ;;  %6468 = vpow2.f32 %v5166_v30  ;;  %v5167_v25 = vmul.f32 -1.442695, %v4291_v33 }
 0x461   : > { %v6459_v19 = vpop.eup %6458 }
 0x462   : > { %v6461_v24 = vpop.eup %6460  ;;  %4512 = vst.msk [vmem:[%s7962_s26 + $0xc8] sm:$0xff] %vm4486_vm2, %v6459_v19  ;;  %6470 = vpow2.f32 %v5167_v25 }
 0x463   : > { %v4418_v21 = vadd.f32 1.0, %v6461_v24 }
 0x464   : > { %v6463_v42 = vpop.eup %6462 }
 0x465   : > { %6472 = vrcp.f32 %v4418_v21  ;;  %v4419_v32 = vadd.f32 1.0, %v6463_v42 }
 0x467   : > { %v6465_v16 = vpop.eup %6464  ;;  %6474 = vrcp.f32 %v4419_v32 }
 0x468   : > { %4513 = vst.msk [vmem:[%s7962_s26 + $0xd0] sm:$0xff] %vm4486_vm2, %v6465_v16 }
 0x469   : > { %v6467_v27 = vpop.eup %6466 }
 0x46a   : > { %v6469_v60 = vpop.eup %6468  ;;  %4514 = vst.msk [vmem:[%s7962_s26 + $0xd8] sm:$0xff] %vm4486_vm2, %v6467_v27 }
 0x46b   : > { %v4420_v35 = vadd.f32 1.0, %v6469_v60 }
 0x46c   : > { %v6471_v62 = vpop.eup %6470 }
 0x46d   : > { %6476 = vrcp.f32 %v4420_v35  ;;  %v4421_v41 = vadd.f32 1.0, %v6471_v62 }
 0x46f   : > { %v6473_v46 = vpop.eup %6472  ;;  %6478 = vrcp.f32 %v4421_v41 }
 0x470   : > { %4515 = vst.msk [vmem:[%s7962_s26 + $0xe0] sm:$0xff] %vm4486_vm2, %v6473_v46 }
 0x471   : > { %v6475_v48 = vpop.eup %6474 }
 0x472   : > { %4516 = vst.msk [vmem:[%s7962_s26 + $0xe8] sm:$0xff] %vm4486_vm2, %v6475_v48 }
 0x474   : > { %4525 = sbr.rel (!%p6637_p4) target bundleno = 1203 (0x4b3), region = 52 }
 0x477   : > { %v6477_v18 = vpop.eup %6476 }
 0x478   : > { %4517 = vst.msk [vmem:[%s7962_s26 + $0xf0] sm:$0xff] %vm4486_vm2, %v6477_v18 }
 0x479   : > { %v6479_v43 = vpop.eup %6478 }
 0x47a   : > { %4518 = vst.msk [vmem:[%s7962_s26 + $0xf8] sm:$0xff] %vm4486_vm2, %v6479_v43 }
 0x47b   : > { %s8209_s30 = smov (!%p4528_p8, %s4527_s30), 32 }
 0x47c   : > { %s5170_s14 = sshll.u32 %s8209_s30, 7 }
 0x47d   : > { %p5173_p9 = scmp.eq.s32.totalorder %s5170_s14, 0 }
 0x47e   : > { %s8065_s17 = sshrl.u32 (!%p5173_p9), %s8209_s30, 5 }
 0x47f   : > { %4536 = sbr.rel (%p5173_p9) target bundleno = 1203 (0x4b3), region = 56  ;;  %p5174_p10 = scmp.le.s32.totalorder (!%p5173_p9), %s8065_s17, 0 }
 0x486   : > { %4814 = sbr.rel (%p5174_p10) target bundleno = 1182 (0x49e), region = 132  ;;  %s8200_s6 = smov (!%p5174_p10), %s8059_s13 }
 0x487   : > { %s8201_s10 = smov (!%p5174_p10), %s7962_s26  ;;  %s8074_s15 = smov (!%p5174_p10), 0  }
 0x488   : > { %s8076_s18 = smov (!%p5174_p10), 0  }
 0x48d LB: >> { %v4660_v44 = vld [vmem:[%s6542_s10] sm:$0xff]  ;;  %v4662_v17 = vld [vmem:[%s6542_s10 + $0x8] sm:$0xff]  ;;  %v4664_v45 = vld [vmem:[%s6542_s10 + $0x10] sm:$0xff]  ;;  %s4724_s19 = sadd.s32 1, %s6546_s15  ;;  %s4654_s18 = sadd.s32 1, %s6550_s18   ;;  %s6550_s18 = sphi %s8076_s18, %s4654_s18   ;;  %s6546_s15 = sphi %s8074_s15, %s8204_s15   ;;  %s6542_s10 = sphi %s8201_s10, %s8203_s10   ;;  %s6538_s6 = sphi %s8200_s6, %s8202_s6  }
 0x48e   : >> { %4661 = vst [vmem:[%s6538_s6] sm:$0xff] %v4660_v44  ;;  %4663 = vst [vmem:[%s6538_s6 + $0x8] sm:$0xff] %v4662_v17  ;;  %v4666_v9 = vld [vmem:[%s6542_s10 + $0x18] sm:$0xff]  ;;  %v4668_v53 = vld [vmem:[%s6542_s10 + $0x20] sm:$0xff]  ;;  %p4725_p11 = scmp.ge.s32.totalorder %s4724_s19, %s8065_s17  ;;  %p4653_p12 = scmp.ge.s32.totalorder %s4654_s18, %s8065_s17 }
 0x48f   : >> { %4665 = vst [vmem:[%s6538_s6 + $0x10] sm:$0xff] %v4664_v45  ;;  %v4670_v7 = vld [vmem:[%s6542_s10 + $0x28] sm:$0xff]  ;;  %4667 = vst [vmem:[%s6538_s6 + $0x18] sm:$0xff] %v4666_v9  ;;  %v4672_v54 = vld [vmem:[%s6542_s10 + $0x30] sm:$0xff] }
 0x490   : >> { %4669 = vst [vmem:[%s6538_s6 + $0x20] sm:$0xff] %v4668_v53  ;;  %4671 = vst [vmem:[%s6538_s6 + $0x28] sm:$0xff] %v4670_v7  ;;  %v4674_v39 = vld [vmem:[%s6542_s10 + $0x38] sm:$0xff]  ;;  %v4676_v34 = vld [vmem:[%s6542_s10 + $0x40] sm:$0xff]  ;;  %s8211_s19 = smov (%p4725_p11, %s4724_s19), 0 }
 0x491   : >> { %4673 = vst [vmem:[%s6538_s6 + $0x30] sm:$0xff] %v4672_v54  ;;  %4675 = vst [vmem:[%s6538_s6 + $0x38] sm:$0xff] %v4674_v39  ;;  %v4678_v56 = vld [vmem:[%s6542_s10 + $0x48] sm:$0xff]  ;;  %v4680_v55 = vld [vmem:[%s6542_s10 + $0x50] sm:$0xff]  ;;  %s5175_s21 = sshll.u32 %s8211_s19, 8  ;;  %s8204_s15 = smov %s8211_s19 }
 0x492   : >> { %4677 = vst [vmem:[%s6538_s6 + $0x40] sm:$0xff] %v4676_v34  ;;  %v4682_v50 = vld [vmem:[%s6542_s10 + $0x58] sm:$0xff]  ;;  %4679 = vst [vmem:[%s6538_s6 + $0x48] sm:$0xff] %v4678_v56  ;;  %v4684_v57 = vld [vmem:[%s6542_s10 + $0x60] sm:$0xff]  ;;  %s8132_s22 = scalar_lea.vmem %s7962_s26, %s5175_s21 [#allocation3]   ;;  %s4730_s23 = scalar_lea.vmem %s8059_s13, %s5175_s21  }
 0x493   : >> { %4681 = vst [vmem:[%s6538_s6 + $0x50] sm:$0xff] %v4680_v55  ;;  %4683 = vst [vmem:[%s6538_s6 + $0x58] sm:$0xff] %v4682_v50  ;;  %v4686_v52 = vld [vmem:[%s6542_s10 + $0x68] sm:$0xff]  ;;  %v4688_v28 = vld [vmem:[%s6542_s10 + $0x70] sm:$0xff] }
 0x494   : >> { %4685 = vst [vmem:[%s6538_s6 + $0x60] sm:$0xff] %v4684_v57  ;;  %4687 = vst [vmem:[%s6538_s6 + $0x68] sm:$0xff] %v4686_v52  ;;  %v4690_v58 = vld [vmem:[%s6542_s10 + $0x78] sm:$0xff]  ;;  %v4692_v59 = vld [vmem:[%s6542_s10 + $0x80] sm:$0xff] }
 0x495   : >> { %4689 = vst [vmem:[%s6538_s6 + $0x70] sm:$0xff] %v4688_v28  ;;  %v4694_v63 = vld [vmem:[%s6542_s10 + $0x88] sm:$0xff]  ;;  %4691 = vst [vmem:[%s6538_s6 + $0x78] sm:$0xff] %v4690_v58  ;;  %v4696_v1 = vld [vmem:[%s6542_s10 + $0x90] sm:$0xff] }
 0x496   : >> { %4693 = vst [vmem:[%s6538_s6 + $0x80] sm:$0xff] %v4692_v59  ;;  %4695 = vst [vmem:[%s6538_s6 + $0x88] sm:$0xff] %v4694_v63  ;;  %v4698_v2 = vld [vmem:[%s6542_s10 + $0x98] sm:$0xff]  ;;  %v4700_v3 = vld [vmem:[%s6542_s10 + $0xa0] sm:$0xff] }
 0x497   : >> { %4697 = vst [vmem:[%s6538_s6 + $0x90] sm:$0xff] %v4696_v1  ;;  %4699 = vst [vmem:[%s6538_s6 + $0x98] sm:$0xff] %v4698_v2  ;;  %v4702_v26 = vld [vmem:[%s6542_s10 + $0xa8] sm:$0xff]  ;;  %v4704_v13 = vld [vmem:[%s6542_s10 + $0xb0] sm:$0xff]  ;;  %4656 = sbr.rel (!%p4653_p12) target bundleno = 1165 (0x48d), region = 138 }
 0x498   : >> { %4701 = vst [vmem:[%s6538_s6 + $0xa0] sm:$0xff] %v4700_v3  ;;  %v4706_v4 = vld [vmem:[%s6542_s10 + $0xb8] sm:$0xff]  ;;  %4703 = vst [vmem:[%s6538_s6 + $0xa8] sm:$0xff] %v4702_v26  ;;  %v4708_v5 = vld [vmem:[%s6542_s10 + $0xc0] sm:$0xff] }
 0x499   : >> { %4705 = vst [vmem:[%s6538_s6 + $0xb0] sm:$0xff] %v4704_v13  ;;  %4707 = vst [vmem:[%s6538_s6 + $0xb8] sm:$0xff] %v4706_v4  ;;  %v4710_v6 = vld [vmem:[%s6542_s10 + $0xc8] sm:$0xff]  ;;  %v4712_v8 = vld [vmem:[%s6542_s10 + $0xd0] sm:$0xff] }
 0x49a   : >> { %4709 = vst [vmem:[%s6538_s6 + $0xc0] sm:$0xff] %v4708_v5  ;;  %4711 = vst [vmem:[%s6538_s6 + $0xc8] sm:$0xff] %v4710_v6  ;;  %v4714_v10 = vld [vmem:[%s6542_s10 + $0xd8] sm:$0xff]  ;;  %v4716_v14 = vld [vmem:[%s6542_s10 + $0xe0] sm:$0xff] }
 0x49b   : >> { %4713 = vst [vmem:[%s6538_s6 + $0xd0] sm:$0xff] %v4712_v8  ;;  %v4718_v11 = vld [vmem:[%s6542_s10 + $0xe8] sm:$0xff]  ;;  %4715 = vst [vmem:[%s6538_s6 + $0xd8] sm:$0xff] %v4714_v10  ;;  %v4720_v29 = vld [vmem:[%s6542_s10 + $0xf0] sm:$0xff] }
 0x49c   : >> { %4717 = vst [vmem:[%s6538_s6 + $0xe0] sm:$0xff] %v4716_v14  ;;  %4719 = vst [vmem:[%s6538_s6 + $0xe8] sm:$0xff] %v4718_v11  ;;  %v4722_v31 = vld [vmem:[%s6542_s10 + $0xf8] sm:$0xff]  ;;  %s8203_s10 = smov %s8132_s22 }
 0x49d   : >> { %4721 = vst [vmem:[%s6538_s6 + $0xf0] sm:$0xff] %v4720_v29  ;;  %4723 = vst [vmem:[%s6538_s6 + $0xf8] sm:$0xff] %v4722_v31  ;;  %s8202_s6 = smov %s4730_s23 }
 0x49e PF: > { %s8173_s16 = sand.u32 31, %s8209_s30   ;;  %s5186_s20 = sshll.u32 %s8065_s17, 8 }
 0x49f   : > { %s4735_s24 = scalar_lea.vmem %s7962_s26, %s5186_s20 [#allocation3]   ;;  %s4737_s25 = scalar_lea.vmem %s8059_s13, %s5186_s20  }
 0x4a0   : > { %p5180_p13 = scmp.le.s32.totalorder %s8173_s16, 0 }
 0x4a1   : > { %s6552_s28 = smov (!%p5180_p13), %s4737_s25   ;;  %s6556_s8 = smov (!%p5180_p13), %s4735_s24  }
 0x4a2   : > { %4828 = sbr.rel (%p5180_p13) target bundleno = 1203 (0x4b3), region = 143  ;;  %s6560_s11 = smov (!%p5180_p13), 0  }
 0x4a3   : > { %s6564_s12 = smov (!%p5180_p13), 0  }
 0x4a9 LB: >> { %v4747_v20 = vld [vmem:[%s6558_s8] sm:$0xff]  ;;  %s4749_s30 = sadd.s32 1, %s6562_s11  ;;  %s4741_s12 = sadd.s32 1, %s6566_s12   ;;  %s6566_s12 = sphi %s6564_s12, %s4741_s12   ;;  %s6562_s11 = sphi %s6560_s11, %s6561_s11   ;;  %s6558_s8 = sphi %s6556_s8, %s4754_s8   ;;  %s6554_s28 = sphi %s6552_s28, %s4755_s28  }
 0x4aa   : >> { %4748 = vst [vmem:[%s6554_s28] sm:$0xff] %v4747_v20  ;;  %p4750_p0 = scmp.ge.s32.totalorder %s4749_s30, %s8173_s16  ;;  %p4740_p1 = scmp.ge.s32.totalorder %s4741_s12, %s8173_s16 }
 0x4ac   : >> { %s8213_s30 = smov (%p4750_p0, %s4749_s30), 0  ;;  %4743 = sbr.rel (!%p4740_p1) target bundleno = 1193 (0x4a9), region = 149 }
 0x4ad   : >> { %s5181_s26 = sshll.u32 %s8213_s30, 3  ;;  %s6561_s11 = smov %s8213_s30  }
 0x4ae   : >> { %s4754_s8 = scalar_lea.vmem %s4735_s24, %s5181_s26 [#allocation3]   ;;  %s4755_s28 = scalar_lea.vmem %s4737_s25, %s5181_s26  }
 0x4b3 PF: > { %p16_p2 = scmp.ge.s32.totalorder %s6627_s29, 4   ;;  %s8205_s26 = smov %s6530_s27 }
 0x4b4   : > { %s8206_s27 = smov %s6635_s9  ;;  %s8207_s28 = smov %s6627_s29 }
 0x4b5   :  { %18 = sbr.rel (!%p16_p2) target bundleno = 5 (0x5), region = 160 }

</bundles_post_ra>
